<compile_context>
chip_gen: v7x
topology: tpu7x:2x2x1
jax: 0.10.0
libtpu: 0.0.40
codegen_flags: <defaults>
</compile_context>

<pallas_src>
import functools
import math

import jax
import jax.numpy as jnp
from jax import lax
from jax.experimental import pallas as pl
from jax.experimental.pallas import tpu as pltpu

EPS_NORM = 1e-12   # F.normalize eps
EPS_BN = 1e-5      # BatchNorm1d eps
LANES = 128


# ----------------------------------------------------------------------------- helpers
def _prelu(x, a):
    return jnp.where(x >= 0, x, a * x)


def _row_normalize(x):
    n = jnp.sqrt(jnp.sum(x * x, axis=-1, keepdims=True))
    return x / jnp.maximum(n, EPS_NORM)


def _gram(a, b):
    # a @ b.T without materializing the transpose (contract last dims on the MXU).
    return lax.dot_general(a, b, (((1,), (1,)), ((), ())),
                           preferred_element_type=jnp.float32)


def _mlp(x, w1, b1, gamma, beta_bn, a, w2, b2):
    # Linear -> BatchNorm1d (training-mode batch stats, biased var, single pass)
    #        -> PReLU -> Linear.     x: (N, Din) -> (N, Dout)
    h = jnp.dot(x, w1, preferred_element_type=jnp.float32) + b1
    mean = jnp.mean(h, axis=0, keepdims=True)
    ex2 = jnp.mean(h * h, axis=0, keepdims=True)
    var = jnp.maximum(ex2 - mean * mean, 0.0)
    h = (h - mean) * lax.rsqrt(var + EPS_BN) * gamma + beta_bn
    h = _prelu(h, a)
    return jnp.dot(h, w2, preferred_element_type=jnp.float32) + b2


def _agg_loss(z1, z2, inv_tau):
    # -log(exp(s_ii/tau) / sum_j exp(s_ij/tau)) in log domain; z1, z2 row-normalized.
    s = _gram(z1, z2)
    lse = jnp.log(jnp.sum(jnp.exp(s * inv_tau), axis=-1, keepdims=True))
    diag = jnp.sum(z1 * z2, axis=-1, keepdims=True)
    return lse - diag * inv_tau                                   # (N, 1)


def _interact_loss(z1, z2, inv_tau, exp_inv_tau):
    # z1, z2 row-normalized; intra diagonal exp(z1.z1/tau) == exp(1/tau) (constant).
    intra = jnp.exp(_gram(z1, z1) * inv_tau)
    inter = jnp.exp(_gram(z1, z2) * inv_tau)
    denom = (jnp.sum(intra, axis=-1, keepdims=True)
             + jnp.sum(inter, axis=-1, keepdims=True) - exp_inv_tau)
    diag = jnp.sum(z1 * z2, axis=-1, keepdims=True)
    return jnp.log(denom) - diag * inv_tau                        # (N, 1)


# ----------------------------------------------------------------------------- kernel
def imcs_kernel(f0_ref, f1_ref, f2_ref, a0_ref, a1_ref, a2_ref,
                gw_ref, gb_ref,
                pw1_ref, pb1_ref, pg_ref, pbe_ref, pw2_ref, pb2_ref,
                qw1_ref, qb1_ref, qg_ref, qbe_ref, qw2_ref, qb2_ref,
                scal_ref, loss_ref,
                *, alpha, beta, inv_tau, exp_inv_tau):
    # learnable PReLU slopes from SMEM (alpha/beta/tau are compile-time constants)
    gnn_a, proj_a, pred_a = scal_ref[0], scal_ref[1], scal_ref[2]

    gw, gb = gw_ref[...], gb_ref[...]
    pw1, pb1, pg, pbe = pw1_ref[...], pb1_ref[...], pg_ref[...], pbe_ref[...]
    pw2, pb2 = pw2_ref[...], pb2_ref[...]
    qw1, qb1, qg, qbe = qw1_ref[...], qb1_ref[...], qg_ref[...], qbe_ref[...]
    qw2, qb2 = qw2_ref[...], qb2_ref[...]

    projs, preds = [], []
    for f_ref, a_ref in ((f0_ref, a0_ref), (f1_ref, a1_ref), (f2_ref, a2_ref)):
        # GCN encoder, right-associated: (adj @ x) @ W   (F << H)
        ax = jnp.dot(a_ref[...], f_ref[...], preferred_element_type=jnp.float32)
        h = _prelu(jnp.dot(ax, gw, preferred_element_type=jnp.float32) + gb, gnn_a)
        # projector MLP (target encoders are deep copies of the online one at init,
        # so target projections == online projections)
        proj = _mlp(h, pw1, pb1, pg, pbe, proj_a, pw2, pb2)       # (N, 128) padded
        pred = _mlp(proj, qw1, qb1, qg, qbe, pred_a, qw2, qb2)    # (N, 128) padded
        projs.append(proj)
        preds.append(pred)
    proj0, proj1, proj2 = projs
    pred0, pred1, pred2 = preds

    # -------- reconstruction loss: row-normalized Gram sum vs. adjacency, MSE
    s = _gram(pred1, pred1) + _gram(proj0, proj0) + _gram(proj2, proj2)
    s = _row_normalize(s)
    diff = a0_ref[...] - s
    recon = jnp.mean(diff * diff, keepdims=True)                  # (1, 1)

    # -------- normalize each embedding exactly once
    zp0, zp1, zp2 = _row_normalize(proj0), _row_normalize(proj1), _row_normalize(proj2)
    zq0, zq1, zq2 = _row_normalize(pred0), _row_normalize(pred1), _row_normalize(pred2)

    # -------- contrastive losses (log domain)
    l_cn_1 = (alpha * _agg_loss(zq1, zp0, inv_tau)
              + (1.0 - alpha) * _agg_loss(zq1, zp2, inv_tau))
    l_cn_2 = (alpha * _agg_loss(zq2, zp1, inv_tau)
              + (1.0 - alpha) * _agg_loss(zq2, zp0, inv_tau))
    l_cn = 0.5 * (l_cn_1 + l_cn_2)

    l_cv = (_interact_loss(zq0, zq1, inv_tau, exp_inv_tau)
            + _interact_loss(zq1, zq2, inv_tau, exp_inv_tau)
            + _interact_loss(zq2, zq0, inv_tau, exp_inv_tau)) / 3.0

    per_node = l_cv * beta + l_cn * (1.0 - beta)                  # (N, 1)
    # mean over nodes; adding the scalar recon after the mean equals the original
    # broadcast-then-mean.
    loss_ref[...] = jnp.mean(per_node, keepdims=True) + recon     # (1, 1)


# ----------------------------------------------------------------------------- wrapper
def _pad_cols(x, mult=LANES):
    pad = (-x.shape[-1]) % mult
    if pad:
        x = jnp.pad(x, [(0, 0)] * (x.ndim - 1) + [(0, pad)])
    return x


def _pad_rows(x, mult=LANES):
    pad = (-x.shape[0]) % mult
    if pad:
        x = jnp.pad(x, [(0, pad)] + [(0, 0)] * (x.ndim - 1))
    return x


def imcs_forward(adj, aug_adj_1, aug_adj_2, feat, aug_feat_1, aug_feat_2,
                 params, *, alpha, beta, tau=0.8):
    g, p, q = params["gnn"], params["projector"], params["predictor"]

    # Zero-pad projector/predictor output dims to a multiple of 128 lanes (exact:
    # padded w2/b2 columns are zero -> padded embedding lanes are exactly zero, so
    # every Gram / normalize / diagonal is unchanged while lane & MXU-K fill double).
    p_w2, p_b2 = _pad_cols(p["w2"]), _pad_cols(p["b2"])
    q_w1 = _pad_rows(q["w1"])                      # predictor input = padded proj
    q_w2, q_b2 = _pad_cols(q["w2"]), _pad_cols(q["b2"])

    scal = jnp.asarray([g["a"], p["a"], q["a"]], dtype=jnp.float32)

    dense_args = (
        feat, aug_feat_1, aug_feat_2, adj, aug_adj_1, aug_adj_2,
        g["w"], g["b"],
        p["w1"], p["b1"], p["gamma"], p["beta"], p_w2, p_b2,
        q_w1, q["b1"], q["gamma"], q["beta"], q_w2, q_b2,
    )
    vmem = pl.BlockSpec(memory_space=pltpu.MemorySpace.VMEM)
    in_specs = [vmem] * len(dense_args) + [
        pl.BlockSpec(memory_space=pltpu.MemorySpace.SMEM)]

    kernel = functools.partial(
        imcs_kernel,
        alpha=float(alpha), beta=float(beta),
        inv_tau=1.0 / float(tau), exp_inv_tau=math.exp(1.0 / float(tau)))

    # TODO(synk): for N >~ 1-2k the (N,N) adjacencies / Gram matrices no longer fit
    # scoped VMEM (worst on v7x: 64 MiB physical); switch to node-row tiling with
    # resident weights, flash-style streaming row-sums, and a "parallel" node axis.
    loss = pl.pallas_call(
        kernel,
        out_shape=jax.ShapeDtypeStruct((1, 1), jnp.float32),
        in_specs=in_specs,
        out_specs=pl.BlockSpec(memory_space=pltpu.MemorySpace.VMEM),
        compiler_params=pltpu.CompilerParams(
            vmem_limit_bytes=64 * 1024 * 1024),
    )(*dense_args, scal)
    return loss[0, 0]


# ----------------------------------------------------------------------------- params
def init_linear(key, din, dout):
    k1, k2 = jax.random.split(key)
    bound = 1.0 / float(din) ** 0.5
    w = jax.random.uniform(k1, (din, dout), jnp.float32, -bound, bound)
    b = jax.random.uniform(k2, (1, dout), jnp.float32, -bound, bound)
    return w, b


def init_mlp(key, din, dhid, dout):
    k1, k2 = jax.random.split(key)
    w1, b1 = init_linear(k1, din, dhid)
    w2, b2 = init_linear(k2, dhid, dout)
    return dict(
        w1=w1, b1=b1,
        gamma=jnp.ones((1, dhid), jnp.float32),
        beta=jnp.zeros((1, dhid), jnp.float32),
        a=0.25,                                      # PReLU init
        w2=w2, b2=b2,
    )


def init_gcn(key, feat_size, hidden=512):
    w, b = init_linear(key, feat_size, hidden)
    return dict(w=w, b=b, a=0.25)


# ----------------------------------------------------------------------------- main
if __name__ == "__main__":
    N = 8                      # nodes
    FEAT = 32                  # feat_size
    GNN_HID = 512              # fixed by projector input size in the module
    PROJ_HID, PROJ = 128, 64   # projection_hidden_size, projection_size
    PRED_HID, PRED = 128, 64   # prediction_hidden_size, prediction_size
    ALPHA, BETA, TAU = 0.5, 0.6, 0.8

    key = jax.random.PRNGKey(0)
    k_feat, k_f1, k_f2, k_adj, k_gnn, k_proj, k_pred = jax.random.split(key, 7)

    feat = jax.random.normal(k_feat, (N, FEAT), jnp.float32)
    aug_feat_1 = jax.random.normal(k_f1, (N, FEAT), jnp.float32)
    aug_feat_2 = jax.random.normal(k_f2, (N, FEAT), jnp.float32)

    def make_adj(k):
        a = (jax.random.uniform(k, (N, N)) > 0.6).astype(jnp.float32)
        a = jnp.minimum(a + a.T + jnp.eye(N, dtype=jnp.float32), 1.0)
        deg = jnp.sum(a, axis=-1, keepdims=True)
        return a / deg                         # row-normalized dense adjacency

    ka0, ka1, ka2 = jax.random.split(k_adj, 3)
    adj = make_adj(ka0)
    aug_adj_1 = make_adj(ka1)
    aug_adj_2 = make_adj(ka2)

    params = dict(
        gnn=init_gcn(k_gnn, FEAT, GNN_HID),
        projector=init_mlp(k_proj, GNN_HID, PROJ_HID, PROJ),
        predictor=init_mlp(k_pred, PROJ, PRED_HID, PRED),
    )

    loss = imcs_forward(adj, aug_adj_1, aug_adj_2, feat, aug_feat_1, aug_feat_2,
                        params, alpha=ALPHA, beta=BETA, tau=TAU)
    loss = jax.block_until_ready(loss)
    assert jnp.isfinite(loss), "loss is not finite"
    print("KERNEL_OK")
</pallas_src>

<mosaic_0001>
module attributes {stable_mosaic.version = 11 : i64} {
  func.func @imcs_kernel(%arg0: memref<8x32xf32, #tpu.memory_space<vmem>>, %arg1: memref<8x32xf32, #tpu.memory_space<vmem>>, %arg2: memref<8x32xf32, #tpu.memory_space<vmem>>, %arg3: memref<8x8xf32, #tpu.memory_space<vmem>>, %arg4: memref<8x8xf32, #tpu.memory_space<vmem>>, %arg5: memref<8x8xf32, #tpu.memory_space<vmem>>, %arg6: memref<32x512xf32, #tpu.memory_space<vmem>>, %arg7: memref<1x512xf32, #tpu.memory_space<vmem>>, %arg8: memref<512x128xf32, #tpu.memory_space<vmem>>, %arg9: memref<1x128xf32, #tpu.memory_space<vmem>>, %arg10: memref<1x128xf32, #tpu.memory_space<vmem>>, %arg11: memref<1x128xf32, #tpu.memory_space<vmem>>, %arg12: memref<128x128xf32, #tpu.memory_space<vmem>>, %arg13: memref<1x128xf32, #tpu.memory_space<vmem>>, %arg14: memref<128x128xf32, #tpu.memory_space<vmem>>, %arg15: memref<1x128xf32, #tpu.memory_space<vmem>>, %arg16: memref<1x128xf32, #tpu.memory_space<vmem>>, %arg17: memref<1x128xf32, #tpu.memory_space<vmem>>, %arg18: memref<128x128xf32, #tpu.memory_space<vmem>>, %arg19: memref<1x128xf32, #tpu.memory_space<vmem>>, %arg20: memref<3xf32, #tpu.memory_space<smem>>, %arg21: memref<1x1xf32, #tpu.memory_space<vmem>>) attributes {dimension_semantics = [], scalar_prefetch = 0 : i64, scratch_operands = 0 : i64, tpu.core_type = #tpu.core_type<tc>} {
    %c0 = arith.constant 0 : index
    %0 = memref.load %arg20[%c0] : memref<3xf32, #tpu.memory_space<smem>>
    %c1 = arith.constant 1 : index
    %1 = memref.load %arg20[%c1] : memref<3xf32, #tpu.memory_space<smem>>
    %c2 = arith.constant 2 : index
    %2 = memref.load %arg20[%c2] : memref<3xf32, #tpu.memory_space<smem>>
    %c0_0 = arith.constant 0 : index
    %c0_1 = arith.constant 0 : index
    %3 = vector.load %arg6[%c0_0, %c0_1] : memref<32x512xf32, #tpu.memory_space<vmem>>, vector<32x512xf32>
    %c0_2 = arith.constant 0 : index
    %c0_3 = arith.constant 0 : index
    %4 = vector.load %arg7[%c0_2, %c0_3] : memref<1x512xf32, #tpu.memory_space<vmem>>, vector<1x512xf32>
    %c0_4 = arith.constant 0 : index
    %c0_5 = arith.constant 0 : index
    %5 = vector.load %arg8[%c0_4, %c0_5] : memref<512x128xf32, #tpu.memory_space<vmem>>, vector<512x128xf32>
    %c0_6 = arith.constant 0 : index
    %c0_7 = arith.constant 0 : index
    %6 = vector.load %arg9[%c0_6, %c0_7] : memref<1x128xf32, #tpu.memory_space<vmem>>, vector<1x128xf32>
    %c0_8 = arith.constant 0 : index
    %c0_9 = arith.constant 0 : index
    %7 = vector.load %arg10[%c0_8, %c0_9] : memref<1x128xf32, #tpu.memory_space<vmem>>, vector<1x128xf32>
    %c0_10 = arith.constant 0 : index
    %c0_11 = arith.constant 0 : index
    %8 = vector.load %arg11[%c0_10, %c0_11] : memref<1x128xf32, #tpu.memory_space<vmem>>, vector<1x128xf32>
    %c0_12 = arith.constant 0 : index
    %c0_13 = arith.constant 0 : index
    %9 = vector.load %arg12[%c0_12, %c0_13] : memref<128x128xf32, #tpu.memory_space<vmem>>, vector<128x128xf32>
    %c0_14 = arith.constant 0 : index
    %c0_15 = arith.constant 0 : index
    %10 = vector.load %arg13[%c0_14, %c0_15] : memref<1x128xf32, #tpu.memory_space<vmem>>, vector<1x128xf32>
    %c0_16 = arith.constant 0 : index
    %c0_17 = arith.constant 0 : index
    %11 = vector.load %arg14[%c0_16, %c0_17] : memref<128x128xf32, #tpu.memory_space<vmem>>, vector<128x128xf32>
    %c0_18 = arith.constant 0 : index
    %c0_19 = arith.constant 0 : index
    %12 = vector.load %arg15[%c0_18, %c0_19] : memref<1x128xf32, #tpu.memory_space<vmem>>, vector<1x128xf32>
    %c0_20 = arith.constant 0 : index
    %c0_21 = arith.constant 0 : index
    %13 = vector.load %arg16[%c0_20, %c0_21] : memref<1x128xf32, #tpu.memory_space<vmem>>, vector<1x128xf32>
    %c0_22 = arith.constant 0 : index
    %c0_23 = arith.constant 0 : index
    %14 = vector.load %arg17[%c0_22, %c0_23] : memref<1x128xf32, #tpu.memory_space<vmem>>, vector<1x128xf32>
    %c0_24 = arith.constant 0 : index
    %c0_25 = arith.constant 0 : index
    %15 = vector.load %arg18[%c0_24, %c0_25] : memref<128x128xf32, #tpu.memory_space<vmem>>, vector<128x128xf32>
    %c0_26 = arith.constant 0 : index
    %c0_27 = arith.constant 0 : index
    %16 = vector.load %arg19[%c0_26, %c0_27] : memref<1x128xf32, #tpu.memory_space<vmem>>, vector<1x128xf32>
    %c0_28 = arith.constant 0 : index
    %c0_29 = arith.constant 0 : index
    %17 = vector.load %arg3[%c0_28, %c0_29] : memref<8x8xf32, #tpu.memory_space<vmem>>, vector<8x8xf32>
    %c0_30 = arith.constant 0 : index
    %c0_31 = arith.constant 0 : index
    %18 = vector.load %arg0[%c0_30, %c0_31] : memref<8x32xf32, #tpu.memory_space<vmem>>, vector<8x32xf32>
    %cst = arith.constant dense<0.000000e+00> : vector<8x32xf32>
    %19 = tpu.matmul %17, %18, %cst {dimension_numbers = #tpu.dot_dimension_numbers<[1], [0], [0], [1], [0, 0, 1, 1], [], []>} : vector<8x8xf32>, vector<8x32xf32>, vector<8x32xf32> -> vector<8x32xf32>
    %cst_32 = arith.constant dense<0.000000e+00> : vector<8x512xf32>
    %20 = tpu.matmul %19, %3, %cst_32 {dimension_numbers = #tpu.dot_dimension_numbers<[1], [0], [0], [1], [0, 0, 1, 1], [], []>} : vector<8x32xf32>, vector<32x512xf32>, vector<8x512xf32> -> vector<8x512xf32>
    %21 = vector.broadcast %4 : vector<1x512xf32> to vector<8x512xf32>
    %22 = arith.addf %20, %21 : vector<8x512xf32>
    %cst_33 = arith.constant 0.000000e+00 : f32
    %23 = vector.broadcast %cst_33 : f32 to vector<8x512xf32>
    %24 = arith.cmpf oge, %22, %23 : vector<8x512xf32>
    %25 = vector.broadcast %0 : f32 to vector<8x512xf32>
    %26 = arith.mulf %25, %22 : vector<8x512xf32>
    %27 = arith.select %24, %22, %26 : vector<8x512xi1>, vector<8x512xf32>
    %cst_34 = arith.constant dense<0.000000e+00> : vector<8x128xf32>
    %28 = tpu.matmul %27, %5, %cst_34 {dimension_numbers = #tpu.dot_dimension_numbers<[1], [0], [0], [1], [0, 0, 1, 1], [], []>} : vector<8x512xf32>, vector<512x128xf32>, vector<8x128xf32> -> vector<8x128xf32>
    %29 = vector.broadcast %6 : vector<1x128xf32> to vector<8x128xf32>
    %30 = arith.addf %28, %29 : vector<8x128xf32>
    %cst_35 = arith.constant dense<0.000000e+00> : vector<128xf32>
    %31 = vector.multi_reduction <add>, %30, %cst_35 [0] : vector<8x128xf32> to vector<128xf32>
    %32 = vector.shape_cast %31 : vector<128xf32> to vector<1x128xf32>
    %cst_36 = arith.constant 8.000000e+00 : f32
    %33 = vector.broadcast %cst_36 : f32 to vector<1x128xf32>
    %34 = arith.divf %32, %33 : vector<1x128xf32>
    %35 = arith.mulf %30, %30 : vector<8x128xf32>
    %cst_37 = arith.constant dense<0.000000e+00> : vector<128xf32>
    %36 = vector.multi_reduction <add>, %35, %cst_37 [0] : vector<8x128xf32> to vector<128xf32>
    %37 = vector.shape_cast %36 : vector<128xf32> to vector<1x128xf32>
    %cst_38 = arith.constant 8.000000e+00 : f32
    %38 = vector.broadcast %cst_38 : f32 to vector<1x128xf32>
    %39 = arith.divf %37, %38 : vector<1x128xf32>
    %40 = arith.mulf %34, %34 : vector<1x128xf32>
    %41 = arith.subf %39, %40 : vector<1x128xf32>
    %cst_39 = arith.constant 0.000000e+00 : f32
    %42 = vector.broadcast %cst_39 : f32 to vector<1x128xf32>
    %43 = arith.maximumf %41, %42 : vector<1x128xf32>
    %44 = vector.broadcast %34 : vector<1x128xf32> to vector<8x128xf32>
    %45 = arith.subf %30, %44 : vector<8x128xf32>
    %cst_40 = arith.constant 9.99999974E-6 : f32
    %46 = vector.broadcast %cst_40 : f32 to vector<1x128xf32>
    %47 = arith.addf %43, %46 : vector<1x128xf32>
    %48 = math.rsqrt %47 : vector<1x128xf32>
    %49 = vector.broadcast %48 : vector<1x128xf32> to vector<8x128xf32>
    %50 = arith.mulf %45, %49 : vector<8x128xf32>
    %51 = vector.broadcast %7 : vector<1x128xf32> to vector<8x128xf32>
    %52 = arith.mulf %50, %51 : vector<8x128xf32>
    %53 = vector.broadcast %8 : vector<1x128xf32> to vector<8x128xf32>
    %54 = arith.addf %52, %53 : vector<8x128xf32>
    %cst_41 = arith.constant 0.000000e+00 : f32
    %55 = vector.broadcast %cst_41 : f32 to vector<8x128xf32>
    %56 = arith.cmpf oge, %54, %55 : vector<8x128xf32>
    %57 = vector.broadcast %1 : f32 to vector<8x128xf32>
    %58 = arith.mulf %57, %54 : vector<8x128xf32>
    %59 = arith.select %56, %54, %58 : vector<8x128xi1>, vector<8x128xf32>
    %cst_42 = arith.constant dense<0.000000e+00> : vector<8x128xf32>
    %60 = tpu.matmul %59, %9, %cst_42 {dimension_numbers = #tpu.dot_dimension_numbers<[1], [0], [0], [1], [0, 0, 1, 1], [], []>} : vector<8x128xf32>, vector<128x128xf32>, vector<8x128xf32> -> vector<8x128xf32>
    %61 = vector.broadcast %10 : vector<1x128xf32> to vector<8x128xf32>
    %62 = arith.addf %60, %61 : vector<8x128xf32>
    %cst_43 = arith.constant dense<0.000000e+00> : vector<8x128xf32>
    %63 = tpu.matmul %62, %11, %cst_43 {dimension_numbers = #tpu.dot_dimension_numbers<[1], [0], [0], [1], [0, 0, 1, 1], [], []>} : vector<8x128xf32>, vector<128x128xf32>, vector<8x128xf32> -> vector<8x128xf32>
    %64 = vector.broadcast %12 : vector<1x128xf32> to vector<8x128xf32>
    %65 = arith.addf %63, %64 : vector<8x128xf32>
    %cst_44 = arith.constant dense<0.000000e+00> : vector<128xf32>
    %66 = vector.multi_reduction <add>, %65, %cst_44 [0] : vector<8x128xf32> to vector<128xf32>
    %67 = vector.shape_cast %66 : vector<128xf32> to vector<1x128xf32>
    %cst_45 = arith.constant 8.000000e+00 : f32
    %68 = vector.broadcast %cst_45 : f32 to vector<1x128xf32>
    %69 = arith.divf %67, %68 : vector<1x128xf32>
    %70 = arith.mulf %65, %65 : vector<8x128xf32>
    %cst_46 = arith.constant dense<0.000000e+00> : vector<128xf32>
    %71 = vector.multi_reduction <add>, %70, %cst_46 [0] : vector<8x128xf32> to vector<128xf32>
    %72 = vector.shape_cast %71 : vector<128xf32> to vector<1x128xf32>
    %cst_47 = arith.constant 8.000000e+00 : f32
    %73 = vector.broadcast %cst_47 : f32 to vector<1x128xf32>
    %74 = arith.divf %72, %73 : vector<1x128xf32>
    %75 = arith.mulf %69, %69 : vector<1x128xf32>
    %76 = arith.subf %74, %75 : vector<1x128xf32>
    %cst_48 = arith.constant 0.000000e+00 : f32
    %77 = vector.broadcast %cst_48 : f32 to vector<1x128xf32>
    %78 = arith.maximumf %76, %77 : vector<1x128xf32>
    %79 = vector.broadcast %69 : vector<1x128xf32> to vector<8x128xf32>
    %80 = arith.subf %65, %79 : vector<8x128xf32>
    %cst_49 = arith.constant 9.99999974E-6 : f32
    %81 = vector.broadcast %cst_49 : f32 to vector<1x128xf32>
    %82 = arith.addf %78, %81 : vector<1x128xf32>
    %83 = math.rsqrt %82 : vector<1x128xf32>
    %84 = vector.broadcast %83 : vector<1x128xf32> to vector<8x128xf32>
    %85 = arith.mulf %80, %84 : vector<8x128xf32>
    %86 = vector.broadcast %13 : vector<1x128xf32> to vector<8x128xf32>
    %87 = arith.mulf %85, %86 : vector<8x128xf32>
    %88 = vector.broadcast %14 : vector<1x128xf32> to vector<8x128xf32>
    %89 = arith.addf %87, %88 : vector<8x128xf32>
    %cst_50 = arith.constant 0.000000e+00 : f32
    %90 = vector.broadcast %cst_50 : f32 to vector<8x128xf32>
    %91 = arith.cmpf oge, %89, %90 : vector<8x128xf32>
    %92 = vector.broadcast %2 : f32 to vector<8x128xf32>
    %93 = arith.mulf %92, %89 : vector<8x128xf32>
    %94 = arith.select %91, %89, %93 : vector<8x128xi1>, vector<8x128xf32>
    %cst_51 = arith.constant dense<0.000000e+00> : vector<8x128xf32>
    %95 = tpu.matmul %94, %15, %cst_51 {dimension_numbers = #tpu.dot_dimension_numbers<[1], [0], [0], [1], [0, 0, 1, 1], [], []>} : vector<8x128xf32>, vector<128x128xf32>, vector<8x128xf32> -> vector<8x128xf32>
    %96 = vector.broadcast %16 : vector<1x128xf32> to vector<8x128xf32>
    %97 = arith.addf %95, %96 : vector<8x128xf32>
    %c0_52 = arith.constant 0 : index
    %c0_53 = arith.constant 0 : index
    %98 = vector.load %arg4[%c0_52, %c0_53] : memref<8x8xf32, #tpu.memory_space<vmem>>, vector<8x8xf32>
    %c0_54 = arith.constant 0 : index
    %c0_55 = arith.constant 0 : index
    %99 = vector.load %arg1[%c0_54, %c0_55] : memref<8x32xf32, #tpu.memory_space<vmem>>, vector<8x32xf32>
    %cst_56 = arith.constant dense<0.000000e+00> : vector<8x32xf32>
    %100 = tpu.matmul %98, %99, %cst_56 {dimension_numbers = #tpu.dot_dimension_numbers<[1], [0], [0], [1], [0, 0, 1, 1], [], []>} : vector<8x8xf32>, vector<8x32xf32>, vector<8x32xf32> -> vector<8x32xf32>
    %cst_57 = arith.constant dense<0.000000e+00> : vector<8x512xf32>
    %101 = tpu.matmul %100, %3, %cst_57 {dimension_numbers = #tpu.dot_dimension_numbers<[1], [0], [0], [1], [0, 0, 1, 1], [], []>} : vector<8x32xf32>, vector<32x512xf32>, vector<8x512xf32> -> vector<8x512xf32>
    %102 = vector.broadcast %4 : vector<1x512xf32> to vector<8x512xf32>
    %103 = arith.addf %101, %102 : vector<8x512xf32>
    %cst_58 = arith.constant 0.000000e+00 : f32
    %104 = vector.broadcast %cst_58 : f32 to vector<8x512xf32>
    %105 = arith.cmpf oge, %103, %104 : vector<8x512xf32>
    %106 = vector.broadcast %0 : f32 to vector<8x512xf32>
    %107 = arith.mulf %106, %103 : vector<8x512xf32>
    %108 = arith.select %105, %103, %107 : vector<8x512xi1>, vector<8x512xf32>
    %cst_59 = arith.constant dense<0.000000e+00> : vector<8x128xf32>
    %109 = tpu.matmul %108, %5, %cst_59 {dimension_numbers = #tpu.dot_dimension_numbers<[1], [0], [0], [1], [0, 0, 1, 1], [], []>} : vector<8x512xf32>, vector<512x128xf32>, vector<8x128xf32> -> vector<8x128xf32>
    %110 = vector.broadcast %6 : vector<1x128xf32> to vector<8x128xf32>
    %111 = arith.addf %109, %110 : vector<8x128xf32>
    %cst_60 = arith.constant dense<0.000000e+00> : vector<128xf32>
    %112 = vector.multi_reduction <add>, %111, %cst_60 [0] : vector<8x128xf32> to vector<128xf32>
    %113 = vector.shape_cast %112 : vector<128xf32> to vector<1x128xf32>
    %cst_61 = arith.constant 8.000000e+00 : f32
    %114 = vector.broadcast %cst_61 : f32 to vector<1x128xf32>
    %115 = arith.divf %113, %114 : vector<1x128xf32>
    %116 = arith.mulf %111, %111 : vector<8x128xf32>
    %cst_62 = arith.constant dense<0.000000e+00> : vector<128xf32>
    %117 = vector.multi_reduction <add>, %116, %cst_62 [0] : vector<8x128xf32> to vector<128xf32>
    %118 = vector.shape_cast %117 : vector<128xf32> to vector<1x128xf32>
    %cst_63 = arith.constant 8.000000e+00 : f32
    %119 = vector.broadcast %cst_63 : f32 to vector<1x128xf32>
    %120 = arith.divf %118, %119 : vector<1x128xf32>
    %121 = arith.mulf %115, %115 : vector<1x128xf32>
    %122 = arith.subf %120, %121 : vector<1x128xf32>
    %cst_64 = arith.constant 0.000000e+00 : f32
    %123 = vector.broadcast %cst_64 : f32 to vector<1x128xf32>
    %124 = arith.maximumf %122, %123 : vector<1x128xf32>
    %125 = vector.broadcast %115 : vector<1x128xf32> to vector<8x128xf32>
    %126 = arith.subf %111, %125 : vector<8x128xf32>
    %cst_65 = arith.constant 9.99999974E-6 : f32
    %127 = vector.broadcast %cst_65 : f32 to vector<1x128xf32>
    %128 = arith.addf %124, %127 : vector<1x128xf32>
    %129 = math.rsqrt %128 : vector<1x128xf32>
    %130 = vector.broadcast %129 : vector<1x128xf32> to vector<8x128xf32>
    %131 = arith.mulf %126, %130 : vector<8x128xf32>
    %132 = vector.broadcast %7 : vector<1x128xf32> to vector<8x128xf32>
    %133 = arith.mulf %131, %132 : vector<8x128xf32>
    %134 = vector.broadcast %8 : vector<1x128xf32> to vector<8x128xf32>
    %135 = arith.addf %133, %134 : vector<8x128xf32>
    %cst_66 = arith.constant 0.000000e+00 : f32
    %136 = vector.broadcast %cst_66 : f32 to vector<8x128xf32>
    %137 = arith.cmpf oge, %135, %136 : vector<8x128xf32>
    %138 = vector.broadcast %1 : f32 to vector<8x128xf32>
    %139 = arith.mulf %138, %135 : vector<8x128xf32>
    %140 = arith.select %137, %135, %139 : vector<8x128xi1>, vector<8x128xf32>
    %cst_67 = arith.constant dense<0.000000e+00> : vector<8x128xf32>
    %141 = tpu.matmul %140, %9, %cst_67 {dimension_numbers = #tpu.dot_dimension_numbers<[1], [0], [0], [1], [0, 0, 1, 1], [], []>} : vector<8x128xf32>, vector<128x128xf32>, vector<8x128xf32> -> vector<8x128xf32>
    %142 = vector.broadcast %10 : vector<1x128xf32> to vector<8x128xf32>
    %143 = arith.addf %141, %142 : vector<8x128xf32>
    %cst_68 = arith.constant dense<0.000000e+00> : vector<8x128xf32>
    %144 = tpu.matmul %143, %11, %cst_68 {dimension_numbers = #tpu.dot_dimension_numbers<[1], [0], [0], [1], [0, 0, 1, 1], [], []>} : vector<8x128xf32>, vector<128x128xf32>, vector<8x128xf32> -> vector<8x128xf32>
    %145 = vector.broadcast %12 : vector<1x128xf32> to vector<8x128xf32>
    %146 = arith.addf %144, %145 : vector<8x128xf32>
    %cst_69 = arith.constant dense<0.000000e+00> : vector<128xf32>
    %147 = vector.multi_reduction <add>, %146, %cst_69 [0] : vector<8x128xf32> to vector<128xf32>
    %148 = vector.shape_cast %147 : vector<128xf32> to vector<1x128xf32>
    %cst_70 = arith.constant 8.000000e+00 : f32
    %149 = vector.broadcast %cst_70 : f32 to vector<1x128xf32>
    %150 = arith.divf %148, %149 : vector<1x128xf32>
    %151 = arith.mulf %146, %146 : vector<8x128xf32>
    %cst_71 = arith.constant dense<0.000000e+00> : vector<128xf32>
    %152 = vector.multi_reduction <add>, %151, %cst_71 [0] : vector<8x128xf32> to vector<128xf32>
    %153 = vector.shape_cast %152 : vector<128xf32> to vector<1x128xf32>
    %cst_72 = arith.constant 8.000000e+00 : f32
    %154 = vector.broadcast %cst_72 : f32 to vector<1x128xf32>
    %155 = arith.divf %153, %154 : vector<1x128xf32>
    %156 = arith.mulf %150, %150 : vector<1x128xf32>
    %157 = arith.subf %155, %156 : vector<1x128xf32>
    %cst_73 = arith.constant 0.000000e+00 : f32
    %158 = vector.broadcast %cst_73 : f32 to vector<1x128xf32>
    %159 = arith.maximumf %157, %158 : vector<1x128xf32>
    %160 = vector.broadcast %150 : vector<1x128xf32> to vector<8x128xf32>
    %161 = arith.subf %146, %160 : vector<8x128xf32>
    %cst_74 = arith.constant 9.99999974E-6 : f32
    %162 = vector.broadcast %cst_74 : f32 to vector<1x128xf32>
    %163 = arith.addf %159, %162 : vector<1x128xf32>
    %164 = math.rsqrt %163 : vector<1x128xf32>
    %165 = vector.broadcast %164 : vector<1x128xf32> to vector<8x128xf32>
    %166 = arith.mulf %161, %165 : vector<8x128xf32>
    %167 = vector.broadcast %13 : vector<1x128xf32> to vector<8x128xf32>
    %168 = arith.mulf %166, %167 : vector<8x128xf32>
    %169 = vector.broadcast %14 : vector<1x128xf32> to vector<8x128xf32>
    %170 = arith.addf %168, %169 : vector<8x128xf32>
    %cst_75 = arith.constant 0.000000e+00 : f32
    %171 = vector.broadcast %cst_75 : f32 to vector<8x128xf32>
    %172 = arith.cmpf oge, %170, %171 : vector<8x128xf32>
    %173 = vector.broadcast %2 : f32 to vector<8x128xf32>
    %174 = arith.mulf %173, %170 : vector<8x128xf32>
    %175 = arith.select %172, %170, %174 : vector<8x128xi1>, vector<8x128xf32>
    %cst_76 = arith.constant dense<0.000000e+00> : vector<8x128xf32>
    %176 = tpu.matmul %175, %15, %cst_76 {dimension_numbers = #tpu.dot_dimension_numbers<[1], [0], [0], [1], [0, 0, 1, 1], [], []>} : vector<8x128xf32>, vector<128x128xf32>, vector<8x128xf32> -> vector<8x128xf32>
    %177 = vector.broadcast %16 : vector<1x128xf32> to vector<8x128xf32>
    %178 = arith.addf %176, %177 : vector<8x128xf32>
    %c0_77 = arith.constant 0 : index
    %c0_78 = arith.constant 0 : index
    %179 = vector.load %arg5[%c0_77, %c0_78] : memref<8x8xf32, #tpu.memory_space<vmem>>, vector<8x8xf32>
    %c0_79 = arith.constant 0 : index
    %c0_80 = arith.constant 0 : index
    %180 = vector.load %arg2[%c0_79, %c0_80] : memref<8x32xf32, #tpu.memory_space<vmem>>, vector<8x32xf32>
    %cst_81 = arith.constant dense<0.000000e+00> : vector<8x32xf32>
    %181 = tpu.matmul %179, %180, %cst_81 {dimension_numbers = #tpu.dot_dimension_numbers<[1], [0], [0], [1], [0, 0, 1, 1], [], []>} : vector<8x8xf32>, vector<8x32xf32>, vector<8x32xf32> -> vector<8x32xf32>
    %cst_82 = arith.constant dense<0.000000e+00> : vector<8x512xf32>
    %182 = tpu.matmul %181, %3, %cst_82 {dimension_numbers = #tpu.dot_dimension_numbers<[1], [0], [0], [1], [0, 0, 1, 1], [], []>} : vector<8x32xf32>, vector<32x512xf32>, vector<8x512xf32> -> vector<8x512xf32>
    %183 = vector.broadcast %4 : vector<1x512xf32> to vector<8x512xf32>
    %184 = arith.addf %182, %183 : vector<8x512xf32>
    %cst_83 = arith.constant 0.000000e+00 : f32
    %185 = vector.broadcast %cst_83 : f32 to vector<8x512xf32>
    %186 = arith.cmpf oge, %184, %185 : vector<8x512xf32>
    %187 = vector.broadcast %0 : f32 to vector<8x512xf32>
    %188 = arith.mulf %187, %184 : vector<8x512xf32>
    %189 = arith.select %186, %184, %188 : vector<8x512xi1>, vector<8x512xf32>
    %cst_84 = arith.constant dense<0.000000e+00> : vector<8x128xf32>
    %190 = tpu.matmul %189, %5, %cst_84 {dimension_numbers = #tpu.dot_dimension_numbers<[1], [0], [0], [1], [0, 0, 1, 1], [], []>} : vector<8x512xf32>, vector<512x128xf32>, vector<8x128xf32> -> vector<8x128xf32>
    %191 = vector.broadcast %6 : vector<1x128xf32> to vector<8x128xf32>
    %192 = arith.addf %190, %191 : vector<8x128xf32>
    %cst_85 = arith.constant dense<0.000000e+00> : vector<128xf32>
    %193 = vector.multi_reduction <add>, %192, %cst_85 [0] : vector<8x128xf32> to vector<128xf32>
    %194 = vector.shape_cast %193 : vector<128xf32> to vector<1x128xf32>
    %cst_86 = arith.constant 8.000000e+00 : f32
    %195 = vector.broadcast %cst_86 : f32 to vector<1x128xf32>
    %196 = arith.divf %194, %195 : vector<1x128xf32>
    %197 = arith.mulf %192, %192 : vector<8x128xf32>
    %cst_87 = arith.constant dense<0.000000e+00> : vector<128xf32>
    %198 = vector.multi_reduction <add>, %197, %cst_87 [0] : vector<8x128xf32> to vector<128xf32>
    %199 = vector.shape_cast %198 : vector<128xf32> to vector<1x128xf32>
    %cst_88 = arith.constant 8.000000e+00 : f32
    %200 = vector.broadcast %cst_88 : f32 to vector<1x128xf32>
    %201 = arith.divf %199, %200 : vector<1x128xf32>
    %202 = arith.mulf %196, %196 : vector<1x128xf32>
    %203 = arith.subf %201, %202 : vector<1x128xf32>
    %cst_89 = arith.constant 0.000000e+00 : f32
    %204 = vector.broadcast %cst_89 : f32 to vector<1x128xf32>
    %205 = arith.maximumf %203, %204 : vector<1x128xf32>
    %206 = vector.broadcast %196 : vector<1x128xf32> to vector<8x128xf32>
    %207 = arith.subf %192, %206 : vector<8x128xf32>
    %cst_90 = arith.constant 9.99999974E-6 : f32
    %208 = vector.broadcast %cst_90 : f32 to vector<1x128xf32>
    %209 = arith.addf %205, %208 : vector<1x128xf32>
    %210 = math.rsqrt %209 : vector<1x128xf32>
    %211 = vector.broadcast %210 : vector<1x128xf32> to vector<8x128xf32>
    %212 = arith.mulf %207, %211 : vector<8x128xf32>
    %213 = vector.broadcast %7 : vector<1x128xf32> to vector<8x128xf32>
    %214 = arith.mulf %212, %213 : vector<8x128xf32>
    %215 = vector.broadcast %8 : vector<1x128xf32> to vector<8x128xf32>
    %216 = arith.addf %214, %215 : vector<8x128xf32>
    %cst_91 = arith.constant 0.000000e+00 : f32
    %217 = vector.broadcast %cst_91 : f32 to vector<8x128xf32>
    %218 = arith.cmpf oge, %216, %217 : vector<8x128xf32>
    %219 = vector.broadcast %1 : f32 to vector<8x128xf32>
    %220 = arith.mulf %219, %216 : vector<8x128xf32>
    %221 = arith.select %218, %216, %220 : vector<8x128xi1>, vector<8x128xf32>
    %cst_92 = arith.constant dense<0.000000e+00> : vector<8x128xf32>
    %222 = tpu.matmul %221, %9, %cst_92 {dimension_numbers = #tpu.dot_dimension_numbers<[1], [0], [0], [1], [0, 0, 1, 1], [], []>} : vector<8x128xf32>, vector<128x128xf32>, vector<8x128xf32> -> vector<8x128xf32>
    %223 = vector.broadcast %10 : vector<1x128xf32> to vector<8x128xf32>
    %224 = arith.addf %222, %223 : vector<8x128xf32>
    %cst_93 = arith.constant dense<0.000000e+00> : vector<8x128xf32>
    %225 = tpu.matmul %224, %11, %cst_93 {dimension_numbers = #tpu.dot_dimension_numbers<[1], [0], [0], [1], [0, 0, 1, 1], [], []>} : vector<8x128xf32>, vector<128x128xf32>, vector<8x128xf32> -> vector<8x128xf32>
    %226 = vector.broadcast %12 : vector<1x128xf32> to vector<8x128xf32>
    %227 = arith.addf %225, %226 : vector<8x128xf32>
    %cst_94 = arith.constant dense<0.000000e+00> : vector<128xf32>
    %228 = vector.multi_reduction <add>, %227, %cst_94 [0] : vector<8x128xf32> to vector<128xf32>
    %229 = vector.shape_cast %228 : vector<128xf32> to vector<1x128xf32>
    %cst_95 = arith.constant 8.000000e+00 : f32
    %230 = vector.broadcast %cst_95 : f32 to vector<1x128xf32>
    %231 = arith.divf %229, %230 : vector<1x128xf32>
    %232 = arith.mulf %227, %227 : vector<8x128xf32>
    %cst_96 = arith.constant dense<0.000000e+00> : vector<128xf32>
    %233 = vector.multi_reduction <add>, %232, %cst_96 [0] : vector<8x128xf32> to vector<128xf32>
    %234 = vector.shape_cast %233 : vector<128xf32> to vector<1x128xf32>
    %cst_97 = arith.constant 8.000000e+00 : f32
    %235 = vector.broadcast %cst_97 : f32 to vector<1x128xf32>
    %236 = arith.divf %234, %235 : vector<1x128xf32>
    %237 = arith.mulf %231, %231 : vector<1x128xf32>
    %238 = arith.subf %236, %237 : vector<1x128xf32>
    %cst_98 = arith.constant 0.000000e+00 : f32
    %239 = vector.broadcast %cst_98 : f32 to vector<1x128xf32>
    %240 = arith.maximumf %238, %239 : vector<1x128xf32>
    %241 = vector.broadcast %231 : vector<1x128xf32> to vector<8x128xf32>
    %242 = arith.subf %227, %241 : vector<8x128xf32>
    %cst_99 = arith.constant 9.99999974E-6 : f32
    %243 = vector.broadcast %cst_99 : f32 to vector<1x128xf32>
    %244 = arith.addf %240, %243 : vector<1x128xf32>
    %245 = math.rsqrt %244 : vector<1x128xf32>
    %246 = vector.broadcast %245 : vector<1x128xf32> to vector<8x128xf32>
    %247 = arith.mulf %242, %246 : vector<8x128xf32>
    %248 = vector.broadcast %13 : vector<1x128xf32> to vector<8x128xf32>
    %249 = arith.mulf %247, %248 : vector<8x128xf32>
    %250 = vector.broadcast %14 : vector<1x128xf32> to vector<8x128xf32>
    %251 = arith.addf %249, %250 : vector<8x128xf32>
    %cst_100 = arith.constant 0.000000e+00 : f32
    %252 = vector.broadcast %cst_100 : f32 to vector<8x128xf32>
    %253 = arith.cmpf oge, %251, %252 : vector<8x128xf32>
    %254 = vector.broadcast %2 : f32 to vector<8x128xf32>
    %255 = arith.mulf %254, %251 : vector<8x128xf32>
    %256 = arith.select %253, %251, %255 : vector<8x128xi1>, vector<8x128xf32>
    %cst_101 = arith.constant dense<0.000000e+00> : vector<8x128xf32>
    %257 = tpu.matmul %256, %15, %cst_101 {dimension_numbers = #tpu.dot_dimension_numbers<[1], [0], [0], [1], [0, 0, 1, 1], [], []>} : vector<8x128xf32>, vector<128x128xf32>, vector<8x128xf32> -> vector<8x128xf32>
    %258 = vector.broadcast %16 : vector<1x128xf32> to vector<8x128xf32>
    %259 = arith.addf %257, %258 : vector<8x128xf32>
    %cst_102 = arith.constant dense<0.000000e+00> : vector<8x8xf32>
    %260 = tpu.matmul %178, %178, %cst_102 {dimension_numbers = #tpu.dot_dimension_numbers<[1], [1], [0], [0], [0, 0, 1, 0], [], []>} : vector<8x128xf32>, vector<8x128xf32>, vector<8x8xf32> -> vector<8x8xf32>
    %cst_103 = arith.constant dense<0.000000e+00> : vector<8x8xf32>
    %261 = tpu.matmul %62, %62, %cst_103 {dimension_numbers = #tpu.dot_dimension_numbers<[1], [1], [0], [0], [0, 0, 1, 0], [], []>} : vector<8x128xf32>, vector<8x128xf32>, vector<8x8xf32> -> vector<8x8xf32>
    %262 = arith.addf %260, %261 : vector<8x8xf32>
    %cst_104 = arith.constant dense<0.000000e+00> : vector<8x8xf32>
    %263 = tpu.matmul %224, %224, %cst_104 {dimension_numbers = #tpu.dot_dimension_numbers<[1], [1], [0], [0], [0, 0, 1, 0], [], []>} : vector<8x128xf32>, vector<8x128xf32>, vector<8x8xf32> -> vector<8x8xf32>
    %264 = arith.addf %262, %263 : vector<8x8xf32>
    %265 = arith.mulf %264, %264 : vector<8x8xf32>
    %cst_105 = arith.constant dense<0.000000e+00> : vector<8xf32>
    %266 = vector.multi_reduction <add>, %265, %cst_105 [1] : vector<8x8xf32> to vector<8xf32>
    %267 = vector.shape_cast %266 : vector<8xf32> to vector<8x1xf32>
    %268 = math.sqrt %267 : vector<8x1xf32>
    %cst_106 = arith.constant 9.99999996E-13 : f32
    %269 = vector.broadcast %cst_106 : f32 to vector<8x1xf32>
    %270 = arith.maximumf %268, %269 : vector<8x1xf32>
    %271 = vector.broadcast %270 : vector<8x1xf32> to vector<8x8xf32>
    %272 = arith.divf %264, %271 : vector<8x8xf32>
    %c0_107 = arith.constant 0 : index
    %c0_108 = arith.constant 0 : index
    %273 = vector.load %arg3[%c0_107, %c0_108] : memref<8x8xf32, #tpu.memory_space<vmem>>, vector<8x8xf32>
    %274 = arith.subf %273, %272 : vector<8x8xf32>
    %275 = arith.mulf %274, %274 : vector<8x8xf32>
    %276 = vector.shape_cast %275 : vector<8x8xf32> to vector<1x8x8xf32>
    %cst_109 = arith.constant dense<0.000000e+00> : vector<1xf32>
    %277 = vector.multi_reduction <add>, %276, %cst_109 [1, 2] : vector<1x8x8xf32> to vector<1xf32>
    %278 = vector.shape_cast %277 : vector<1xf32> to vector<1x1x1xf32>
    %279 = vector.extract %278[0, 0, 0] : f32 from vector<1x1x1xf32>
    %280 = vector.broadcast %279 : f32 to vector<1x1xf32>
    %cst_110 = arith.constant 6.400000e+01 : f32
    %281 = vector.broadcast %cst_110 : f32 to vector<1x1xf32>
    %282 = arith.divf %280, %281 : vector<1x1xf32>
    %283 = arith.mulf %62, %62 : vector<8x128xf32>
    %cst_111 = arith.constant dense<0.000000e+00> : vector<8xf32>
    %284 = vector.multi_reduction <add>, %283, %cst_111 [1] : vector<8x128xf32> to vector<8xf32>
    %285 = vector.shape_cast %284 : vector<8xf32> to vector<8x1xf32>
    %286 = math.sqrt %285 : vector<8x1xf32>
    %cst_112 = arith.constant 9.99999996E-13 : f32
    %287 = vector.broadcast %cst_112 : f32 to vector<8x1xf32>
    %288 = arith.maximumf %286, %287 : vector<8x1xf32>
    %289 = vector.broadcast %288 : vector<8x1xf32> to vector<8x128xf32>
    %290 = arith.divf %62, %289 : vector<8x128xf32>
    %291 = arith.mulf %143, %143 : vector<8x128xf32>
    %cst_113 = arith.constant dense<0.000000e+00> : vector<8xf32>
    %292 = vector.multi_reduction <add>, %291, %cst_113 [1] : vector<8x128xf32> to vector<8xf32>
    %293 = vector.shape_cast %292 : vector<8xf32> to vector<8x1xf32>
    %294 = math.sqrt %293 : vector<8x1xf32>
    %cst_114 = arith.constant 9.99999996E-13 : f32
    %295 = vector.broadcast %cst_114 : f32 to vector<8x1xf32>
    %296 = arith.maximumf %294, %295 : vector<8x1xf32>
    %297 = vector.broadcast %296 : vector<8x1xf32> to vector<8x128xf32>
    %298 = arith.divf %143, %297 : vector<8x128xf32>
    %299 = arith.mulf %224, %224 : vector<8x128xf32>
    %cst_115 = arith.constant dense<0.000000e+00> : vector<8xf32>
    %300 = vector.multi_reduction <add>, %299, %cst_115 [1] : vector<8x128xf32> to vector<8xf32>
    %301 = vector.shape_cast %300 : vector<8xf32> to vector<8x1xf32>
    %302 = math.sqrt %301 : vector<8x1xf32>
    %cst_116 = arith.constant 9.99999996E-13 : f32
    %303 = vector.broadcast %cst_116 : f32 to vector<8x1xf32>
    %304 = arith.maximumf %302, %303 : vector<8x1xf32>
    %305 = vector.broadcast %304 : vector<8x1xf32> to vector<8x128xf32>
    %306 = arith.divf %224, %305 : vector<8x128xf32>
    %307 = arith.mulf %97, %97 : vector<8x128xf32>
    %cst_117 = arith.constant dense<0.000000e+00> : vector<8xf32>
    %308 = vector.multi_reduction <add>, %307, %cst_117 [1] : vector<8x128xf32> to vector<8xf32>
    %309 = vector.shape_cast %308 : vector<8xf32> to vector<8x1xf32>
    %310 = math.sqrt %309 : vector<8x1xf32>
    %cst_118 = arith.constant 9.99999996E-13 : f32
    %311 = vector.broadcast %cst_118 : f32 to vector<8x1xf32>
    %312 = arith.maximumf %310, %311 : vector<8x1xf32>
    %313 = vector.broadcast %312 : vector<8x1xf32> to vector<8x128xf32>
    %314 = arith.divf %97, %313 : vector<8x128xf32>
    %315 = arith.mulf %178, %178 : vector<8x128xf32>
    %cst_119 = arith.constant dense<0.000000e+00> : vector<8xf32>
    %316 = vector.multi_reduction <add>, %315, %cst_119 [1] : vector<8x128xf32> to vector<8xf32>
    %317 = vector.shape_cast %316 : vector<8xf32> to vector<8x1xf32>
    %318 = math.sqrt %317 : vector<8x1xf32>
    %cst_120 = arith.constant 9.99999996E-13 : f32
    %319 = vector.broadcast %cst_120 : f32 to vector<8x1xf32>
    %320 = arith.maximumf %318, %319 : vector<8x1xf32>
    %321 = vector.broadcast %320 : vector<8x1xf32> to vector<8x128xf32>
    %322 = arith.divf %178, %321 : vector<8x128xf32>
    %323 = arith.mulf %259, %259 : vector<8x128xf32>
    %cst_121 = arith.constant dense<0.000000e+00> : vector<8xf32>
    %324 = vector.multi_reduction <add>, %323, %cst_121 [1] : vector<8x128xf32> to vector<8xf32>
    %325 = vector.shape_cast %324 : vector<8xf32> to vector<8x1xf32>
    %326 = math.sqrt %325 : vector<8x1xf32>
    %cst_122 = arith.constant 9.99999996E-13 : f32
    %327 = vector.broadcast %cst_122 : f32 to vector<8x1xf32>
    %328 = arith.maximumf %326, %327 : vector<8x1xf32>
    %329 = vector.broadcast %328 : vector<8x1xf32> to vector<8x128xf32>
    %330 = arith.divf %259, %329 : vector<8x128xf32>
    %cst_123 = arith.constant dense<0.000000e+00> : vector<8x8xf32>
    %331 = tpu.matmul %322, %290, %cst_123 {dimension_numbers = #tpu.dot_dimension_numbers<[1], [1], [0], [0], [0, 0, 1, 0], [], []>} : vector<8x128xf32>, vector<8x128xf32>, vector<8x8xf32> -> vector<8x8xf32>
    %cst_124 = arith.constant 1.250000e+00 : f32
    %332 = vector.broadcast %cst_124 : f32 to vector<8x8xf32>
    %333 = arith.mulf %331, %332 : vector<8x8xf32>
    %334 = math.exp %333 : vector<8x8xf32>
    %cst_125 = arith.constant dense<0.000000e+00> : vector<8xf32>
    %335 = vector.multi_reduction <add>, %334, %cst_125 [1] : vector<8x8xf32> to vector<8xf32>
    %336 = vector.shape_cast %335 : vector<8xf32> to vector<8x1xf32>
    %337 = math.log %336 : vector<8x1xf32>
    %338 = arith.mulf %322, %290 : vector<8x128xf32>
    %cst_126 = arith.constant dense<0.000000e+00> : vector<8xf32>
    %339 = vector.multi_reduction <add>, %338, %cst_126 [1] : vector<8x128xf32> to vector<8xf32>
    %340 = vector.shape_cast %339 : vector<8xf32> to vector<8x1xf32>
    %cst_127 = arith.constant 1.250000e+00 : f32
    %341 = vector.broadcast %cst_127 : f32 to vector<8x1xf32>
    %342 = arith.mulf %340, %341 : vector<8x1xf32>
    %343 = arith.subf %337, %342 : vector<8x1xf32>
    %cst_128 = arith.constant 5.000000e-01 : f32
    %344 = vector.broadcast %cst_128 : f32 to vector<8x1xf32>
    %345 = arith.mulf %344, %343 : vector<8x1xf32>
    %cst_129 = arith.constant dense<0.000000e+00> : vector<8x8xf32>
    %346 = tpu.matmul %322, %306, %cst_129 {dimension_numbers = #tpu.dot_dimension_numbers<[1], [1], [0], [0], [0, 0, 1, 0], [], []>} : vector<8x128xf32>, vector<8x128xf32>, vector<8x8xf32> -> vector<8x8xf32>
    %cst_130 = arith.constant 1.250000e+00 : f32
    %347 = vector.broadcast %cst_130 : f32 to vector<8x8xf32>
    %348 = arith.mulf %346, %347 : vector<8x8xf32>
    %349 = math.exp %348 : vector<8x8xf32>
    %cst_131 = arith.constant dense<0.000000e+00> : vector<8xf32>
    %350 = vector.multi_reduction <add>, %349, %cst_131 [1] : vector<8x8xf32> to vector<8xf32>
    %351 = vector.shape_cast %350 : vector<8xf32> to vector<8x1xf32>
    %352 = math.log %351 : vector<8x1xf32>
    %353 = arith.mulf %322, %306 : vector<8x128xf32>
    %cst_132 = arith.constant dense<0.000000e+00> : vector<8xf32>
    %354 = vector.multi_reduction <add>, %353, %cst_132 [1] : vector<8x128xf32> to vector<8xf32>
    %355 = vector.shape_cast %354 : vector<8xf32> to vector<8x1xf32>
    %cst_133 = arith.constant 1.250000e+00 : f32
    %356 = vector.broadcast %cst_133 : f32 to vector<8x1xf32>
    %357 = arith.mulf %355, %356 : vector<8x1xf32>
    %358 = arith.subf %352, %357 : vector<8x1xf32>
    %cst_134 = arith.constant 5.000000e-01 : f32
    %359 = vector.broadcast %cst_134 : f32 to vector<8x1xf32>
    %360 = arith.mulf %359, %358 : vector<8x1xf32>
    %361 = arith.addf %345, %360 : vector<8x1xf32>
    %cst_135 = arith.constant dense<0.000000e+00> : vector<8x8xf32>
    %362 = tpu.matmul %330, %298, %cst_135 {dimension_numbers = #tpu.dot_dimension_numbers<[1], [1], [0], [0], [0, 0, 1, 0], [], []>} : vector<8x128xf32>, vector<8x128xf32>, vector<8x8xf32> -> vector<8x8xf32>
    %cst_136 = arith.constant 1.250000e+00 : f32
    %363 = vector.broadcast %cst_136 : f32 to vector<8x8xf32>
    %364 = arith.mulf %362, %363 : vector<8x8xf32>
    %365 = math.exp %364 : vector<8x8xf32>
    %cst_137 = arith.constant dense<0.000000e+00> : vector<8xf32>
    %366 = vector.multi_reduction <add>, %365, %cst_137 [1] : vector<8x8xf32> to vector<8xf32>
    %367 = vector.shape_cast %366 : vector<8xf32> to vector<8x1xf32>
    %368 = math.log %367 : vector<8x1xf32>
    %369 = arith.mulf %330, %298 : vector<8x128xf32>
    %cst_138 = arith.constant dense<0.000000e+00> : vector<8xf32>
    %370 = vector.multi_reduction <add>, %369, %cst_138 [1] : vector<8x128xf32> to vector<8xf32>
    %371 = vector.shape_cast %370 : vector<8xf32> to vector<8x1xf32>
    %cst_139 = arith.constant 1.250000e+00 : f32
    %372 = vector.broadcast %cst_139 : f32 to vector<8x1xf32>
    %373 = arith.mulf %371, %372 : vector<8x1xf32>
    %374 = arith.subf %368, %373 : vector<8x1xf32>
    %cst_140 = arith.constant 5.000000e-01 : f32
    %375 = vector.broadcast %cst_140 : f32 to vector<8x1xf32>
    %376 = arith.mulf %375, %374 : vector<8x1xf32>
    %cst_141 = arith.constant dense<0.000000e+00> : vector<8x8xf32>
    %377 = tpu.matmul %330, %290, %cst_141 {dimension_numbers = #tpu.dot_dimension_numbers<[1], [1], [0], [0], [0, 0, 1, 0], [], []>} : vector<8x128xf32>, vector<8x128xf32>, vector<8x8xf32> -> vector<8x8xf32>
    %cst_142 = arith.constant 1.250000e+00 : f32
    %378 = vector.broadcast %cst_142 : f32 to vector<8x8xf32>
    %379 = arith.mulf %377, %378 : vector<8x8xf32>
    %380 = math.exp %379 : vector<8x8xf32>
    %cst_143 = arith.constant dense<0.000000e+00> : vector<8xf32>
    %381 = vector.multi_reduction <add>, %380, %cst_143 [1] : vector<8x8xf32> to vector<8xf32>
    %382 = vector.shape_cast %381 : vector<8xf32> to vector<8x1xf32>
    %383 = math.log %382 : vector<8x1xf32>
    %384 = arith.mulf %330, %290 : vector<8x128xf32>
    %cst_144 = arith.constant dense<0.000000e+00> : vector<8xf32>
    %385 = vector.multi_reduction <add>, %384, %cst_144 [1] : vector<8x128xf32> to vector<8xf32>
    %386 = vector.shape_cast %385 : vector<8xf32> to vector<8x1xf32>
    %cst_145 = arith.constant 1.250000e+00 : f32
    %387 = vector.broadcast %cst_145 : f32 to vector<8x1xf32>
    %388 = arith.mulf %386, %387 : vector<8x1xf32>
    %389 = arith.subf %383, %388 : vector<8x1xf32>
    %cst_146 = arith.constant 5.000000e-01 : f32
    %390 = vector.broadcast %cst_146 : f32 to vector<8x1xf32>
    %391 = arith.mulf %390, %389 : vector<8x1xf32>
    %392 = arith.addf %376, %391 : vector<8x1xf32>
    %393 = arith.addf %361, %392 : vector<8x1xf32>
    %cst_147 = arith.constant 5.000000e-01 : f32
    %394 = vector.broadcast %cst_147 : f32 to vector<8x1xf32>
    %395 = arith.mulf %394, %393 : vector<8x1xf32>
    %cst_148 = arith.constant dense<0.000000e+00> : vector<8x8xf32>
    %396 = tpu.matmul %314, %314, %cst_148 {dimension_numbers = #tpu.dot_dimension_numbers<[1], [1], [0], [0], [0, 0, 1, 0], [], []>} : vector<8x128xf32>, vector<8x128xf32>, vector<8x8xf32> -> vector<8x8xf32>
    %cst_149 = arith.constant 1.250000e+00 : f32
    %397 = vector.broadcast %cst_149 : f32 to vector<8x8xf32>
    %398 = arith.mulf %396, %397 : vector<8x8xf32>
    %399 = math.exp %398 : vector<8x8xf32>
    %cst_150 = arith.constant dense<0.000000e+00> : vector<8x8xf32>
    %400 = tpu.matmul %314, %322, %cst_150 {dimension_numbers = #tpu.dot_dimension_numbers<[1], [1], [0], [0], [0, 0, 1, 0], [], []>} : vector<8x128xf32>, vector<8x128xf32>, vector<8x8xf32> -> vector<8x8xf32>
    %cst_151 = arith.constant 1.250000e+00 : f32
    %401 = vector.broadcast %cst_151 : f32 to vector<8x8xf32>
    %402 = arith.mulf %400, %401 : vector<8x8xf32>
    %403 = math.exp %402 : vector<8x8xf32>
    %cst_152 = arith.constant dense<0.000000e+00> : vector<8xf32>
    %404 = vector.multi_reduction <add>, %399, %cst_152 [1] : vector<8x8xf32> to vector<8xf32>
    %405 = vector.shape_cast %404 : vector<8xf32> to vector<8x1xf32>
    %cst_153 = arith.constant dense<0.000000e+00> : vector<8xf32>
    %406 = vector.multi_reduction <add>, %403, %cst_153 [1] : vector<8x8xf32> to vector<8xf32>
    %407 = vector.shape_cast %406 : vector<8xf32> to vector<8x1xf32>
    %408 = arith.addf %405, %407 : vector<8x1xf32>
    %cst_154 = arith.constant 3.49034286 : f32
    %409 = vector.broadcast %cst_154 : f32 to vector<8x1xf32>
    %410 = arith.subf %408, %409 : vector<8x1xf32>
    %411 = arith.mulf %314, %322 : vector<8x128xf32>
    %cst_155 = arith.constant dense<0.000000e+00> : vector<8xf32>
    %412 = vector.multi_reduction <add>, %411, %cst_155 [1] : vector<8x128xf32> to vector<8xf32>
    %413 = vector.shape_cast %412 : vector<8xf32> to vector<8x1xf32>
    %414 = math.log %410 : vector<8x1xf32>
    %cst_156 = arith.constant 1.250000e+00 : f32
    %415 = vector.broadcast %cst_156 : f32 to vector<8x1xf32>
    %416 = arith.mulf %413, %415 : vector<8x1xf32>
    %417 = arith.subf %414, %416 : vector<8x1xf32>
    %cst_157 = arith.constant dense<0.000000e+00> : vector<8x8xf32>
    %418 = tpu.matmul %322, %322, %cst_157 {dimension_numbers = #tpu.dot_dimension_numbers<[1], [1], [0], [0], [0, 0, 1, 0], [], []>} : vector<8x128xf32>, vector<8x128xf32>, vector<8x8xf32> -> vector<8x8xf32>
    %cst_158 = arith.constant 1.250000e+00 : f32
    %419 = vector.broadcast %cst_158 : f32 to vector<8x8xf32>
    %420 = arith.mulf %418, %419 : vector<8x8xf32>
    %421 = math.exp %420 : vector<8x8xf32>
    %cst_159 = arith.constant dense<0.000000e+00> : vector<8x8xf32>
    %422 = tpu.matmul %322, %330, %cst_159 {dimension_numbers = #tpu.dot_dimension_numbers<[1], [1], [0], [0], [0, 0, 1, 0], [], []>} : vector<8x128xf32>, vector<8x128xf32>, vector<8x8xf32> -> vector<8x8xf32>
    %cst_160 = arith.constant 1.250000e+00 : f32
    %423 = vector.broadcast %cst_160 : f32 to vector<8x8xf32>
    %424 = arith.mulf %422, %423 : vector<8x8xf32>
    %425 = math.exp %424 : vector<8x8xf32>
    %cst_161 = arith.constant dense<0.000000e+00> : vector<8xf32>
    %426 = vector.multi_reduction <add>, %421, %cst_161 [1] : vector<8x8xf32> to vector<8xf32>
    %427 = vector.shape_cast %426 : vector<8xf32> to vector<8x1xf32>
    %cst_162 = arith.constant dense<0.000000e+00> : vector<8xf32>
    %428 = vector.multi_reduction <add>, %425, %cst_162 [1] : vector<8x8xf32> to vector<8xf32>
    %429 = vector.shape_cast %428 : vector<8xf32> to vector<8x1xf32>
    %430 = arith.addf %427, %429 : vector<8x1xf32>
    %cst_163 = arith.constant 3.49034286 : f32
    %431 = vector.broadcast %cst_163 : f32 to vector<8x1xf32>
    %432 = arith.subf %430, %431 : vector<8x1xf32>
    %433 = arith.mulf %322, %330 : vector<8x128xf32>
    %cst_164 = arith.constant dense<0.000000e+00> : vector<8xf32>
    %434 = vector.multi_reduction <add>, %433, %cst_164 [1] : vector<8x128xf32> to vector<8xf32>
    %435 = vector.shape_cast %434 : vector<8xf32> to vector<8x1xf32>
    %436 = math.log %432 : vector<8x1xf32>
    %cst_165 = arith.constant 1.250000e+00 : f32
    %437 = vector.broadcast %cst_165 : f32 to vector<8x1xf32>
    %438 = arith.mulf %435, %437 : vector<8x1xf32>
    %439 = arith.subf %436, %438 : vector<8x1xf32>
    %440 = arith.addf %417, %439 : vector<8x1xf32>
    %cst_166 = arith.constant dense<0.000000e+00> : vector<8x8xf32>
    %441 = tpu.matmul %330, %330, %cst_166 {dimension_numbers = #tpu.dot_dimension_numbers<[1], [1], [0], [0], [0, 0, 1, 0], [], []>} : vector<8x128xf32>, vector<8x128xf32>, vector<8x8xf32> -> vector<8x8xf32>
    %cst_167 = arith.constant 1.250000e+00 : f32
    %442 = vector.broadcast %cst_167 : f32 to vector<8x8xf32>
    %443 = arith.mulf %441, %442 : vector<8x8xf32>
    %444 = math.exp %443 : vector<8x8xf32>
    %cst_168 = arith.constant dense<0.000000e+00> : vector<8x8xf32>
    %445 = tpu.matmul %330, %314, %cst_168 {dimension_numbers = #tpu.dot_dimension_numbers<[1], [1], [0], [0], [0, 0, 1, 0], [], []>} : vector<8x128xf32>, vector<8x128xf32>, vector<8x8xf32> -> vector<8x8xf32>
    %cst_169 = arith.constant 1.250000e+00 : f32
    %446 = vector.broadcast %cst_169 : f32 to vector<8x8xf32>
    %447 = arith.mulf %445, %446 : vector<8x8xf32>
    %448 = math.exp %447 : vector<8x8xf32>
    %cst_170 = arith.constant dense<0.000000e+00> : vector<8xf32>
    %449 = vector.multi_reduction <add>, %444, %cst_170 [1] : vector<8x8xf32> to vector<8xf32>
    %450 = vector.shape_cast %449 : vector<8xf32> to vector<8x1xf32>
    %cst_171 = arith.constant dense<0.000000e+00> : vector<8xf32>
    %451 = vector.multi_reduction <add>, %448, %cst_171 [1] : vector<8x8xf32> to vector<8xf32>
    %452 = vector.shape_cast %451 : vector<8xf32> to vector<8x1xf32>
    %453 = arith.addf %450, %452 : vector<8x1xf32>
    %cst_172 = arith.constant 3.49034286 : f32
    %454 = vector.broadcast %cst_172 : f32 to vector<8x1xf32>
    %455 = arith.subf %453, %454 : vector<8x1xf32>
    %456 = arith.mulf %330, %314 : vector<8x128xf32>
    %cst_173 = arith.constant dense<0.000000e+00> : vector<8xf32>
    %457 = vector.multi_reduction <add>, %456, %cst_173 [1] : vector<8x128xf32> to vector<8xf32>
    %458 = vector.shape_cast %457 : vector<8xf32> to vector<8x1xf32>
    %459 = math.log %455 : vector<8x1xf32>
    %cst_174 = arith.constant 1.250000e+00 : f32
    %460 = vector.broadcast %cst_174 : f32 to vector<8x1xf32>
    %461 = arith.mulf %458, %460 : vector<8x1xf32>
    %462 = arith.subf %459, %461 : vector<8x1xf32>
    %463 = arith.addf %440, %462 : vector<8x1xf32>
    %cst_175 = arith.constant 3.000000e+00 : f32
    %464 = vector.broadcast %cst_175 : f32 to vector<8x1xf32>
    %465 = arith.divf %463, %464 : vector<8x1xf32>
    %cst_176 = arith.constant 6.000000e-01 : f32
    %466 = vector.broadcast %cst_176 : f32 to vector<8x1xf32>
    %467 = arith.mulf %465, %466 : vector<8x1xf32>
    %cst_177 = arith.constant 4.000000e-01 : f32
    %468 = vector.broadcast %cst_177 : f32 to vector<8x1xf32>
    %469 = arith.mulf %395, %468 : vector<8x1xf32>
    %470 = arith.addf %467, %469 : vector<8x1xf32>
    %471 = vector.shape_cast %470 : vector<8x1xf32> to vector<1x8x1xf32>
    %cst_178 = arith.constant dense<0.000000e+00> : vector<1xf32>
    %472 = vector.multi_reduction <add>, %471, %cst_178 [1, 2] : vector<1x8x1xf32> to vector<1xf32>
    %473 = vector.shape_cast %472 : vector<1xf32> to vector<1x1x1xf32>
    %474 = vector.extract %473[0, 0, 0] : f32 from vector<1x1x1xf32>
    %475 = vector.broadcast %474 : f32 to vector<1x1xf32>
    %cst_179 = arith.constant 8.000000e+00 : f32
    %476 = vector.broadcast %cst_179 : f32 to vector<1x1xf32>
    %477 = arith.divf %475, %476 : vector<1x1xf32>
    %478 = arith.addf %477, %282 : vector<1x1xf32>
    %c0_180 = arith.constant 0 : index
    %c0_181 = arith.constant 0 : index
    %479 = vector.load %arg21[%c0_180, %c0_181] : memref<1x1xf32, #tpu.memory_space<vmem>>, vector<1x1xf32>
    tpu.vector_store %arg21[%c0_180, %c0_181], %478 {strides = array<i32>} : memref<1x1xf32, #tpu.memory_space<vmem>>, vector<1x1xf32>,
    return
  }
}

</mosaic_0001>

<bundles_post_ra>
// kernel: tpu_custom_call.1
= control target key start
LH: loop header
LB: loop body
LE: loop exit
PB: predicated region body
PF: predicated region fallthrough
CT: control target
= control target key end

     0   :  { %s6591_s0 = inlined_call_operand.hbm [shape: f32[8,32], index: 0, kind: input, shape index: {}]   ;;  %s6592_s1 = inlined_call_operand.hbm [shape: f32[8,32], index: 1, kind: input, shape index: {}]   ;;  %s6593_s2 = inlined_call_operand.hbm [shape: f32[8,32], index: 2, kind: input, shape index: {}]   ;;  %s6594_s3 = inlined_call_operand.hbm [shape: f32[8,8], index: 3, kind: input, shape index: {}]   ;;  %s6595_s4 = inlined_call_operand.hbm [shape: f32[8,8], index: 4, kind: input, shape index: {}]   ;;  %s6596_s5 = inlined_call_operand.hbm [shape: f32[8,8], index: 5, kind: input, shape index: {}]   ;;  %s6597_s6 = inlined_call_operand.hbm [shape: f32[32,512], index: 6, kind: input, shape index: {}]   ;;  %s6598_s7 = inlined_call_operand.hbm [shape: f32[1,512], index: 7, kind: input, shape index: {}]   ;;  %s6599_s8 = inlined_call_operand.hbm [shape: f32[512,128], index: 8, kind: input, shape index: {}]   ;;  %s6600_s9 = inlined_call_operand.hbm [shape: f32[1,128], index: 9, kind: input, shape index: {}]   ;;  %s6601_s10 = inlined_call_operand.hbm [shape: f32[1,128], index: 10, kind: input, shape index: {}]   ;;  %s6602_s11 = inlined_call_operand.hbm [shape: f32[1,128], index: 11, kind: input, shape index: {}]   ;;  %s6603_s12 = inlined_call_operand.hbm [shape: f32[128,128], index: 12, kind: input, shape index: {}]   ;;  %s6604_s13 = inlined_call_operand.hbm [shape: f32[1,128], index: 13, kind: input, shape index: {}]   ;;  %s6605_s14 = inlined_call_operand.hbm [shape: f32[128,128], index: 14, kind: input, shape index: {}]   ;;  %s6606_s15 = inlined_call_operand.hbm [shape: f32[1,128], index: 15, kind: input, shape index: {}]   ;;  %s6607_s16 = inlined_call_operand.hbm [shape: f32[1,128], index: 16, kind: input, shape index: {}]   ;;  %s6608_s17 = inlined_call_operand.hbm [shape: f32[1,128], index: 17, kind: input, shape index: {}]   ;;  %s6609_s18 = inlined_call_operand.hbm [shape: f32[128,128], index: 18, kind: input, shape index: {}]   ;;  %s6610_s19 = inlined_call_operand.hbm [shape: f32[1,128], index: 19, kind: input, shape index: {}]   ;;  %s6611_s20 = inlined_call_operand.hbm [shape: f32[3], index: 20, kind: input, shape index: {}]   ;;  %s6612_s21 = inlined_call_operand.hbm [shape: f32[1,1], index: 21, kind: output, shape index: {}]  }
   0x1   :  { %6689 = sst [smem:[#allocation91_spill]] %s6591_s0 }
   0x2   :  { %6690 = sst [smem:[#allocation92_spill]] %s6592_s1 }
   0x3   :  { %6691 = sst [smem:[#allocation93_spill]] %s6593_s2 }
   0x4   :  { %6692 = sst [smem:[#allocation94_spill]] %s6594_s3 }
   0x5   :  { %6693 = sst [smem:[#allocation95_spill]] %s6595_s4 }
   0x6   :  { %6694 = sst [smem:[#allocation96_spill]] %s6596_s5 }
   0x7   :  { %6695 = sst [smem:[#allocation97_spill]] %s6612_s21 }
   0x8   :  { %26 = vsyncpa [#allocation3], 0 }
   0x9   :  { %27 = vsyncpa [#allocation7], 0 }
   0xa   :  { %28 = vsyncpa [#allocation10], 0 }
   0xb   :  { %29 = vsyncpa [#allocation13], 0 }
   0xc   :  { %30 = vsyncpa [#allocation16], 0 }
   0xd   :  { %31 = vsyncpa [#allocation19], 0 }
   0xe   :  { %32 = vsyncpa [#allocation22], 0 }
   0xf   :  { %33 = vsyncpa [#allocation25], 0 }
  0x10   :  { %34 = vsyncpa [#allocation28], 0 }
  0x11   :  { %35 = vsyncpa [#allocation31], 0 }
  0x12   :  { %36 = vsyncpa [#allocation34], 0 }
  0x13   :  { %37 = vsyncpa [#allocation5], 0 }
  0x14   :  { %38 = vsyncpa [#allocation4], 0  ;;  %s5512_s2 = smov [#allocation6]   ;;  %s5513_s26 = smov [#allocation9]  }
  0x15   :  { %s55_s25 = sshll.u32 %s5512_s2, 4  ;;  %s75_s27 = sshll.u32 %s5513_s26, 4  ;;  %s56_s25 = int_to_ptr.vmem [resolvable:$true] %s55_s25  ;;  %s76_s27 = int_to_ptr.vmem [resolvable:$true] %s75_s27 }
  0x16   :  { %s6696_s29 = sld [smem:[#allocation92_spill]] }
  0x1c   :  { %s5014_s0 = scalar_lea.hbm %s6696_s29, 128 }
  0x1d   :  { %p5015_p0 = scmp.ne.s32.totalorder %s6696_s29, %s5014_s0  ;;  %p5018_p1 = scmp.lt.u32.totalorder %s5014_s0, %s6696_s29 }
  0x1f   :  { %p5020_p2 = pnand %p5018_p1, %p5015_p0 }
  0x21   :  { %5023 = shalt.err (!%p5020_p2)
}
  0x22   :  { %s5024_s23 = scalar_lea.vmem %s56_s25, 128  ;;  %p5029_p4 = scmp.lt.s32.totalorder %s56_s25, %s56_s25 }
  0x23   :  { %p5025_p3 = scmp.ne.s32.totalorder %s56_s25, %s5024_s23  ;;  %p5030_p5 = scmp.lt.s32.totalorder %s5024_s23, %s5024_s23 }
  0x25   :  { %p5031_p6 = por %p5030_p5, %p5029_p4 }
  0x27   :  { %p5032_p7 = pnand %p5031_p6, %p5025_p3 }
  0x29   :  { %5035 = shalt.err (!%p5032_p7)
}
  0x2a   :  { %58 = dma.hbm_to_vmem [thread:$0]  %s6696_s29, 128, %s56_s25, [#allocation7]  }
  0x2b   :  { %s6697_s3 = sld [smem:[#allocation94_spill]] }
  0x31   :  { %s5036_s28 = scalar_lea.hbm %s6697_s3, 128 }
  0x32   :  { %p5037_p8 = scmp.ne.s32.totalorder %s6697_s3, %s5036_s28  ;;  %p5040_p9 = scmp.lt.u32.totalorder %s5036_s28, %s6697_s3 }
  0x34   :  { %p5042_p10 = pnand %p5040_p9, %p5037_p8 }
  0x36   :  { %5045 = shalt.err (!%p5042_p10)
}
  0x37   :  { %s5046_s22 = scalar_lea.vmem %s76_s27, 128  ;;  %p5051_p12 = scmp.lt.s32.totalorder %s76_s27, %s76_s27 }
  0x38   :  { %p5047_p11 = scmp.ne.s32.totalorder %s76_s27, %s5046_s22  ;;  %p5052_p13 = scmp.lt.s32.totalorder %s5046_s22, %s5046_s22 }
  0x3a   :  { %p5053_p0 = por %p5052_p13, %p5051_p12 }
  0x3c   :  { %p5054_p1 = pnand %p5053_p0, %p5047_p11 }
  0x3e   :  { %5057 = shalt.err (!%p5054_p1)
}
  0x3f   :  { %78 = dma.hbm_to_vmem [thread:$0]  %s6697_s3, 128, %s76_s27, [#allocation10]  }
  0x40   :  { %s5514_s23 = smov [#allocation12]   ;;  %s5515_s24 = smov [#allocation15]  }
  0x41   :  { %s95_s1 = sshll.u32 %s5514_s23, 4  ;;  %s117_s2 = sshll.u32 %s5515_s24, 4  ;;  %s96_s1 = int_to_ptr.vmem [resolvable:$true] %s95_s1  ;;  %s118_s2 = int_to_ptr.vmem [resolvable:$true] %s117_s2 }
  0x42   :  { %s6698_s4 = sld [smem:[#allocation96_spill]] }
  0x48   :  { %s5058_s30 = scalar_lea.hbm %s6698_s4, 128 }
  0x49   :  { %p5059_p2 = scmp.ne.s32.totalorder %s6698_s4, %s5058_s30  ;;  %p5062_p3 = scmp.lt.u32.totalorder %s5058_s30, %s6698_s4 }
  0x4b   :  { %p5064_p4 = pnand %p5062_p3, %p5059_p2 }
  0x4d   :  { %5067 = shalt.err (!%p5064_p4)
}
  0x4e   :  { %s5068_s27 = scalar_lea.vmem %s96_s1, 128  ;;  %p5073_p6 = scmp.lt.s32.totalorder %s96_s1, %s96_s1 }
  0x4f   :  { %p5069_p5 = scmp.ne.s32.totalorder %s96_s1, %s5068_s27  ;;  %p5074_p7 = scmp.lt.s32.totalorder %s5068_s27, %s5068_s27 }
  0x51   :  { %p5075_p8 = por %p5074_p7, %p5073_p6 }
  0x53   :  { %p5076_p9 = pnand %p5075_p8, %p5069_p5 }
  0x55   :  { %5079 = shalt.err (!%p5076_p9)
}
  0x56   :  { %98 = dma.hbm_to_vmem [thread:$0]  %s6698_s4, 128, %s96_s1, [#allocation13]  }
  0x57   :  { %s5080_s24 = scalar_lea.hbm %s6598_s7, 64 }
  0x58   :  { %p5081_p10 = scmp.ne.s32.totalorder %s6598_s7, %s5080_s24  ;;  %p5084_p11 = scmp.lt.u32.totalorder %s5080_s24, %s6598_s7 }
  0x5a   :  { %p5086_p12 = pnand %p5084_p11, %p5081_p10 }
  0x5c   :  { %5089 = shalt.err (!%p5086_p12)
}
  0x5d   :  { %s5090_s0 = scalar_lea.vmem %s118_s2, 64  ;;  %p5095_p0 = scmp.lt.s32.totalorder %s118_s2, %s118_s2 }
  0x5e   :  { %p5091_p13 = scmp.ne.s32.totalorder %s118_s2, %s5090_s0  ;;  %p5096_p1 = scmp.lt.s32.totalorder %s5090_s0, %s5090_s0 }
  0x60   :  { %p5097_p2 = por %p5096_p1, %p5095_p0 }
  0x62   :  { %p5098_p3 = pnand %p5097_p2, %p5091_p13 }
  0x64   :  { %5101 = shalt.err (!%p5098_p3)
}
  0x65   :  { %120 = dma.hbm_to_vmem [thread:$0]  %s6598_s7, 64, %s118_s2, [#allocation16]  }
  0x66   :  { %s5516_s5 = smov [#allocation18]   ;;  %s5517_s27 = smov [#allocation21]  }
  0x67   :  { %s139_s22 = sshll.u32 %s5516_s5, 4  ;;  %s159_s3 = sshll.u32 %s5517_s27, 4  ;;  %s140_s22 = int_to_ptr.vmem [resolvable:$true] %s139_s22  ;;  %s160_s3 = int_to_ptr.vmem [resolvable:$true] %s159_s3 }
  0x68   :  { %s5102_s23 = scalar_lea.hbm %s6600_s9, 16 }
  0x69   :  { %p5103_p4 = scmp.ne.s32.totalorder %s6600_s9, %s5102_s23  ;;  %p5106_p5 = scmp.lt.u32.totalorder %s5102_s23, %s6600_s9 }
  0x6b   :  { %p5108_p6 = pnand %p5106_p5, %p5103_p4 }
  0x6d   :  { %5111 = shalt.err (!%p5108_p6)
}
  0x6e   :  { %s5112_s7 = scalar_lea.vmem %s140_s22, 16  ;;  %s5116_s2 = scalar_lea.vmem %s140_s22, 32 }
  0x6f   :  { %p5113_p7 = scmp.ne.s32.totalorder %s140_s22, %s5112_s7  ;;  %p5117_p8 = scmp.lt.s32.totalorder %s140_s22, %s140_s22 }
  0x70   :  { %p5118_p9 = scmp.lt.s32.totalorder %s5116_s2, %s5112_s7 }
  0x72   :  { %p5119_p10 = por %p5118_p9, %p5117_p8 }
  0x74   :  { %p5120_p11 = pnand %p5119_p10, %p5113_p7 }
  0x76   :  { %5123 = shalt.err (!%p5120_p11)
}
  0x77   :  { %142 = dma.hbm_to_vmem [thread:$0]  %s6600_s9, 16, %s140_s22, [#allocation19]  }
  0x78   :  { %s5124_s5 = scalar_lea.hbm %s6602_s11, 16 }
  0x79   :  { %p5125_p12 = scmp.ne.s32.totalorder %s6602_s11, %s5124_s5  ;;  %p5128_p13 = scmp.lt.u32.totalorder %s5124_s5, %s6602_s11 }
  0x7b   :  { %p5130_p0 = pnand %p5128_p13, %p5125_p12 }
  0x7d   :  { %5133 = shalt.err (!%p5130_p0)
}
  0x7e   :  { %s5134_s24 = scalar_lea.vmem %s160_s3, 16  ;;  %s5138_s26 = scalar_lea.vmem %s160_s3, 32 }
  0x7f   :  { %p5135_p1 = scmp.ne.s32.totalorder %s160_s3, %s5134_s24  ;;  %p5139_p2 = scmp.lt.s32.totalorder %s160_s3, %s160_s3 }
  0x80   :  { %p5140_p3 = scmp.lt.s32.totalorder %s5138_s26, %s5134_s24 }
  0x82   :  { %p5141_p4 = por %p5140_p3, %p5139_p2 }
  0x84   :  { %p5142_p5 = pnand %p5141_p4, %p5135_p1 }
  0x86   :  { %5145 = shalt.err (!%p5142_p5)
}
  0x87   :  { %162 = dma.hbm_to_vmem [thread:$0]  %s6602_s11, 16, %s160_s3, [#allocation22]  }
  0x88   :  { %s5518_s21 = smov [#allocation24]   ;;  %s5519_s7 = smov [#allocation27]  }
  0x89   :  { %s181_s28 = sshll.u32 %s5518_s21, 4  ;;  %s203_s2 = sshll.u32 %s5519_s7, 4  ;;  %s182_s28 = int_to_ptr.vmem [resolvable:$true] %s181_s28  ;;  %s204_s2 = int_to_ptr.vmem [resolvable:$true] %s203_s2 }
  0x8a   :  { %s5146_s1 = scalar_lea.hbm %s6604_s13, 16 }
  0x8b   :  { %p5147_p6 = scmp.ne.s32.totalorder %s6604_s13, %s5146_s1  ;;  %p5150_p7 = scmp.lt.u32.totalorder %s5146_s1, %s6604_s13 }
  0x8d   :  { %p5152_p8 = pnand %p5150_p7, %p5147_p6 }
  0x8f   :  { %5155 = shalt.err (!%p5152_p8)
}
  0x90   :  { %s5156_s11 = scalar_lea.vmem %s182_s28, 16  ;;  %s5160_s3 = scalar_lea.vmem %s182_s28, 32 }
  0x91   :  { %p5157_p9 = scmp.ne.s32.totalorder %s182_s28, %s5156_s11  ;;  %p5161_p10 = scmp.lt.s32.totalorder %s182_s28, %s182_s28 }
  0x92   :  { %p5162_p11 = scmp.lt.s32.totalorder %s5160_s3, %s5156_s11 }
  0x94   :  { %p5163_p12 = por %p5162_p11, %p5161_p10 }
  0x96   :  { %p5164_p13 = pnand %p5163_p12, %p5157_p9 }
  0x98   :  { %5167 = shalt.err (!%p5164_p13)
}
  0x99   :  { %184 = dma.hbm_to_vmem [thread:$0]  %s6604_s13, 16, %s182_s28, [#allocation25]  }
  0x9a   :  { %s5168_s9 = scalar_lea.hbm %s6606_s15, 16 }
  0x9b   :  { %p5169_p0 = scmp.ne.s32.totalorder %s6606_s15, %s5168_s9  ;;  %p5172_p1 = scmp.lt.u32.totalorder %s5168_s9, %s6606_s15 }
  0x9d   :  { %p5174_p2 = pnand %p5172_p1, %p5169_p0 }
  0x9f   :  { %5177 = shalt.err (!%p5174_p2)
}
  0xa0   :  { %s5178_s0 = scalar_lea.vmem %s204_s2, 16  ;;  %s5182_s1 = scalar_lea.vmem %s204_s2, 32 }
  0xa1   :  { %p5179_p3 = scmp.ne.s32.totalorder %s204_s2, %s5178_s0  ;;  %p5183_p4 = scmp.lt.s32.totalorder %s204_s2, %s204_s2 }
  0xa2   :  { %p5184_p5 = scmp.lt.s32.totalorder %s5182_s1, %s5178_s0 }
  0xa4   :  { %p5185_p6 = por %p5184_p5, %p5183_p4 }
  0xa6   :  { %p5186_p7 = pnand %p5185_p6, %p5179_p3 }
  0xa8   :  { %5189 = shalt.err (!%p5186_p7)
}
  0xa9   :  { %206 = dma.hbm_to_vmem [thread:$0]  %s6606_s15, 16, %s204_s2, [#allocation28]  }
  0xaa   :  { %s5520_s4 = smov [#allocation30]   ;;  %s5521_s27 = smov [#allocation2]  }
  0xab   :  { %s223_s5 = sshll.u32 %s5520_s4, 4  ;;  %s45_s25 = sshll.u32 %s5521_s27, 4  ;;  %s224_s5 = int_to_ptr.vmem [resolvable:$true] %s223_s5  ;;  %s46_s25 = int_to_ptr.vmem [resolvable:$true] %s45_s25 }
  0xac   :  { %s5190_s29 = scalar_lea.hbm %s6608_s17, 16 }
  0xad   :  { %p5191_p8 = scmp.ne.s32.totalorder %s6608_s17, %s5190_s29  ;;  %p5194_p9 = scmp.lt.u32.totalorder %s5190_s29, %s6608_s17 }
  0xaf   :  { %p5196_p10 = pnand %p5194_p9, %p5191_p8 }
  0xb1   :  { %5199 = shalt.err (!%p5196_p10)
}
  0xb2   :  { %s5200_s15 = scalar_lea.vmem %s224_s5, 16  ;;  %s5204_s2 = scalar_lea.vmem %s224_s5, 32 }
  0xb3   :  { %p5201_p11 = scmp.ne.s32.totalorder %s224_s5, %s5200_s15  ;;  %p5205_p12 = scmp.lt.s32.totalorder %s224_s5, %s224_s5 }
  0xb4   :  { %p5206_p13 = scmp.lt.s32.totalorder %s5204_s2, %s5200_s15 }
  0xb6   :  { %p5207_p0 = por %p5206_p13, %p5205_p12 }
  0xb8   :  { %p5208_p1 = pnand %p5207_p0, %p5201_p11 }
  0xba   :  { %5211 = shalt.err (!%p5208_p1)
}
  0xbb   :  { %226 = dma.hbm_to_vmem [thread:$0]  %s6608_s17, 16, %s224_s5, [#allocation31]  }
  0xbc   :  { %s6699_s0 = sld [smem:[#allocation91_spill]] }
  0xc2   :  { %s5212_s1 = scalar_lea.hbm %s6699_s0, 128 }
  0xc3   :  { %p5213_p2 = scmp.ne.s32.totalorder %s6699_s0, %s5212_s1  ;;  %p5216_p3 = scmp.lt.u32.totalorder %s5212_s1, %s6699_s0 }
  0xc5   :  { %p5218_p4 = pnand %p5216_p3, %p5213_p2 }
  0xc7   :  { %5221 = shalt.err (!%p5218_p4)
}
  0xc8   :  { %s5222_s11 = scalar_lea.vmem %s46_s25, 128  ;;  %p5227_p6 = scmp.lt.s32.totalorder %s46_s25, %s46_s25 }
  0xc9   :  { %p5223_p5 = scmp.ne.s32.totalorder %s46_s25, %s5222_s11  ;;  %p5228_p7 = scmp.lt.s32.totalorder %s5222_s11, %s5222_s11 }
  0xcb   :  { %p5229_p8 = por %p5228_p7, %p5227_p6 }
  0xcd   :  { %p5230_p9 = pnand %p5229_p8, %p5223_p5 }
  0xcf   :  { %5233 = shalt.err (!%p5230_p9)
}
  0xd0   :  { %48 = dma.hbm_to_vmem [thread:$0]  %s6699_s0, 128, %s46_s25, [#allocation3]  }
  0xd1   :  { %s5522_s3 = smov [#allocation8]   ;;  %s5523_s23 = smov [#allocation11]  }
  0xd2   :  { %s65_s29 = sshll.u32 %s5522_s3, 4  ;;  %s85_s24 = sshll.u32 %s5523_s23, 4  ;;  %s66_s29 = int_to_ptr.vmem [resolvable:$true] %s65_s29  ;;  %s86_s24 = int_to_ptr.vmem [resolvable:$true] %s85_s24 }
  0xd3   :  { %s6700_s15 = sld [smem:[#allocation93_spill]] }
  0xd9   :  { %s5234_s2 = scalar_lea.hbm %s6700_s15, 128 }
  0xda   :  { %p5235_p10 = scmp.ne.s32.totalorder %s6700_s15, %s5234_s2  ;;  %p5238_p11 = scmp.lt.u32.totalorder %s5234_s2, %s6700_s15 }
  0xdc   :  { %p5240_p12 = pnand %p5238_p11, %p5235_p10 }
  0xde   :  { %5243 = shalt.err (!%p5240_p12)
}
  0xdf   :  { %s5244_s25 = scalar_lea.vmem %s66_s29, 128  ;;  %p5249_p0 = scmp.lt.s32.totalorder %s66_s29, %s66_s29 }
  0xe0   :  { %p5245_p13 = scmp.ne.s32.totalorder %s66_s29, %s5244_s25  ;;  %p5250_p1 = scmp.lt.s32.totalorder %s5244_s25, %s5244_s25 }
  0xe2   :  { %p5251_p2 = por %p5250_p1, %p5249_p0 }
  0xe4   :  { %p5252_p3 = pnand %p5251_p2, %p5245_p13 }
  0xe6   :  { %5255 = shalt.err (!%p5252_p3)
}
  0xe7   :  { %68 = dma.hbm_to_vmem [thread:$0]  %s6700_s15, 128, %s66_s29, [#allocation7]  }
  0xe8   :  { %s6701_s4 = sld [smem:[#allocation95_spill]] }
  0xee   :  { %s5256_s27 = scalar_lea.hbm %s6701_s4, 128 }
  0xef   :  { %p5257_p4 = scmp.ne.s32.totalorder %s6701_s4, %s5256_s27  ;;  %p5260_p5 = scmp.lt.u32.totalorder %s5256_s27, %s6701_s4 }
  0xf1   :  { %p5262_p6 = pnand %p5260_p5, %p5257_p4 }
  0xf3   :  { %5265 = shalt.err (!%p5262_p6)
}
  0xf4   :  { %s5266_s23 = scalar_lea.vmem %s86_s24, 128  ;;  %p5271_p8 = scmp.lt.s32.totalorder %s86_s24, %s86_s24 }
  0xf5   :  { %p5267_p7 = scmp.ne.s32.totalorder %s86_s24, %s5266_s23  ;;  %p5272_p9 = scmp.lt.s32.totalorder %s5266_s23, %s5266_s23 }
  0xf7   :  { %p5273_p10 = por %p5272_p9, %p5271_p8 }
  0xf9   :  { %p5274_p11 = pnand %p5273_p10, %p5267_p7 }
  0xfb   :  { %5277 = shalt.err (!%p5274_p11)
}
  0xfc   :  { %88 = dma.hbm_to_vmem [thread:$0]  %s6701_s4, 128, %s86_s24, [#allocation10]  }
  0xfd   :  { %s5524_s9 = smov [#allocation14]   ;;  %s5278_s21 = scalar_lea.hbm %s6597_s6, 2048 }
  0xfe   :  { %s104_s15 = sshll.u32 %s5524_s9, 4  ;;  %p5279_p12 = scmp.ne.s32.totalorder %s6597_s6, %s5278_s21  ;;  %s105_s15 = int_to_ptr.vmem [resolvable:$true] %s104_s15 }
  0xff   :  { %p5282_p13 = scmp.lt.u32.totalorder %s5278_s21, %s6597_s6 }
 0x101   :  { %p5284_p0 = pnand %p5282_p13, %p5279_p12 }
 0x103   :  { %5287 = shalt.err (!%p5284_p0)
}
 0x104   :  { %s5288_s1 = scalar_lea.vmem %s105_s15, 2048  ;;  %p5293_p2 = scmp.lt.s32.totalorder %s105_s15, %s105_s15 }
 0x105   :  { %p5289_p1 = scmp.ne.s32.totalorder %s105_s15, %s5288_s1  ;;  %p5294_p3 = scmp.lt.s32.totalorder %s5288_s1, %s5288_s1 }
 0x107   :  { %p5295_p4 = por %p5294_p3, %p5293_p2 }
 0x109   :  { %p5296_p5 = pnand %p5295_p4, %p5289_p1 }
 0x10b   :  { %5299 = shalt.err (!%p5296_p5)
}
 0x10c   :  { %s5525_s24 = smov 512   ;;  %s5526_s13 = smov 32  }
 0x10d   :  { %110 = dma.hbm_to_vmem [thread:$0]  %s6597_s6, 2048, %s105_s15, [#allocation13], %s5525_s24, %s5525_s24, %s5526_s13  }
 0x10e   :  { %s5527_s27 = smov [#allocation17]   ;;  %s5300_s3 = scalar_lea.hbm %s6599_s8, 8192 }
 0x10f   :  { %s126_s11 = sshll.u32 %s5527_s27, 4  ;;  %p5301_p6 = scmp.ne.s32.totalorder %s6599_s8, %s5300_s3  ;;  %s127_s11 = int_to_ptr.vmem [resolvable:$true] %s126_s11 }
 0x110   :  { %p5304_p7 = scmp.lt.u32.totalorder %s5300_s3, %s6599_s8 }
 0x112   :  { %p5306_p8 = pnand %p5304_p7, %p5301_p6 }
 0x114   :  { %5309 = shalt.err (!%p5306_p8)
}
 0x115   :  { %s5310_s2 = scalar_lea.vmem %s127_s11, 8192  ;;  %p5315_p10 = scmp.lt.s32.totalorder %s127_s11, %s127_s11 }
 0x116   :  { %p5311_p9 = scmp.ne.s32.totalorder %s127_s11, %s5310_s2  ;;  %p5316_p11 = scmp.lt.s32.totalorder %s5310_s2, %s5310_s2 }
 0x118   :  { %p5317_p12 = por %p5316_p11, %p5315_p10 }
 0x11a   :  { %p5318_p13 = pnand %p5317_p12, %p5311_p9 }
 0x11c   :  { %5321 = shalt.err (!%p5318_p13)
}
 0x11d   :  { %s5528_s6 = smov 128   ;;  %s5529_s15 = smov 8  }
 0x11e   :  { %132 = dma.hbm_to_vmem [thread:$0]  %s6599_s8, 8192, %s127_s11, [#allocation16], %s5528_s6, %s5528_s6, %s5529_s15  }
 0x11f   :  { %s5530_s7 = smov [#allocation20]   ;;  %s5531_s25 = smov [#allocation23]  }
 0x120   :  { %s149_s30 = sshll.u32 %s5530_s7, 4  ;;  %s168_s0 = sshll.u32 %s5531_s25, 4  ;;  %s150_s30 = int_to_ptr.vmem [resolvable:$true] %s149_s30  ;;  %s5822_s0 = int_to_ptr.vmem [resolvable:$true] %s168_s0 }
 0x121   :  { %s5322_s13 = scalar_lea.hbm %s6601_s10, 16 }
 0x122   :  { %p5323_p0 = scmp.ne.s32.totalorder %s6601_s10, %s5322_s13  ;;  %p5326_p1 = scmp.lt.u32.totalorder %s5322_s13, %s6601_s10 }
 0x124   :  { %p5328_p2 = pnand %p5326_p1, %p5323_p0 }
 0x126   :  { %5331 = shalt.err (!%p5328_p2)
}
 0x127   :  { %s5332_s8 = scalar_lea.vmem %s150_s30, 16  ;;  %s5336_s11 = scalar_lea.vmem %s150_s30, 32 }
 0x128   :  { %p5333_p3 = scmp.ne.s32.totalorder %s150_s30, %s5332_s8  ;;  %p5337_p4 = scmp.lt.s32.totalorder %s150_s30, %s150_s30 }
 0x129   :  { %p5338_p5 = scmp.lt.s32.totalorder %s5336_s11, %s5332_s8 }
 0x12b   :  { %p5339_p6 = por %p5338_p5, %p5337_p4 }
 0x12d   :  { %p5340_p7 = pnand %p5339_p6, %p5333_p3 }
 0x12f   :  { %5343 = shalt.err (!%p5340_p7)
}
 0x130   :  { %152 = dma.hbm_to_vmem [thread:$0]  %s6601_s10, 16, %s150_s30, [#allocation19]  }
 0x131   :  { %s5344_s26 = scalar_lea.hbm %s6603_s12, 2048 }
 0x132   :  { %p5345_p8 = scmp.ne.s32.totalorder %s6603_s12, %s5344_s26  ;;  %p5348_p9 = scmp.lt.u32.totalorder %s5344_s26, %s6603_s12 }
 0x134   :  { %p5350_p10 = pnand %p5348_p9, %p5345_p8 }
 0x136   :  { %5353 = shalt.err (!%p5350_p10)
}
 0x137   :  { %s5354_s7 = scalar_lea.vmem %s5822_s0, 2048  ;;  %p5359_p12 = scmp.lt.s32.totalorder %s5822_s0, %s5822_s0 }
 0x138   :  { %p5355_p11 = scmp.ne.s32.totalorder %s5822_s0, %s5354_s7  ;;  %p5360_p13 = scmp.lt.s32.totalorder %s5354_s7, %s5354_s7 }
 0x13a   :  { %p5361_p0 = por %p5360_p13, %p5359_p12 }
 0x13c   :  { %p5362_p1 = pnand %p5361_p0, %p5355_p11 }
 0x13e   :  { %5365 = shalt.err (!%p5362_p1)
}
 0x13f   :  { %174 = dma.hbm_to_vmem [thread:$0]  %s6603_s12, 2048, %s5822_s0, [#allocation22], %s5528_s6, %s5528_s6, %s5529_s15  }
 0x140   :  { %s5532_s25 = smov [#allocation26]   ;;  %s5533_s24 = smov [#allocation29]  }
 0x141   :  { %s190_s1 = sshll.u32 %s5532_s25, 4  ;;  %s213_s13 = sshll.u32 %s5533_s24, 4  ;;  %s191_s1 = int_to_ptr.vmem [resolvable:$true] %s190_s1  ;;  %s214_s13 = int_to_ptr.vmem [resolvable:$true] %s213_s13 }
 0x142   :  { %s5366_s27 = scalar_lea.hbm %s6605_s14, 2048 }
 0x143   :  { %p5367_p2 = scmp.ne.s32.totalorder %s6605_s14, %s5366_s27  ;;  %p5370_p3 = scmp.lt.u32.totalorder %s5366_s27, %s6605_s14 }
 0x145   :  { %p5372_p4 = pnand %p5370_p3, %p5367_p2 }
 0x147   :  { %5375 = shalt.err (!%p5372_p4)
}
 0x148   :  { %s5376_s12 = scalar_lea.vmem %s191_s1, 2048  ;;  %p5381_p6 = scmp.lt.s32.totalorder %s191_s1, %s191_s1 }
 0x149   :  { %p5377_p5 = scmp.ne.s32.totalorder %s191_s1, %s5376_s12  ;;  %p5382_p7 = scmp.lt.s32.totalorder %s5376_s12, %s5376_s12 }
 0x14b   :  { %p5383_p8 = por %p5382_p7, %p5381_p6 }
 0x14d   :  { %p5384_p9 = pnand %p5383_p8, %p5377_p5 }
 0x14f   :  { %5387 = shalt.err (!%p5384_p9)
}
 0x150   :  { %196 = dma.hbm_to_vmem [thread:$0]  %s6605_s14, 2048, %s191_s1, [#allocation25], %s5528_s6, %s5528_s6, %s5529_s15  }
 0x151   :  { %s5388_s26 = scalar_lea.hbm %s6607_s16, 16 }
 0x152   :  { %p5389_p10 = scmp.ne.s32.totalorder %s6607_s16, %s5388_s26  ;;  %p5392_p11 = scmp.lt.u32.totalorder %s5388_s26, %s6607_s16 }
 0x154   :  { %p5394_p12 = pnand %p5392_p11, %p5389_p10 }
 0x156   :  { %5397 = shalt.err (!%p5394_p12)
}
 0x157   :  { %s5398_s7 = scalar_lea.vmem %s214_s13, 16  ;;  %s5402_s10 = scalar_lea.vmem %s214_s13, 32 }
 0x158   :  { %p5399_p13 = scmp.ne.s32.totalorder %s214_s13, %s5398_s7  ;;  %p5403_p0 = scmp.lt.s32.totalorder %s214_s13, %s214_s13 }
 0x159   :  { %p5404_p1 = scmp.lt.s32.totalorder %s5402_s10, %s5398_s7 }
 0x15b   :  { %p5405_p2 = por %p5404_p1, %p5403_p0 }
 0x15d   :  { %p5406_p3 = pnand %p5405_p2, %p5399_p13 }
 0x15f   :  { %5409 = shalt.err (!%p5406_p3)
}
 0x160   :  { %216 = dma.hbm_to_vmem [thread:$0]  %s6607_s16, 16, %s214_s13, [#allocation28]  }
 0x161   :  { %s5534_s25 = smov [#allocation32]   ;;  %s5535_s24 = smov [#allocation33]  }
 0x162   :  { %s232_s1 = sshll.u32 %s5534_s25, 4  ;;  %s245_s28 = sshll.u32 %s5535_s24, 4  ;;  %s233_s1 = int_to_ptr.vmem [resolvable:$true] %s232_s1  ;;  %s246_s28 = int_to_ptr.vmem [resolvable:$true] %s245_s28 }
 0x163   :  { %s5410_s17 = scalar_lea.hbm %s6609_s18, 2048 }
 0x164   :  { %p5411_p4 = scmp.ne.s32.totalorder %s6609_s18, %s5410_s17  ;;  %p5414_p5 = scmp.lt.u32.totalorder %s5410_s17, %s6609_s18 }
 0x166   :  { %p5416_p6 = pnand %p5414_p5, %p5411_p4 }
 0x168   :  { %5419 = shalt.err (!%p5416_p6)
}
 0x169   :  { %s5420_s16 = scalar_lea.vmem %s233_s1, 2048  ;;  %p5425_p8 = scmp.lt.s32.totalorder %s233_s1, %s233_s1 }
 0x16a   :  { %p5421_p7 = scmp.ne.s32.totalorder %s233_s1, %s5420_s16  ;;  %p5426_p9 = scmp.lt.s32.totalorder %s5420_s16, %s5420_s16 }
 0x16c   :  { %p5427_p10 = por %p5426_p9, %p5425_p8 }
 0x16e   :  { %p5428_p11 = pnand %p5427_p10, %p5421_p7 }
 0x170   :  { %5431 = shalt.err (!%p5428_p11)
}
 0x171   :  { %238 = dma.hbm_to_vmem [thread:$0]  %s6609_s18, 2048, %s233_s1, [#allocation31], %s5528_s6, %s5528_s6, %s5529_s15  }
 0x172   :  { %s5432_s29 = scalar_lea.hbm %s6610_s19, 16 }
 0x173   :  { %p5433_p12 = scmp.ne.s32.totalorder %s6610_s19, %s5432_s29  ;;  %p5436_p13 = scmp.lt.u32.totalorder %s5432_s29, %s6610_s19 }
 0x175   :  { %p5438_p0 = pnand %p5436_p13, %p5433_p12 }
 0x177   :  { %5441 = shalt.err (!%p5438_p0)
}
 0x178   :  { %s5442_s21 = scalar_lea.vmem %s246_s28, 16  ;;  %s5446_s7 = scalar_lea.vmem %s246_s28, 32 }
 0x179   :  { %p5443_p1 = scmp.ne.s32.totalorder %s246_s28, %s5442_s21  ;;  %p5447_p2 = scmp.lt.s32.totalorder %s246_s28, %s246_s28 }
 0x17a   :  { %p5448_p3 = scmp.lt.s32.totalorder %s5446_s7, %s5442_s21 }
 0x17c   :  { %p5449_p4 = por %p5448_p3, %p5447_p2 }
 0x17e   :  { %p5450_p5 = pnand %p5449_p4, %p5443_p1 }
 0x180   :  { %5453 = shalt.err (!%p5450_p5)
}
 0x181   :  { %248 = dma.hbm_to_vmem [thread:$0]  %s6610_s19, 16, %s246_s28, [#allocation34]  }
 0x182   :  { %s5454_s14 = scalar_lea.hbm %s6611_s20, 16 }
 0x183   :  { %p5455_p6 = scmp.ne.s32.totalorder %s6611_s20, %s5454_s14  ;;  %p5458_p7 = scmp.lt.u32.totalorder %s5454_s14, %s6611_s20 }
 0x185   :  { %p5460_p8 = pnand %p5458_p7, %p5455_p6 }
 0x187   :  { %5463 = shalt.err (!%p5460_p8)
}
 0x188   :  { %s5536_s4 = smov [#allocation35]  }
 0x189   :  { %256 = dma.hbm_to_smem %s6611_s20, 16, %s5536_s4, [#allocation5]  }
 0x18a   :  { %5486 = dma.done.wait [#allocation3], 128  }
 0x18b   :  { %5487 = vsyncadd [#allocation3], 4294967168 }
 0x18c   :  { %5488 = dma.done.wait [#allocation7], 256  }
 0x18d   :  { %5489 = vsyncadd [#allocation7], 4294967040 }
 0x18e   :  { %5490 = dma.done.wait [#allocation10], 256  }
 0x18f   :  { %5491 = vsyncadd [#allocation10], 4294967040 }
 0x190   :  { %5492 = dma.done.wait [#allocation13], 2176  }
 0x191   :  { %5493 = vsyncadd [#allocation13], 4294965120 }
 0x192   :  { %5494 = dma.done.wait [#allocation16], 8256  }
 0x193   :  { %5495 = vsyncadd [#allocation16], 4294959040 }
 0x194   :  { %5496 = dma.done.wait [#allocation19], 32  }
 0x195   :  { %5497 = vsyncadd [#allocation19], 4294967264 }
 0x196   :  { %5498 = dma.done.wait [#allocation22], 2064  }
 0x197   :  { %5499 = vsyncadd [#allocation22], 4294965232 }
 0x198   :  { %5500 = dma.done.wait [#allocation25], 2064  }
 0x199   :  { %5501 = vsyncadd [#allocation25], 4294965232 }
 0x19a   :  { %5502 = dma.done.wait [#allocation28], 32  }
 0x19b   :  { %5503 = vsyncadd [#allocation28], 4294967264 }
 0x19c   :  { %5504 = dma.done.wait [#allocation31], 2064  }
 0x19d   :  { %5505 = vsyncadd [#allocation31], 4294965232 }
 0x19e   :  { %5506 = dma.done.wait [#allocation34], 16  }
 0x19f   :  { %5507 = vsyncadd [#allocation34], 4294967280 }
 0x1a0   :  { %5508 = dma.done.wait [#allocation5], 16  }
 0x1a1   :  { %5509 = vsyncadd [#allocation5], 4294967280 }
 0x1a2   :  { %320 = sfence }
 0x1a3   :  { %v462_v0 = vld [vmem:[#allocation2] sm:$0xff]  ;;  %v461_v1 = vld [vmem:[#allocation9] sm:$0xff]  ;;  %vm463_vm0 = vcmask 64512   ;;  %v6620_v3 = vmov 0.0   ;;  %vm5538_vm1 = vmmov 0   ;;  %v327_v5 = vld [vmem:[#allocation14 + $0x18] sm:$0xff] }
 0x1a4   :  { %v325_v2 = vld [vmem:[#allocation14 + $0x8] sm:$0xff]  ;;  %4051 = vmatprep.subr.mxu0 %v6620_v3  ;;  %4053 = vmatprep.mubr.msk.f32.mxu0 %vm5538_vm1, %v6620_v3  ;;  %v331_v6 = vld [vmem:[#allocation14 + $0x38] sm:$0xff]  ;;  %v324_v9 = vld [vmem:[#allocation14] sm:$0xff]  ;;  %vm558_vm2 = vcmask 261120   ;;  %s321_s19 = sld [smem:[#allocation35]]  ;;  %s3634_s20 = sld [smem:[#allocation35 + $0x1]] }
 0x1a5   :  { %v329_v4 = vld [vmem:[#allocation14 + $0x28] sm:$0xff]  ;;  %4052 = vmatpush3.msra.mxu0 %v462_v0  ;;  %v5927_v8 = vpack.c.bf16 %v331_v6, %v327_v5  ;;  %v328_v10 = vld [vmem:[#allocation14 + $0x20] sm:$0xff]  ;;  %v326_v11 = vld [vmem:[#allocation14 + $0x10] sm:$0xff]  ;;  %626 = vmatprep.mubr.f32.mxu1 %v6620_v3  ;;  %s3635_s28 = sld [smem:[#allocation35 + $0x2]]  ;;  %s5540_s5 = smov [#allocation36]  }
 0x1a6   :  { %v5925_v7 = vpack.c.bf16 %v329_v4, %v325_v2  ;;  %4054 = vmatmul.mubr.msk.f32.vlgmr.msra.gmra.mrb[0].mxu0 %vm463_vm0, %v461_v1  ;;  %v5931_v12 = vpack.c.bf16 %v328_v10, %v324_v9  ;;  %v330_v13 = vld [vmem:[#allocation14 + $0x30] sm:$0xff]  ;;  %v333_v14 = vld [vmem:[#allocation14 + $0x48] sm:$0xff]  ;;  %v335_v18 = vld [vmem:[#allocation14 + $0x58] sm:$0xff]  ;;  %s3614_s12 = sshll.u32 %s5540_s5, 4  ;;  %s3615_s12 = int_to_ptr.vmem [resolvable:$true] %s3614_s12 }
 0x1a7   :  { %6702 = vst [vmem:[#allocation50_spill] sm:$0xff] %v5927_v8  ;;  %v337_v15 = vld [vmem:[#allocation14 + $0x68] sm:$0xff]  ;;  %4455 = vmatprep.subr.bf16.mxu0 %v5927_v8  ;;  %v5935_v16 = vpack.c.bf16 %v330_v13, %v326_v11  ;;  %v339_v19 = vld [vmem:[#allocation14 + $0x78] sm:$0xff]  ;;  %v332_v20 = vld [vmem:[#allocation14 + $0x40] sm:$0xff]  ;;  %697 = vmatprep.mubr.f32.mxu0 %v6620_v3  ;;  %s5464_s16 = scalar_lea.vmem %s3615_s12, 16  ;;  %s5468_s13 = scalar_lea.vmem %s3615_s12, 32 }
 0x1a8   :  { %6703 = vst [vmem:[#allocation51_spill] sm:$0xff] %v5931_v12  ;;  %4447 = vmatprep.subr.bf16.mxu1 %v5925_v7  ;;  %v5937_v17 = vpack.c.bf16 %v337_v15, %v333_v14  ;;  %v5940_v21 = vpack.c.bf16 %v339_v19, %v335_v18  ;;  %v336_v22 = vld [vmem:[#allocation14 + $0x60] sm:$0xff]  ;;  %v334_v23 = vld [vmem:[#allocation14 + $0x50] sm:$0xff]  ;;  %p5465_p9 = scmp.ne.s32.totalorder %s3615_s12, %s5464_s16  ;;  %p5469_p10 = scmp.lt.s32.totalorder %s3615_s12, %s3615_s12 }
 0x1a9   :  { %6704 = vst [vmem:[#allocation52_spill] sm:$0xff] %v5935_v16  ;;  %4449 = vmatpush1.bf16.msra.mxu1 %v5931_v12  ;;  %v338_v24 = vld [vmem:[#allocation14 + $0x70] sm:$0xff]  ;;  %4457 = vmatpush1.bf16.msra.mxu0 %v5935_v16  ;;  %v5945_v25 = vpack.c.bf16 %v336_v22, %v332_v20  ;;  %v357_v27 = vld [vmem:[#allocation17 + $0x80] sm:$0xff]  ;;  %v360_v38 = vld [vmem:[#allocation17 + $0x98] sm:$0xff]  ;;  %p5470_p11 = scmp.lt.s32.totalorder %s5468_s13, %s5464_s16 }
 0x1aa   :  { %6705 = vst [vmem:[#allocation53_spill] sm:$0xff] %v5937_v17  ;;  %4451 = vmatprep.subr.bf16.mxu1 %v5937_v17  ;;  %v5947_v26 = vpack.c.bf16 %v338_v24, %v334_v23  ;;  %4459 = vmatprep.subr.bf16.mxu0 %v5940_v21  ;;  %v358_v28 = vld [vmem:[#allocation17 + $0x88] sm:$0xff]  ;;  %v389_v29 = vld [vmem:[#allocation17 + $0x180] sm:$0xff]  ;;  %v359_v37 = vld [vmem:[#allocation17 + $0x90] sm:$0xff] }
 0x1ab   :  { %6706 = vst [vmem:[#allocation54_spill] sm:$0xff] %v5945_v25  ;;  %v5952_v30 = vpack.c.bf16 %v358_v28, %v357_v27  ;;  %v390_v31 = vld [vmem:[#allocation17 + $0x188] sm:$0xff]  ;;  %v341_v33 = vld [vmem:[#allocation17] sm:$0xff]  ;;  %v391_v39 = vld [vmem:[#allocation17 + $0x190] sm:$0xff]  ;;  %v5962_v45 = vpack.c.bf16 %v360_v38, %v359_v37  ;;  %p5471_p12 = por %p5470_p11, %p5469_p10 }
 0x1ac   :  { %v5954_v32 = vpack.c.bf16 %v390_v31, %v389_v29  ;;  %v342_v34 = vld [vmem:[#allocation17 + $0x8] sm:$0xff]  ;;  %v373_v35 = vld [vmem:[#allocation17 + $0x100] sm:$0xff]  ;;  %v392_v40 = vld [vmem:[#allocation17 + $0x198] sm:$0xff] }
 0x1ad   :  { %4453 = vmatpush1.bf16.msra.mxu1 %v5945_v25  ;;  %4461 = vmatpush1.bf16.msra.mxu0 %v5947_v26  ;;  %v374_v36 = vld [vmem:[#allocation17 + $0x108] sm:$0xff]  ;;  %v5958_v41 = vpack.c.bf16 %v342_v34, %v341_v33  ;;  %v343_v43 = vld [vmem:[#allocation17 + $0x10] sm:$0xff]  ;;  %v344_v44 = vld [vmem:[#allocation17 + $0x18] sm:$0xff]  ;;  %v5964_v46 = vpack.c.bf16 %v392_v40, %v391_v39  ;;  %p5472_p13 = pnand %p5471_p12, %p5465_p9 }
 0x1ae   :  { %4463 = vmatprep.subr.bf16.mxu1 %v5952_v30  ;;  %4495 = vmatprep.subr.bf16.mxu0 %v5954_v32  ;;  %v5960_v42 = vpack.c.bf16 %v374_v36, %v373_v35  ;;  %v375_v47 = vld [vmem:[#allocation17 + $0x110] sm:$0xff]  ;;  %v376_v48 = vld [vmem:[#allocation17 + $0x118] sm:$0xff]  ;;  %v361_v49 = vld [vmem:[#allocation17 + $0xa0] sm:$0xff]  ;;  %v5970_v55 = vpack.c.bf16 %v344_v44, %v343_v43 }
 0x1af   :  { %v362_v51 = vld [vmem:[#allocation17 + $0xa8] sm:$0xff]  ;;  %v393_v52 = vld [vmem:[#allocation17 + $0x1a0] sm:$0xff]  ;;  %v5972_v56 = vpack.c.bf16 %v376_v48, %v375_v47  ;;  %v363_v63 = vld [vmem:[#allocation17 + $0xb0] sm:$0xff] }
 0x1b0   :  { %v394_v53 = vld [vmem:[#allocation17 + $0x1a8] sm:$0xff]  ;;  %v345_v57 = vld [vmem:[#allocation17 + $0x20] sm:$0xff]  ;;  %v5976_v59 = vpack.c.bf16 %v362_v51, %v361_v49  ;;  %v364_v0 = vld [vmem:[#allocation17 + $0xb8] sm:$0xff] }
 0x1b1   :  { %v346_v58 = vld [vmem:[#allocation17 + $0x28] sm:$0xff]  ;;  %v5978_v60 = vpack.c.bf16 %v394_v53, %v393_v52  ;;  %v377_v61 = vld [vmem:[#allocation17 + $0x120] sm:$0xff]  ;;  %v395_v1 = vld [vmem:[#allocation17 + $0x1b0] sm:$0xff]  ;;  %v5988_v10 = vpack.c.bf16 %v364_v0, %v363_v63 }
 0x1b2   :  { %v378_v62 = vld [vmem:[#allocation17 + $0x128] sm:$0xff]  ;;  %v396_v2 = vld [vmem:[#allocation17 + $0x1b8] sm:$0xff]  ;;  %v5982_v4 = vpack.c.bf16 %v346_v58, %v345_v57  ;;  %v347_v6 = vld [vmem:[#allocation17 + $0x30] sm:$0xff] }
 0x1b3   :  { %6707 = vst [vmem:[#allocation55_spill] sm:$0xff] %v5978_v60  ;;  %v5984_v5 = vpack.c.bf16 %v378_v62, %v377_v61  ;;  %v348_v9 = vld [vmem:[#allocation17 + $0x38] sm:$0xff]  ;;  %v5990_v11 = vpack.c.bf16 %v396_v2, %v395_v1  ;;  %v379_v13 = vld [vmem:[#allocation17 + $0x130] sm:$0xff]  ;;  %v365_v15 = vld [vmem:[#allocation17 + $0xc0] sm:$0xff] }
 0x1b4   :  { %v380_v14 = vld [vmem:[#allocation17 + $0x138] sm:$0xff]  ;;  %v366_v18 = vld [vmem:[#allocation17 + $0xc8] sm:$0xff]  ;;  %v397_v19 = vld [vmem:[#allocation17 + $0x1c0] sm:$0xff]  ;;  %v5994_v22 = vpack.c.bf16 %v348_v9, %v347_v6 }
 0x1b5   :  { %6708 = vst [vmem:[#allocation56_spill] sm:$0xff] %v5984_v5  ;;  %6709 = vst [vmem:[#allocation57_spill] sm:$0xff] %v5990_v11  ;;  %v398_v20 = vld [vmem:[#allocation17 + $0x1c8] sm:$0xff]  ;;  %v5996_v23 = vpack.c.bf16 %v380_v14, %v379_v13  ;;  %v349_v24 = vld [vmem:[#allocation17 + $0x40] sm:$0xff]  ;;  %v6000_v28 = vpack.c.bf16 %v366_v18, %v365_v15 }
 0x1b6   :  { %v350_v27 = vld [vmem:[#allocation17 + $0x48] sm:$0xff]  ;;  %v6002_v29 = vpack.c.bf16 %v398_v20, %v397_v19  ;;  %v381_v31 = vld [vmem:[#allocation17 + $0x140] sm:$0xff]  ;;  %v367_v34 = vld [vmem:[#allocation17 + $0xd0] sm:$0xff] }
 0x1b7   :  { %6710 = vst [vmem:[#allocation58_spill] sm:$0xff] %v5996_v23  ;;  %v382_v33 = vld [vmem:[#allocation17 + $0x148] sm:$0xff]  ;;  %v368_v35 = vld [vmem:[#allocation17 + $0xd8] sm:$0xff]  ;;  %v399_v36 = vld [vmem:[#allocation17 + $0x1d0] sm:$0xff]  ;;  %v6006_v38 = vpack.c.bf16 %v350_v27, %v349_v24 }
 0x1b8   :  { %6711 = vst [vmem:[#allocation59_spill] sm:$0xff] %v6002_v29  ;;  %v400_v37 = vld [vmem:[#allocation17 + $0x1d8] sm:$0xff]  ;;  %v6008_v39 = vpack.c.bf16 %v382_v33, %v381_v31  ;;  %v351_v40 = vld [vmem:[#allocation17 + $0x50] sm:$0xff]  ;;  %v6012_v43 = vpack.c.bf16 %v368_v35, %v367_v34  ;;  %v369_v52 = vld [vmem:[#allocation17 + $0xe0] sm:$0xff]  ;;  %v538_v35 = vlaneseq }
 0x1b9   :  { %v6014_v44 = vpack.c.bf16 %v400_v37, %v399_v36  ;;  %v352_v47 = vld [vmem:[#allocation17 + $0x58] sm:$0xff]  ;;  %v383_v48 = vld [vmem:[#allocation17 + $0x150] sm:$0xff]  ;;  %v370_v53 = vld [vmem:[#allocation17 + $0xe8] sm:$0xff] }
 0x1ba   :  { %6712 = vst [vmem:[#allocation60_spill] sm:$0xff] %v6008_v39  ;;  %v384_v49 = vld [vmem:[#allocation17 + $0x158] sm:$0xff]  ;;  %v6026_v57 = vpack.c.bf16 %v370_v53, %v369_v52  ;;  %v402_v58 = vld [vmem:[#allocation17 + $0x1e8] sm:$0xff]  ;;  %v353_v61 = vld [vmem:[#allocation17 + $0x60] sm:$0xff]  ;;  %v539_v36 = vshrl.u32 %v538_v35, 7 }
 0x1bb   :  { %6713 = vst [vmem:[#allocation61_spill] sm:$0xff] %v6014_v44  ;;  %v6020_v51 = vpack.c.bf16 %v384_v49, %v383_v48  ;;  %v354_v62 = vld [vmem:[#allocation17 + $0x68] sm:$0xff]  ;;  %v385_v1 = vld [vmem:[#allocation17 + $0x160] sm:$0xff]  ;;  %v371_v9 = vld [vmem:[#allocation17 + $0xf0] sm:$0xff] }
 0x1bc   :  { %v6030_v0 = vpack.c.bf16 %v354_v62, %v353_v61  ;;  %v386_v2 = vld [vmem:[#allocation17 + $0x168] sm:$0xff]  ;;  %v372_v13 = vld [vmem:[#allocation17 + $0xf8] sm:$0xff]  ;;  %v403_v14 = vld [vmem:[#allocation17 + $0x1f0] sm:$0xff]  ;;  %v540_v37 = vsub.s32 0, %v539_v36  ;;  %v544_v48 = vsub.s32 1, %v539_v36  ;;  %v552_v49 = vsub.s32 3, %v539_v36 }
 0x1bd   :  { %6714 = vst [vmem:[#allocation62_spill] sm:$0xff] %v6020_v51  ;;  %v6033_v6 = vpack.c.bf16 %v386_v2, %v385_v1  ;;  %v6038_v15 = vpack.c.bf16 %v372_v13, %v371_v9  ;;  %v404_v18 = vld [vmem:[#allocation17 + $0x1f8] sm:$0xff]  ;;  %v355_v19 = vld [vmem:[#allocation17 + $0x70] sm:$0xff]  ;;  %v6058_v62 = vstv %s321_s19 }
 0x1be   :  { %v356_v20 = vld [vmem:[#allocation17 + $0x78] sm:$0xff]  ;;  %v6040_v24 = vpack.c.bf16 %v404_v18, %v403_v14  ;;  %v387_v31 = vld [vmem:[#allocation17 + $0x170] sm:$0xff]  ;;  %6723 = vst [vmem:[#allocation71_spill] sm:$0xff] %v6058_v62 }
 0x1bf   :  { %6716 = vst [vmem:[#allocation64_spill] sm:$0xff] %v6033_v6  ;;  %v6042_v27 = vpack.c.bf16 %v356_v20, %v355_v19  ;;  %v388_v33 = vld [vmem:[#allocation17 + $0x178] sm:$0xff] }
 0x1c0   :  { %6717 = vst [vmem:[#allocation65_spill] sm:$0xff] %v6040_v24  ;;  %v6045_v34 = vpack.c.bf16 %v388_v33, %v387_v31 }
 0x1c2   :  { %6718 = vst [vmem:[#allocation66_spill] sm:$0xff] %v6045_v34 }
 0x279   :  { %v533_v50 = vpop.f32.mrb[0].mxu0 }
 0x27a   :  { %v4055_v54 = vpop.f32.mrb[1].mxu0  ;;  %3637 = vmatmul.mubr.msk.f32.vlgmr.msra.gmra.mrb[0].mxu1 %vm558_vm2, %v533_v50  ;;  %3638 = vmatmul.mubr.msk.f32.vlgmr.msra.gmra.mrb[2].mxu0 %vm558_vm2, %v533_v50  ;;  %v6018_v50 = vpack.c.bf16 %v352_v47, %v351_v40  ;;  %v548_v40 = vsub.s32 2, %v539_v36  ;;  %v340_v47 = vld [vmem:[#allocation15] sm:$0xf] }
 0x27b   :  { %4465 = vmatpush3.bf16.msra.mxu1 %v5958_v41  ;;  %4497 = vmatpush3.bf16.msra.mxu0 %v5960_v42  ;;  %v401_v54 = vld [vmem:[#allocation17 + $0x1e0] sm:$0xff]  ;;  %v6050_v52 = vrot.slane %v340_v47, %v540_v37 }
 0x27c   :  { %4467 = vmatprep.subr.bf16.mxu1 %v5962_v45  ;;  %4499 = vmatprep.subr.bf16.mxu0 %v5964_v46  ;;  %v6028_v63 = vpack.c.bf16 %v402_v58, %v401_v54  ;;  %v6052_v53 = vrot.slane %v340_v47, %v548_v40  ;;  %v6054_v54 = vrot.slane %v340_v47, %v544_v48  ;;  %v408_v48 = vld [vmem:[#allocation23] sm:$0xff] }
 0x27d   :  { %6719 = vst [vmem:[#allocation67_spill] sm:$0xff] %v6050_v52  ;;  %v6056_v58 = vrot.slane %v340_v47, %v552_v49  ;;  %v409_v49 = vld [vmem:[#allocation23 + $0x8] sm:$0xff] }
 0x27e   :  { %6715 = vst [vmem:[#allocation63_spill] sm:$0xff] %v6028_v63  ;;  %6720 = vst [vmem:[#allocation68_spill] sm:$0xff] %v6052_v53 }
 0x27f   :  { %4469 = vmatpush3.bf16.msra.mxu1 %v5970_v55  ;;  %4501 = vmatpush3.bf16.msra.mxu0 %v5972_v56  ;;  %6721 = vst [vmem:[#allocation69_spill] sm:$0xff] %v6054_v54  ;;  %6722 = vst [vmem:[#allocation70_spill] sm:$0xff] %v6056_v58 }
 0x280   :  { %4471 = vmatprep.subr.bf16.mxu1 %v5976_v59  ;;  %4503 = vmatprep.subr.bf16.mxu0 %v5978_v60 }
 0x283   :  { %4473 = vmatpush3.bf16.msra.mxu1 %v5982_v4  ;;  %4505 = vmatpush3.bf16.msra.mxu0 %v5984_v5 }
 0x284   :  { %4475 = vmatprep.subr.bf16.mxu1 %v5988_v10  ;;  %4507 = vmatprep.subr.bf16.mxu0 %v5990_v11 }
 0x287   :  { %4477 = vmatpush3.bf16.msra.mxu1 %v5994_v22  ;;  %4509 = vmatpush3.bf16.msra.mxu0 %v5996_v23 }
 0x288   :  { %4479 = vmatprep.subr.bf16.mxu1 %v6000_v28  ;;  %4511 = vmatprep.subr.bf16.mxu0 %v6002_v29 }
 0x28b   :  { %4481 = vmatpush3.bf16.msra.mxu1 %v6006_v38  ;;  %4513 = vmatpush3.bf16.msra.mxu0 %v6008_v39 }
 0x28c   :  { %4483 = vmatprep.subr.bf16.mxu1 %v6012_v43  ;;  %4515 = vmatprep.subr.bf16.mxu0 %v6014_v44 }
 0x28f   :  { %4485 = vmatpush3.bf16.msra.mxu1 %v6018_v50  ;;  %4517 = vmatpush3.bf16.msra.mxu0 %v6020_v51 }
 0x290   :  { %4487 = vmatprep.subr.bf16.mxu1 %v6026_v57  ;;  %4519 = vmatprep.subr.bf16.mxu0 %v6028_v63 }
 0x293   :  { %4489 = vmatpush3.bf16.msra.mxu1 %v6030_v0  ;;  %4521 = vmatpush3.bf16.msra.mxu0 %v6033_v6 }
 0x294   :  { %4491 = vmatprep.subr.bf16.mxu1 %v6038_v15  ;;  %4523 = vmatprep.subr.bf16.mxu0 %v6040_v24 }
 0x297   :  { %4493 = vmatpush3.bf16.msra.mxu1 %v6042_v27  ;;  %4525 = vmatpush3.bf16.msra.mxu0 %v6045_v34 }
 0x34d   :  { %v628_v61 = vpop.f32.mrb[0].mxu1  ;;  %v699_v1 = vpop.f32.mrb[2].mxu0 }
 0x34e   :  { %v629_v2 = vadd.f32 %v628_v61, %v6050_v52  ;;  %v700_v9 = vadd.f32 %v699_v1, %v6052_v53  ;;  %v630_v13 = vpop.f32.mrb[1].mxu1  ;;  %v701_v14 = vpop.f32.mrb[3].mxu0  ;;  %v6072_v61 = vpack.c.bf16 %v409_v49, %v408_v48  ;;  %v6646_v1 = vmov 0.0|0.0   ;;  %v420_v49 = vld [vmem:[#allocation23 + $0x60] sm:$0xff] }
 0x34f   :  { %v631_v18 = vadd.f32 %v630_v13, %v6054_v54  ;;  %v702_v19 = vadd.f32 %v701_v14, %v6056_v58  ;;  %4526 = vmatprep.subr.bf16.mxu1 %v6646_v1  ;;  %4550 = vmatprep.subr.bf16.mxu0 %v6646_v1  ;;  %v412_v14 = vld [vmem:[#allocation23 + $0x20] sm:$0xff] }
 0x350   :  { %vm704_vm3 = vcmp.ge.f32.partialorder %v629_v2, 0.0  ;;  %v709_v20 = vmul.f32 %v6058_v62, %v629_v2  ;;  %vm706_vm4 = vcmp.ge.f32.partialorder %v700_v9, 0.0  ;;  %v711_v31 = vmul.f32 %v6058_v62, %v700_v9  ;;  %6724 = vst [vmem:[#allocation72_spill] sm:$0xff] %v6072_v61 }
 0x351   :  { %v710_v33 = vmul.f32 %v6058_v62, %v631_v18  ;;  %v712_v35 = vmul.f32 %v6058_v62, %v702_v19  ;;  %vm705_vm5 = vcmp.ge.f32.partialorder %v631_v18, 0.0  ;;  %vm707_vm6 = vcmp.ge.f32.partialorder %v702_v19, 0.0 }
 0x352   :  { %v713_v40 = vsel %vm704_vm3, %v629_v2, %v709_v20  ;;  %v715_v47 = vsel %vm706_vm4, %v700_v9, %v711_v31  ;;  %v410_v2 = vld [vmem:[#allocation23 + $0x10] sm:$0xff]  ;;  %v411_v9 = vld [vmem:[#allocation23 + $0x18] sm:$0xff] }
 0x353   :  { %v714_v36 = vsel %vm705_vm5, %v631_v18, %v710_v33  ;;  %v716_v37 = vsel %vm707_vm6, %v702_v19, %v712_v35  ;;  %v6078_v13 = vpack.c.bf16 %v411_v9, %v410_v2  ;;  %v413_v18 = vld [vmem:[#allocation23 + $0x28] sm:$0xff]  ;;  %v414_v20 = vld [vmem:[#allocation23 + $0x30] sm:$0xff]  ;;  %v415_v31 = vld [vmem:[#allocation23 + $0x38] sm:$0xff] }
 0x354   :  { %787 = vmatprep.mubr.f32.mxu1 %v714_v36  ;;  %857 = vmatprep.mubr.f32.mxu0 %v716_v37  ;;  %v6082_v19 = vpack.c.bf16 %v413_v18, %v412_v14  ;;  %v6086_v33 = vpack.c.bf16 %v415_v31, %v414_v20  ;;  %v416_v35 = vld [vmem:[#allocation23 + $0x40] sm:$0xff]  ;;  %v417_v36 = vld [vmem:[#allocation23 + $0x48] sm:$0xff]  ;;  %v422_v14 = vld [vmem:[#allocation23 + $0x70] sm:$0xff] }
 0x355   :  { %788 = vmatmul.mubr.f32.vlgmr.msra.gmra.mrb[2].mxu1 %v713_v40  ;;  %858 = vmatmul.mubr.f32.vlgmr.msra.gmra.mrb[4].mxu0 %v715_v47  ;;  %6725 = vst [vmem:[#allocation73_spill] sm:$0xff] %v6078_v13  ;;  %v6089_v37 = vpack.c.bf16 %v417_v36, %v416_v35  ;;  %v418_v40 = vld [vmem:[#allocation23 + $0x50] sm:$0xff]  ;;  %v419_v47 = vld [vmem:[#allocation23 + $0x58] sm:$0xff]  ;;  %v421_v2 = vld [vmem:[#allocation23 + $0x68] sm:$0xff] }
 0x356   :  { %4088 = vmatprep.mubr.msk.f32.mxu1 %vm5538_vm1, %v6620_v3  ;;  %4123 = vmatprep.mubr.msk.f32.mxu0 %vm5538_vm1, %v6620_v3  ;;  %6726 = vst [vmem:[#allocation74_spill] sm:$0xff] %v6082_v19  ;;  %6727 = vst [vmem:[#allocation75_spill] sm:$0xff] %v6086_v33  ;;  %v6093_v48 = vpack.c.bf16 %v419_v47, %v418_v40  ;;  %v6097_v9 = vpack.c.bf16 %v421_v2, %v420_v49  ;;  %v423_v18 = vld [vmem:[#allocation23 + $0x78] sm:$0xff]  ;;  %v425_v31 = vld [vmem:[#allocation26] sm:$0xff] }
 0x357   :  { %4528 = vmatpush3.bf16.msra.mxu1 %v6072_v61  ;;  %6728 = vst [vmem:[#allocation76_spill] sm:$0xff] %v6089_v37  ;;  %v6101_v20 = vpack.c.bf16 %v423_v18, %v422_v14  ;;  %v426_v35 = vld [vmem:[#allocation26 + $0x8] sm:$0xff]  ;;  %v427_v36 = vld [vmem:[#allocation26 + $0x10] sm:$0xff]  ;;  %v428_v47 = vld [vmem:[#allocation26 + $0x18] sm:$0xff] }
 0x358   :  { %4529 = vmatprep.subr.bf16.mxu1 %v6646_v1  ;;  %6729 = vst [vmem:[#allocation77_spill] sm:$0xff] %v6093_v48  ;;  %6730 = vst [vmem:[#allocation78_spill] sm:$0xff] %v6097_v9  ;;  %v6106_v40 = vpack.c.bf16 %v426_v35, %v425_v31  ;;  %v6109_v49 = vpack.c.bf16 %v428_v47, %v427_v36  ;;  %v429_v2 = vld [vmem:[#allocation26 + $0x20] sm:$0xff]  ;;  %v430_v14 = vld [vmem:[#allocation26 + $0x28] sm:$0xff] }
 0x359   :  { %6731 = vst [vmem:[#allocation79_spill] sm:$0xff] %v6101_v20  ;;  %v6113_v18 = vpack.c.bf16 %v430_v14, %v429_v2  ;;  %v431_v3 = vld [vmem:[#allocation26 + $0x30] sm:$0xff]  ;;  %v433_v35 = vld [vmem:[#allocation26 + $0x40] sm:$0xff]  ;;  %v434_v36 = vld [vmem:[#allocation26 + $0x48] sm:$0xff] }
 0x35a   :  { %6732 = vst [vmem:[#allocation80_spill] sm:$0xff] %v6106_v40  ;;  %4552 = vmatpush3.bf16.msra.mxu0 %v6106_v40  ;;  %6733 = vst [vmem:[#allocation81_spill] sm:$0xff] %v6109_v49  ;;  %v6121_v47 = vpack.c.bf16 %v434_v36, %v433_v35  ;;  %v435_v2 = vld [vmem:[#allocation26 + $0x50] sm:$0xff]  ;;  %v436_v14 = vld [vmem:[#allocation26 + $0x58] sm:$0xff] }
 0x35b   :  { %4531 = vmatpush3.bf16.msra.mxu1 %v6078_v13  ;;  %4553 = vmatprep.subr.bf16.mxu0 %v6646_v1  ;;  %6734 = vst [vmem:[#allocation82_spill] sm:$0xff] %v6113_v18  ;;  %v439_v35 = vld [vmem:[#allocation26 + $0x70] sm:$0xff]  ;;  %v440_v36 = vld [vmem:[#allocation26 + $0x78] sm:$0xff] }
 0x35c   :  { %4532 = vmatprep.subr.bf16.mxu1 %v6646_v1  ;;  %6736 = vst [vmem:[#allocation84_spill] sm:$0xff] %v6121_v47 }
 0x35e   :  { %4555 = vmatpush3.bf16.msra.mxu0 %v6109_v49 }
 0x35f   :  { %4534 = vmatpush3.bf16.msra.mxu1 %v6082_v19  ;;  %4556 = vmatprep.subr.bf16.mxu0 %v6646_v1 }
 0x360   :  { %4535 = vmatprep.subr.bf16.mxu1 %v6646_v1 }
 0x362   :  { %4558 = vmatpush3.bf16.msra.mxu0 %v6113_v18  ;;  %v6138_v18 = vld [vmem:[#allocation18] ss:$0 sm:$0xff] }
 0x363   :  { %4537 = vmatpush3.bf16.msra.mxu1 %v6086_v33  ;;  %4559 = vmatprep.subr.bf16.mxu0 %v6646_v1 }
 0x364   :  { %4538 = vmatprep.subr.bf16.mxu1 %v6646_v1 }
 0x367   :  { %4540 = vmatpush3.bf16.msra.mxu1 %v6089_v37 }
 0x368   :  { %4541 = vmatprep.subr.bf16.mxu1 %v6646_v1 }
 0x36b   :  { %4543 = vmatpush3.bf16.msra.mxu1 %v6093_v48 }
 0x36c   :  { %4544 = vmatprep.subr.bf16.mxu1 %v6646_v1 }
 0x36f   :  { %4546 = vmatpush3.bf16.msra.mxu1 %v6097_v9  ;;  %v6125_v9 = vpack.c.bf16 %v436_v14, %v435_v2  ;;  %v6740_v2 = vmov 0.0  }
 0x370   :  { %4547 = vmatprep.subr.bf16.mxu1 %v6646_v1 }
 0x371   :  { %6737 = vst [vmem:[#allocation85_spill] sm:$0xff] %v6125_v9 }
 0x373   :  { %4549 = vmatpush3.bf16.msra.mxu1 %v6101_v20  ;;  %v432_v20 = vld [vmem:[#allocation26 + $0x38] sm:$0xff] }
 0x374   :  { %4574 = vmatprep.subr.bf16.mxu1 %v6646_v1  ;;  %v6117_v31 = vpack.c.bf16 %v432_v20, %v431_v3  ;;  %v437_v3 = vld [vmem:[#allocation26 + $0x60] sm:$0xff]  ;;  %v438_v20 = vld [vmem:[#allocation26 + $0x68] sm:$0xff] }
 0x375   :  { %v6129_v48 = vpack.c.bf16 %v438_v20, %v437_v3 }
 0x376   :  { %6735 = vst [vmem:[#allocation83_spill] sm:$0xff] %v6117_v31  ;;  %4561 = vmatpush3.bf16.msra.mxu0 %v6117_v31  ;;  %v6133_v31 = vpack.c.bf16 %v440_v36, %v439_v35 }
 0x377   :  { %4562 = vmatprep.subr.bf16.mxu0 %v6646_v1  ;;  %6738 = vst [vmem:[#allocation86_spill] sm:$0xff] %v6129_v48 }
 0x378   :  { %6739 = vst [vmem:[#allocation87_spill] sm:$0xff] %v6133_v31 }
 0x37a   :  { %4564 = vmatpush3.bf16.msra.mxu0 %v6121_v47 }
 0x37b   :  { %4565 = vmatprep.subr.bf16.mxu0 %v6646_v1 }
 0x37e   :  { %4567 = vmatpush3.bf16.msra.mxu0 %v6125_v9 }
 0x37f   :  { %4568 = vmatprep.subr.bf16.mxu0 %v6646_v1 }
 0x382   :  { %4570 = vmatpush3.bf16.msra.mxu0 %v6129_v48 }
 0x383   :  { %4571 = vmatprep.subr.bf16.mxu0 %v6646_v1 }
 0x386   :  { %4573 = vmatpush3.bf16.msra.mxu0 %v6133_v31 }
 0x387   :  { %4161 = vmatprep.subr.mxu0 %v6740_v2 }
 0x428   :  { %v3690_v14 = vpop.f32.mrb[2].mxu1  ;;  %v3725_v47 = vpop.f32.mrb[4].mxu0 }
 0x429   :  { %v3691_v3 = vpop.f32.mrb[3].mxu1  ;;  %v3726_v20 = vpop.f32.mrb[5].mxu0 }
 0x42a   :  { %v3692_v9 = vadd.f32 %v3691_v3, %v3690_v14  ;;  %v3727_v37 = vadd.f32 %v3726_v20, %v3725_v47  ;;  %v1172_v20 = vld [vmem:[#allocation11] sm:$0xff] }
 0x42c   :  { %v790_v49 = vadd.f32 %v3692_v9, %v6138_v18 }
 0x42e   :  { %v860_v33 = vadd.f32 %v3727_v37, %v790_v49  ;;  %v6141_v49 = vld [vmem:[#allocation20] ss:$0 sm:$0xff] }
 0x430   :  { %v863_v48 = vrot.slane %v860_v33, 4  ;;  %v871_v35 = vmul.f32 %v860_v33, %v860_v33 }
 0x432   :  { %v864_v36 = vadd.f32 %v863_v48, %v860_v33  ;;  %v872_v40 = vrot.slane %v871_v35, 4 }
 0x434   :  { %v865_v1 = vrot.slane %v864_v36, 2  ;;  %v873_v19 = vadd.f32 %v872_v40, %v871_v35  ;;  %v444_v35 = vld [vmem:[#allocation32] sm:$0xff] }
 0x436   :  { %v866_v31 = vadd.f32 %v865_v1, %v864_v36  ;;  %v874_v13 = vrot.slane %v873_v19, 2  ;;  %v6143_v1 = vld [vmem:[#allocation21] ss:$0 sm:$0xff]  ;;  %v445_v36 = vld [vmem:[#allocation32 + $0x8] sm:$0xff] }
 0x438   :  { %v867_v58 = vrot.slane %v866_v31, 1  ;;  %v875_v61 = vadd.f32 %v874_v13, %v873_v19 }
 0x43a   :  { %v868_v53 = vadd.f32 %v867_v58, %v866_v31  ;;  %v876_v62 = vrot.slane %v875_v61, 1  ;;  %v6146_v58 = vstv %s3634_s20 }
 0x43c   :  { %v870_v54 = vmul.f32 0.125, %v868_v53  ;;  %v877_v52 = vadd.f32 %v876_v62, %v875_v61 }
 0x43e   :  { %v878_v34 = vmul.f32 0.125, %v877_v52  ;;  %v879_v14 = vmul.f32 %v870_v54, %v870_v54  ;;  %v882_v37 = vsub.f32 %v860_v33, %v870_v54  ;;  %v6152_v54 = vld [vmem:[#allocation24] ss:$0 sm:$0xff]  ;;  %v1173_v33 = vld [vmem:[#allocation6] sm:$0xff] }
 0x440   :  { %v880_v47 = vsub.f32 %v878_v34, %v879_v14  ;;  %v6169_v14 = vpack.c.bf16 %v445_v36, %v444_v35  ;;  %v456_v36 = vld [vmem:[#allocation32 + $0x60] sm:$0xff] }
 0x442   :  { %v881_v3 = vmax.f32 %v880_v47, 0.0  ;;  %v6742_v47 = vmov 0.0|0.0  }
 0x444   :  { %v883_v9 = vadd.f32 1e-05, %v881_v3  ;;  %v446_v3 = vld [vmem:[#allocation32 + $0x10] sm:$0xff] }
 0x446   :  { %4939 = vrsqrt.f32 %v883_v9  ;;  %v447_v9 = vld [vmem:[#allocation32 + $0x18] sm:$0xff] }
 0x450   :  { %v4940_v48 = vpop.eup %4939 }
 0x451   :  { %v885_v40 = vmul.f32 %v4940_v48, %v882_v37  ;;  %v6173_v37 = vpack.c.bf16 %v447_v9, %v446_v3  ;;  %v448_v48 = vld [vmem:[#allocation32 + $0x20] sm:$0xff]  ;;  %v457_v3 = vld [vmem:[#allocation32 + $0x68] sm:$0xff]  ;;  %v458_v9 = vld [vmem:[#allocation32 + $0x70] sm:$0xff] }
 0x453   :  { %v892_v13 = vmul.f32 %v6141_v49, %v885_v40  ;;  %v449_v40 = vld [vmem:[#allocation32 + $0x28] sm:$0xff] }
 0x455   :  { %v899_v53 = vadd.f32 %v6143_v1, %v892_v13  ;;  %v6177_v13 = vpack.c.bf16 %v449_v40, %v448_v48  ;;  %v6193_v48 = vpack.c.bf16 %v457_v3, %v456_v36  ;;  %v459_v40 = vld [vmem:[#allocation32 + $0x78] sm:$0xff] }
 0x457   :  { %vm900_vm7 = vcmp.ge.f32.partialorder %v899_v53, 0.0  ;;  %v902_v34 = vmul.f32 %v6146_v58, %v899_v53 }
 0x459   :  { %v903_v52 = vsel %vm900_vm7, %v899_v53, %v902_v34  ;;  %v450_v53 = vld [vmem:[#allocation32 + $0x30] sm:$0xff]  ;;  %v451_v34 = vld [vmem:[#allocation32 + $0x38] sm:$0xff] }
 0x45a   :  { %4089 = vmatmul.mubr.f32.vlgmr.msra.gmra.mrb[4].mxu1 %v903_v52  ;;  %v6181_v52 = vpack.c.bf16 %v451_v34, %v450_v53  ;;  %v6196_v53 = vpack.c.bf16 %v459_v40, %v458_v9  ;;  %v6201_v34 = vld [vmem:[#allocation27] ss:$0 sm:$0xff] }
 0x45b   :  { %4158 = vmatprep.mubr.msk.f32.mxu1 %vm5538_vm1, %v6740_v2  ;;  %4576 = vmatpush3.bf16.msra.mxu1 %v6169_v14  ;;  %6743 = vst [vmem:[#allocation89_spill] sm:$0xff] %v6201_v34 }
 0x45c   :  { %4577 = vmatprep.subr.bf16.mxu1 %v6742_v47 }
 0x45f   :  { %4579 = vmatpush3.bf16.msra.mxu1 %v6173_v37 }
 0x460   :  { %4580 = vmatprep.subr.bf16.mxu1 %v6742_v47 }
 0x463   :  { %4582 = vmatpush3.bf16.msra.mxu1 %v6177_v13 }
 0x464   :  { %4583 = vmatprep.subr.bf16.mxu1 %v6742_v47 }
 0x467   :  { %4585 = vmatpush3.bf16.msra.mxu1 %v6181_v52 }
 0x468   :  { %4586 = vmatprep.subr.bf16.mxu1 %v6742_v47 }
 0x52d   :  { %v976_v62 = vpop.f32.mrb[4].mxu1 }
 0x52e   :  { %v6155_v61 = vadd.f32 %v6152_v54, %v976_v62  ;;  %v4090_v19 = vpop.f32.mrb[5].mxu1  ;;  %v452_v62 = vld [vmem:[#allocation32 + $0x40] sm:$0xff] }
 0x52f   :  { %v453_v19 = vld [vmem:[#allocation32 + $0x48] sm:$0xff] }
 0x530   :  { %6741 = vst [vmem:[#allocation88_spill] sm:$0xff] %v6155_v61  ;;  %4124 = vmatmul.mubr.f32.vlgmr.msra.gmra.mrb[6].mxu0 %v6155_v61  ;;  %v2684_v31 = vmul.f32 %v6155_v61, %v6155_v61 }
 0x531   :  { %4162 = vmatpush3.msra.mxu0 %v1173_v33  ;;  %4163 = vmatprep.mubr.msk.f32.mxu0 %vm5538_vm1, %v6740_v2  ;;  %v6185_v33 = vpack.c.bf16 %v453_v19, %v452_v62 }
 0x532   :  { %2685 = vadd.xlane.f32.xlu0 %v2684_v31  ;;  %4599 = vmatprep.subr.bf16.mxu0 %v5925_v7  ;;  %v454_v31 = vld [vmem:[#allocation32 + $0x50] sm:$0xff] }
 0x533   :  { %4588 = vmatpush3.bf16.msra.mxu1 %v6185_v33 }
 0x534   :  { %4164 = vmatmul.mubr.msk.f32.vlgmr.msra.gmra.mrb[8].mxu0 %vm463_vm0, %v1172_v20  ;;  %4589 = vmatprep.subr.bf16.mxu1 %v6742_v47  ;;  %v455_v20 = vld [vmem:[#allocation32 + $0x58] sm:$0xff] }
 0x535   :  { %4601 = vmatpush1.bf16.msra.mxu0 %v5931_v12  ;;  %1314 = vmatprep.mubr.f32.mxu0 %v6740_v2  ;;  %v6189_v35 = vpack.c.bf16 %v455_v20, %v454_v31 }
 0x536   :  { %4603 = vmatprep.subr.bf16.mxu0 %v5937_v17 }
 0x537   :  { %4591 = vmatpush3.bf16.msra.mxu1 %v6189_v35 }
 0x538   :  { %4592 = vmatprep.subr.bf16.mxu1 %v6742_v47 }
 0x539   :  { %4605 = vmatpush1.bf16.msra.mxu0 %v5945_v25 }
 0x53a   :  { %4607 = vmatprep.subr.bf16.mxu0 %v5927_v8 }
 0x53b   :  { %4594 = vmatpush3.bf16.msra.mxu1 %v6193_v48 }
 0x53c   :  { %4595 = vmatprep.subr.bf16.mxu1 %v6742_v47 }
 0x53f   :  { %4597 = vmatpush3.bf16.msra.mxu1 %v6196_v53 }
 0x540   :  { %4647 = vmatprep.subr.bf16.mxu1 %v5954_v32 }
 0x603   :  { %v1052_v62 = vpop.f32.mrb[6].mxu0 }
 0x604   :  { %v1053_v19 = vadd.f32 %v6201_v34, %v1052_v62  ;;  %v4125_v31 = vpop.f32.mrb[7].mxu0 }
 0x606   :  { %v1056_v20 = vrot.slane %v1053_v19, 4  ;;  %v1063_v36 = vmul.f32 %v1053_v19, %v1053_v19 }
 0x607   :  { %v1243_v3 = vpop.f32.mrb[8].mxu0 }
 0x608   :  { %v1057_v61 = vadd.f32 %v1056_v20, %v1053_v19  ;;  %v1064_v8 = vrot.slane %v1063_v36, 4  ;;  %v4165_v25 = vpop.f32.mrb[9].mxu0  ;;  %3648 = vmatmul.mubr.msk.f32.vlgmr.msra.gmra.mrb[10].mxu0 %vm558_vm2, %v1243_v3 }
 0x609   :  { %4609 = vmatpush1.bf16.msra.mxu0 %v5935_v16  ;;  %1385 = vmatprep.mubr.f32.mxu0 %v6740_v2 }
 0x60a   :  { %v1058_v9 = vrot.slane %v1057_v61, 2  ;;  %v1065_v40 = vadd.f32 %v1064_v8, %v1063_v36  ;;  %4611 = vmatprep.subr.bf16.mxu0 %v5940_v21 }
 0x60c   :  { %v1059_v17 = vadd.f32 %v1058_v9, %v1057_v61  ;;  %v1066_v12 = vrot.slane %v1065_v40, 2  ;;  %v6222_v9 = vld [vmem:[#allocation29] ss:$0 sm:$0xff] }
 0x60d   :  { %4613 = vmatpush1.bf16.msra.mxu0 %v5947_v26 }
 0x60e   :  { %v1060_v62 = vrot.slane %v1059_v17, 1  ;;  %v1067_v31 = vadd.f32 %v1066_v12, %v1065_v40  ;;  %4615 = vmatprep.subr.bf16.mxu0 %v5952_v30 }
 0x610   :  { %v1061_v20 = vadd.f32 %v1060_v62, %v1059_v17  ;;  %v1068_v25 = vrot.slane %v1067_v31, 1  ;;  %3649 = vmatmul.mubr.msk.f32.vlgmr.msra.gmra.mrb[12].mxu0 %vm558_vm2, %v1243_v3  ;;  %v6225_v62 = vld [vmem:[#allocation30] ss:$0 sm:$0xff] }
 0x611   :  { %4617 = vmatpush3.bf16.msra.mxu0 %v5958_v41 }
 0x612   :  { %v1062_v16 = vmul.f32 0.125, %v1061_v20  ;;  %v1069_v34 = vadd.f32 %v1068_v25, %v1067_v31  ;;  %4619 = vmatprep.subr.bf16.mxu0 %v5962_v45  ;;  %v6229_v20 = vstv %s3635_s28 }
 0x614   :  { %v1070_v8 = vmul.f32 0.125, %v1069_v34  ;;  %v1071_v36 = vmul.f32 %v1062_v16, %v1062_v16  ;;  %v1074_v34 = vsub.f32 %v1053_v19, %v1062_v16 }
 0x615   :  { %4621 = vmatpush3.bf16.msra.mxu0 %v5970_v55 }
 0x616   :  { %v1072_v61 = vsub.f32 %v1070_v8, %v1071_v36  ;;  %4623 = vmatprep.subr.bf16.mxu0 %v5976_v59  ;;  %v6744_v8 = vld [vmem:[#allocation66_spill] sm:$0xff] }
 0x618   :  { %v1073_v12 = vmax.f32 %v1072_v61, 0.0  ;;  %v6745_v61 = vld [vmem:[#allocation67_spill] sm:$0xff] }
 0x619   :  { %4625 = vmatpush3.bf16.msra.mxu0 %v5982_v4 }
 0x61a   :  { %v1075_v17 = vadd.f32 1e-05, %v1073_v12  ;;  %4627 = vmatprep.subr.bf16.mxu0 %v5988_v10 }
 0x61c   :  { %4941 = vrsqrt.f32 %v1075_v17 }
 0x61d   :  { %4629 = vmatpush3.bf16.msra.mxu0 %v5994_v22 }
 0x61e   :  { %4631 = vmatprep.subr.bf16.mxu0 %v6000_v28 }
 0x621   :  { %4633 = vmatpush3.bf16.msra.mxu0 %v6006_v38 }
 0x622   :  { %4635 = vmatprep.subr.bf16.mxu0 %v6012_v43 }
 0x625   :  { %4637 = vmatpush3.bf16.msra.mxu0 %v6018_v50 }
 0x626   :  { %v4942_v3 = vpop.eup %4941  ;;  %4639 = vmatprep.subr.bf16.mxu0 %v6026_v57 }
 0x627   :  { %v1077_v40 = vmul.f32 %v4942_v3, %v1074_v34  ;;  %v6746_v34 = vld [vmem:[#allocation69_spill] sm:$0xff] }
 0x629   :  { %v1084_v31 = vmul.f32 %v6222_v9, %v1077_v40  ;;  %4641 = vmatpush3.bf16.msra.mxu0 %v6030_v0  ;;  %v6747_v40 = vld [vmem:[#allocation71_spill] sm:$0xff] }
 0x62a   :  { %4643 = vmatprep.subr.bf16.mxu0 %v6038_v15 }
 0x62b   :  { %v1091_v16 = vadd.f32 %v6225_v62, %v1084_v31 }
 0x62d   :  { %vm1092_vm8 = vcmp.ge.f32.partialorder %v1091_v16, 0.0  ;;  %v1094_v19 = vmul.f32 %v6229_v20, %v1091_v16  ;;  %4645 = vmatpush3.bf16.msra.mxu0 %v6042_v27 }
 0x62e   :  { %4678 = vmatprep.subr.bf16.mxu0 %v6742_v47 }
 0x62f   :  { %v1095_v25 = vsel %vm1092_vm8, %v1091_v16, %v1094_v19 }
 0x630   :  { %4159 = vmatmul.mubr.f32.vlgmr.msra.gmra.mrb[6].mxu1 %v1095_v25 }
 0x631   :  { %4649 = vmatpush3.bf16.msra.mxu1 %v5960_v42 }
 0x632   :  { %4651 = vmatprep.subr.bf16.mxu1 %v5964_v46 }
 0x635   :  { %4653 = vmatpush3.bf16.msra.mxu1 %v5972_v56 }
 0x636   :  { %4655 = vmatprep.subr.bf16.mxu1 %v5978_v60 }
 0x639   :  { %4657 = vmatpush3.bf16.msra.mxu1 %v5984_v5 }
 0x63a   :  { %4659 = vmatprep.subr.bf16.mxu1 %v5990_v11 }
 0x63d   :  { %4661 = vmatpush3.bf16.msra.mxu1 %v5996_v23 }
 0x63e   :  { %4663 = vmatprep.subr.bf16.mxu1 %v6002_v29 }
 0x641   :  { %4665 = vmatpush3.bf16.msra.mxu1 %v6008_v39 }
 0x642   :  { %4667 = vmatprep.subr.bf16.mxu1 %v6014_v44 }
 0x645   :  { %4669 = vmatpush3.bf16.msra.mxu1 %v6020_v51  ;;  %v6749_v51 = vld [vmem:[#allocation72_spill] sm:$0xff] }
 0x646   :  { %4671 = vmatprep.subr.bf16.mxu1 %v6028_v63 }
 0x649   :  { %4673 = vmatpush3.bf16.msra.mxu1 %v6033_v6 }
 0x64a   :  { %4675 = vmatprep.subr.bf16.mxu1 %v6040_v24 }
 0x64d   :  { %4677 = vmatpush3.bf16.msra.mxu1 %v6744_v8  ;;  %v6748_v8 = vld [vmem:[#allocation68_spill] sm:$0xff] }
 0x64e   :  { %4702 = vmatprep.subr.bf16.mxu1 %v6742_v47 }
 0x6db   :  { %v1316_v36 = vpop.f32.mrb[10].mxu0 }
 0x6dc   :  { %v1317_v12 = vadd.f32 %v1316_v36, %v6745_v61  ;;  %v1318_v17 = vpop.f32.mrb[11].mxu0  ;;  %v6750_v36 = vld [vmem:[#allocation70_spill] sm:$0xff] }
 0x6dd   :  { %v1319_v3 = vadd.f32 %v1318_v17, %v6746_v34 }
 0x6de   :  { %v1396_v31 = vmul.f32 %v1317_v12, %v6747_v40  ;;  %vm1392_vm9 = vcmp.ge.f32.partialorder %v1317_v12, 0.0 }
 0x6df   :  { %v1397_v16 = vmul.f32 %v1319_v3, %v6747_v40  ;;  %vm1393_vm10 = vcmp.ge.f32.partialorder %v1319_v3, 0.0 }
 0x6e0   :  { %v1400_v25 = vsel %vm1392_vm9, %v1317_v12, %v1396_v31  ;;  %v6751_v12 = vld [vmem:[#allocation73_spill] sm:$0xff] }
 0x6e1   :  { %v1401_v19 = vsel %vm1393_vm10, %v1319_v3, %v1397_v16  ;;  %v6752_v16 = vld [vmem:[#allocation74_spill] sm:$0xff] }
 0x6e2   :  { %1468 = vmatprep.mubr.f32.mxu0 %v1401_v19  ;;  %v6753_v19 = vld [vmem:[#allocation80_spill] sm:$0xff] }
 0x6e3   :  { %v1387_v24 = vpop.f32.mrb[12].mxu0  ;;  %1469 = vmatmul.mubr.f32.vlgmr.msra.gmra.mrb[14].mxu0 %v1400_v25  ;;  %v6755_v25 = vld [vmem:[#allocation81_spill] sm:$0xff] }
 0x6e4   :  { %v1388_v6 = vadd.f32 %v1387_v24, %v6748_v8  ;;  %v1389_v63 = vpop.f32.mrb[13].mxu0  ;;  %4680 = vmatpush3.bf16.msra.mxu0 %v6749_v51  ;;  %4198 = vmatprep.mubr.msk.f32.mxu0 %vm5538_vm1, %v6740_v2 }
 0x6e5   :  { %v1390_v17 = vadd.f32 %v1389_v63, %v6750_v36  ;;  %4681 = vmatprep.subr.bf16.mxu0 %v6742_v47  ;;  %v6754_v63 = vld [vmem:[#allocation75_spill] sm:$0xff] }
 0x6e6   :  { %v1398_v34 = vmul.f32 %v1388_v6, %v6747_v40  ;;  %vm1394_vm11 = vcmp.ge.f32.partialorder %v1388_v6, 0.0 }
 0x6e7   :  { %v1399_v3 = vmul.f32 %v1390_v17, %v6747_v40  ;;  %vm1395_vm12 = vcmp.ge.f32.partialorder %v1390_v17, 0.0 }
 0x6e8   :  { %4683 = vmatpush3.bf16.msra.mxu0 %v6751_v12  ;;  %v1402_v24 = vsel %vm1394_vm11, %v1388_v6, %v1398_v34  ;;  %v6756_v6 = vld [vmem:[#allocation76_spill] sm:$0xff]  ;;  %v6757_v34 = vld [vmem:[#allocation82_spill] sm:$0xff] }
 0x6e9   :  { %v1403_v31 = vsel %vm1395_vm12, %v1390_v17, %v1399_v3  ;;  %4684 = vmatprep.subr.bf16.mxu0 %v6742_v47  ;;  %v6758_v17 = vld [vmem:[#allocation77_spill] sm:$0xff]  ;;  %v6759_v3 = vld [vmem:[#allocation83_spill] sm:$0xff] }
 0x6ea   :  { %1538 = vmatprep.mubr.f32.mxu1 %v1403_v31  ;;  %v6760_v31 = vld [vmem:[#allocation78_spill] sm:$0xff] }
 0x6eb   :  { %1539 = vmatmul.mubr.f32.vlgmr.msra.gmra.mrb[8].mxu1 %v1402_v24  ;;  %v6761_v24 = vld [vmem:[#allocation84_spill] sm:$0xff] }
 0x6ec   :  { %4686 = vmatpush3.bf16.msra.mxu0 %v6752_v16  ;;  %4704 = vmatpush3.bf16.msra.mxu1 %v6753_v19 }
 0x6ed   :  { %4687 = vmatprep.subr.bf16.mxu0 %v6742_v47  ;;  %4705 = vmatprep.subr.bf16.mxu1 %v6742_v47 }
 0x6ee   :  { %4233 = vmatprep.mubr.msk.f32.mxu1 %vm5538_vm1, %v6740_v2 }
 0x6f0   :  { %4689 = vmatpush3.bf16.msra.mxu0 %v6754_v63  ;;  %4707 = vmatpush3.bf16.msra.mxu1 %v6755_v25  ;;  %v6765_v25 = vld [vmem:[#allocation86_spill] sm:$0xff] }
 0x6f1   :  { %4690 = vmatprep.subr.bf16.mxu0 %v6742_v47  ;;  %4708 = vmatprep.subr.bf16.mxu1 %v6742_v47 }
 0x6f4   :  { %4692 = vmatpush3.bf16.msra.mxu0 %v6756_v6  ;;  %4710 = vmatpush3.bf16.msra.mxu1 %v6757_v34  ;;  %v6762_v34 = vld [vmem:[#allocation79_spill] sm:$0xff]  ;;  %v6763_v6 = vld [vmem:[#allocation85_spill] sm:$0xff] }
 0x6f5   :  { %4693 = vmatprep.subr.bf16.mxu0 %v6742_v47  ;;  %4711 = vmatprep.subr.bf16.mxu1 %v6742_v47 }
 0x6f8   :  { %4695 = vmatpush3.bf16.msra.mxu0 %v6758_v17  ;;  %4713 = vmatpush3.bf16.msra.mxu1 %v6759_v3 }
 0x6f9   :  { %4696 = vmatprep.subr.bf16.mxu0 %v6742_v47  ;;  %4714 = vmatprep.subr.bf16.mxu1 %v6742_v47 }
 0x6fc   :  { %4698 = vmatpush3.bf16.msra.mxu0 %v6760_v31  ;;  %4716 = vmatpush3.bf16.msra.mxu1 %v6761_v24  ;;  %v6766_v24 = vld [vmem:[#allocation87_spill] sm:$0xff] }
 0x6fd   :  { %4699 = vmatprep.subr.bf16.mxu0 %v6742_v47  ;;  %4717 = vmatprep.subr.bf16.mxu1 %v6742_v47 }
 0x700   :  { %4701 = vmatpush3.bf16.msra.mxu0 %v6762_v34  ;;  %4719 = vmatpush3.bf16.msra.mxu1 %v6763_v6 }
 0x701   :  { %4720 = vmatprep.subr.bf16.mxu1 %v6742_v47  ;;  %4726 = vmatprep.subr.bf16.mxu0 %v6742_v47 }
 0x703   :  { %v6292_v3 = vpop.f32.mrb[6].mxu1 }
 0x704   :  { %6764 = vst [vmem:[#allocation90_spill] sm:$0xff] %v6292_v3  ;;  %v4160_v17 = vpop.f32.mrb[7].mxu1  ;;  %4722 = vmatpush3.bf16.msra.mxu1 %v6765_v25 }
 0x705   :  { %4723 = vmatprep.subr.bf16.mxu1 %v6742_v47 }
 0x708   :  { %4725 = vmatpush3.bf16.msra.mxu1 %v6766_v24 }
 0x709   :  { %4271 = vmatprep.subr.mxu1 %v6740_v2 }
 0x7b6   :  { %v3813_v31 = vpop.f32.mrb[14].mxu0 }
 0x7b7   :  { %v3814_v63 = vpop.f32.mrb[15].mxu0 }
 0x7b8   :  { %v3815_v34 = vadd.f32 %v3814_v63, %v3813_v31 }
 0x7ba   :  { %v1471_v16 = vadd.f32 %v3815_v34, %v6138_v18 }
 0x7be   :  { %v3848_v19 = vpop.f32.mrb[8].mxu1 }
 0x7bf   :  { %v3849_v6 = vpop.f32.mrb[9].mxu1 }
 0x7c0   :  { %v3850_v12 = vadd.f32 %v3849_v6, %v3848_v19 }
 0x7c2   :  { %v1541_v36 = vadd.f32 %v3850_v12, %v1471_v16 }
 0x7c4   :  { %v1544_v51 = vrot.slane %v1541_v36, 4  ;;  %v1551_v3 = vmul.f32 %v1541_v36, %v1541_v36 }
 0x7c6   :  { %v1545_v17 = vadd.f32 %v1544_v51, %v1541_v36  ;;  %v1552_v8 = vrot.slane %v1551_v3, 4 }
 0x7c8   :  { %v1546_v25 = vrot.slane %v1545_v17, 2  ;;  %v1553_v40 = vadd.f32 %v1552_v8, %v1551_v3  ;;  %v6771_v3 = vld [vmem:[#allocation89_spill] sm:$0xff] }
 0x7ca   :  { %v1547_v61 = vadd.f32 %v1546_v25, %v1545_v17  ;;  %v1554_v44 = vrot.slane %v1553_v40, 2 }
 0x7cc   :  { %v1548_v24 = vrot.slane %v1547_v61, 1  ;;  %v1555_v39 = vadd.f32 %v1554_v44, %v1553_v40  ;;  %v6769_v40 = vld [vmem:[#allocation54_spill] sm:$0xff] }
 0x7ce   :  { %v1549_v29 = vadd.f32 %v1548_v24, %v1547_v61  ;;  %v1556_v23 = vrot.slane %v1555_v39, 1 }
 0x7d0   :  { %v1550_v11 = vmul.f32 0.125, %v1549_v29  ;;  %v1557_v63 = vadd.f32 %v1556_v23, %v1555_v39  ;;  %v1809_v23 = vld [vmem:[#allocation8] sm:$0xff]  ;;  %v1808_v29 = vld [vmem:[#allocation12] sm:$0xff] }
 0x7d1   :  { %v6767_v39 = vld [vmem:[#allocation51_spill] sm:$0xff] }
 0x7d2   :  { %v1558_v31 = vmul.f32 0.125, %v1557_v63  ;;  %v1559_v5 = vmul.f32 %v1550_v11, %v1550_v11  ;;  %v1562_v12 = vsub.f32 %v1541_v36, %v1550_v11  ;;  %v6770_v36 = vld [vmem:[#allocation50_spill] sm:$0xff] }
 0x7d4   :  { %v1560_v60 = vsub.f32 %v1558_v31, %v1559_v5 }
 0x7d6   :  { %v1561_v34 = vmax.f32 %v1560_v60, 0.0 }
 0x7d8   :  { %v1563_v19 = vadd.f32 1e-05, %v1561_v34 }
 0x7da   :  { %4943 = vrsqrt.f32 %v1563_v19 }
 0x7e4   :  { %v4944_v16 = vpop.eup %4943 }
 0x7e5   :  { %v1565_v51 = vmul.f32 %v4944_v16, %v1562_v12  ;;  %v6772_v16 = vld [vmem:[#allocation52_spill] sm:$0xff] }
 0x7e7   :  { %v1566_v6 = vmul.f32 %v6141_v49, %v1565_v51 }
 0x7e9   :  { %v1567_v8 = vadd.f32 %v6143_v1, %v1566_v6 }
 0x7eb   :  { %vm1568_vm13 = vcmp.ge.f32.partialorder %v1567_v8, 0.0  ;;  %v1569_v44 = vmul.f32 %v1567_v8, %v6146_v58 }
 0x7ed   :  { %v1570_v61 = vsel %vm1568_vm13, %v1567_v8, %v1569_v44 }
 0x7ee   :  { %4199 = vmatmul.mubr.f32.vlgmr.msra.gmra.mrb[16].mxu0 %v1570_v61 }
 0x7ef   :  { %4728 = vmatpush3.bf16.msra.mxu0 %v6169_v14  ;;  %4268 = vmatprep.mubr.msk.f32.mxu0 %vm5538_vm1, %v6740_v2 }
 0x7f0   :  { %4729 = vmatprep.subr.bf16.mxu0 %v6742_v47 }
 0x7f3   :  { %4731 = vmatpush3.bf16.msra.mxu0 %v6173_v37 }
 0x7f4   :  { %4732 = vmatprep.subr.bf16.mxu0 %v6742_v47 }
 0x7f7   :  { %4734 = vmatpush3.bf16.msra.mxu0 %v6177_v13 }
 0x7f8   :  { %4735 = vmatprep.subr.bf16.mxu0 %v6742_v47 }
 0x7fb   :  { %4737 = vmatpush3.bf16.msra.mxu0 %v6181_v52 }
 0x7fc   :  { %4738 = vmatprep.subr.bf16.mxu0 %v6742_v47 }
 0x7ff   :  { %4740 = vmatpush3.bf16.msra.mxu0 %v6185_v33 }
 0x800   :  { %4741 = vmatprep.subr.bf16.mxu0 %v6742_v47 }
 0x803   :  { %4743 = vmatpush3.bf16.msra.mxu0 %v6189_v35 }
 0x804   :  { %4744 = vmatprep.subr.bf16.mxu0 %v6742_v47 }
 0x807   :  { %4746 = vmatpush3.bf16.msra.mxu0 %v6193_v48 }
 0x808   :  { %4747 = vmatprep.subr.bf16.mxu0 %v6742_v47 }
 0x80b   :  { %4749 = vmatpush3.bf16.msra.mxu0 %v6196_v53 }
 0x80c   :  { %4799 = vmatprep.subr.bf16.mxu0 %v5954_v32  ;;  %v6768_v32 = vld [vmem:[#allocation53_spill] sm:$0xff] }
 0x8c1   :  { %v1637_v60 = vpop.f32.mrb[16].mxu0 }
 0x8c2   :  { %v6321_v5 = vadd.f32 %v6152_v54, %v1637_v60  ;;  %v4200_v11 = vpop.f32.mrb[17].mxu0 }
 0x8c4   :  { %4234 = vmatmul.mubr.f32.vlgmr.msra.gmra.mrb[10].mxu1 %v6321_v5 }
 0x8c5   :  { %4272 = vmatpush3.msra.mxu1 %v1809_v23  ;;  %4273 = vmatprep.mubr.msk.f32.mxu1 %vm5538_vm1, %v6740_v2 }
 0x8c6   :  { %4751 = vmatprep.subr.bf16.mxu1 %v5925_v7 }
 0x8c8   :  { %4274 = vmatmul.mubr.msk.f32.vlgmr.msra.gmra.mrb[12].mxu1 %vm463_vm0, %v1808_v29 }
 0x8c9   :  { %4753 = vmatpush1.bf16.msra.mxu1 %v6767_v39  ;;  %1950 = vmatprep.mubr.f32.mxu1 %v6740_v2 }
 0x8ca   :  { %4755 = vmatprep.subr.bf16.mxu1 %v6768_v32 }
 0x8cd   :  { %4757 = vmatpush1.bf16.msra.mxu1 %v6769_v40 }
 0x8ce   :  { %4759 = vmatprep.subr.bf16.mxu1 %v6770_v36  ;;  %v6784_v36 = vld [vmem:[#allocation66_spill] sm:$0xff] }
 0x997   :  { %v1707_v25 = vpop.f32.mrb[10].mxu1 }
 0x998   :  { %v1708_v24 = vadd.f32 %v6771_v3, %v1707_v25  ;;  %v4235_v17 = vpop.f32.mrb[11].mxu1 }
 0x99a   :  { %v1711_v63 = vrot.slane %v1708_v24, 4  ;;  %v1718_v31 = vmul.f32 %v1708_v24, %v1708_v24 }
 0x99b   :  { %v1879_v34 = vpop.f32.mrb[12].mxu1 }
 0x99c   :  { %v1712_v7 = vadd.f32 %v1711_v63, %v1708_v24  ;;  %v1719_v19 = vrot.slane %v1718_v31, 4  ;;  %v4275_v12 = vpop.f32.mrb[13].mxu1  ;;  %3651 = vmatmul.mubr.msk.f32.vlgmr.msra.gmra.mrb[14].mxu1 %vm558_vm2, %v1879_v34 }
 0x99d   :  { %4761 = vmatpush1.bf16.msra.mxu1 %v6772_v16  ;;  %2021 = vmatprep.mubr.f32.mxu1 %v6740_v2 }
 0x99e   :  { %v1713_v51 = vrot.slane %v1712_v7, 2  ;;  %v1720_v6 = vadd.f32 %v1719_v19, %v1718_v31  ;;  %4763 = vmatprep.subr.bf16.mxu1 %v5940_v21  ;;  %v6786_v31 = vld [vmem:[#allocation69_spill] sm:$0xff] }
 0x9a0   :  { %v1714_v8 = vadd.f32 %v1713_v51, %v1712_v7  ;;  %v1721_v44 = vrot.slane %v1720_v6, 2  ;;  %v6787_v7 = vld [vmem:[#allocation71_spill] sm:$0xff] }
 0x9a1   :  { %4765 = vmatpush1.bf16.msra.mxu1 %v5947_v26 }
 0x9a2   :  { %v1715_v61 = vrot.slane %v1714_v8, 1  ;;  %v1722_v60 = vadd.f32 %v1721_v44, %v1720_v6  ;;  %4767 = vmatprep.subr.bf16.mxu1 %v5952_v30 }
 0x9a4   :  { %v1716_v11 = vadd.f32 %v1715_v61, %v1714_v8  ;;  %v1723_v23 = vrot.slane %v1722_v60, 1  ;;  %3652 = vmatmul.mubr.msk.f32.vlgmr.msra.gmra.mrb[16].mxu1 %vm558_vm2, %v1879_v34  ;;  %v6788_v8 = vld [vmem:[#allocation68_spill] sm:$0xff] }
 0x9a5   :  { %4769 = vmatpush3.bf16.msra.mxu1 %v5958_v41 }
 0x9a6   :  { %v1717_v29 = vmul.f32 0.125, %v1716_v11  ;;  %v1724_v39 = vadd.f32 %v1723_v23, %v1722_v60  ;;  %4771 = vmatprep.subr.bf16.mxu1 %v5962_v45  ;;  %v6789_v60 = vld [vmem:[#allocation72_spill] sm:$0xff]  ;;  %v6790_v11 = vld [vmem:[#allocation70_spill] sm:$0xff] }
 0x9a8   :  { %v1725_v32 = vmul.f32 0.125, %v1724_v39  ;;  %v1726_v21 = vmul.f32 %v1717_v29, %v1717_v29  ;;  %v1729_v41 = vsub.f32 %v1708_v24, %v1717_v29  ;;  %v6785_v24 = vld [vmem:[#allocation67_spill] sm:$0xff] }
 0x9a9   :  { %4773 = vmatpush3.bf16.msra.mxu1 %v5970_v55 }
 0x9aa   :  { %v1727_v40 = vsub.f32 %v1725_v32, %v1726_v21  ;;  %4775 = vmatprep.subr.bf16.mxu1 %v5976_v59  ;;  %v6791_v32 = vld [vmem:[#allocation73_spill] sm:$0xff] }
 0x9ac   :  { %v1728_v26 = vmax.f32 %v1727_v40, 0.0 }
 0x9ad   :  { %4777 = vmatpush3.bf16.msra.mxu1 %v5982_v4 }
 0x9ae   :  { %v1730_v30 = vadd.f32 1e-05, %v1728_v26  ;;  %4779 = vmatprep.subr.bf16.mxu1 %v5988_v10  ;;  %v6792_v26 = vld [vmem:[#allocation74_spill] sm:$0xff] }
 0x9b0   :  { %4945 = vrsqrt.f32 %v1730_v30  ;;  %v6793_v30 = vld [vmem:[#allocation80_spill] sm:$0xff] }
 0x9b1   :  { %4781 = vmatpush3.bf16.msra.mxu1 %v5994_v22 }
 0x9b2   :  { %4783 = vmatprep.subr.bf16.mxu1 %v6000_v28  ;;  %v6773_v28 = vld [vmem:[#allocation55_spill] sm:$0xff] }
 0x9b5   :  { %4785 = vmatpush3.bf16.msra.mxu1 %v6006_v38  ;;  %v6774_v38 = vld [vmem:[#allocation56_spill] sm:$0xff] }
 0x9b6   :  { %4787 = vmatprep.subr.bf16.mxu1 %v6012_v43  ;;  %v6775_v43 = vld [vmem:[#allocation57_spill] sm:$0xff] }
 0x9b9   :  { %4789 = vmatpush3.bf16.msra.mxu1 %v6018_v50  ;;  %v6776_v50 = vld [vmem:[#allocation58_spill] sm:$0xff] }
 0x9ba   :  { %v4946_v45 = vpop.eup %4945  ;;  %4791 = vmatprep.subr.bf16.mxu1 %v6026_v57  ;;  %v6777_v57 = vld [vmem:[#allocation59_spill] sm:$0xff] }
 0x9bb   :  { %v1732_v55 = vmul.f32 %v4946_v45, %v1729_v41  ;;  %v6794_v41 = vld [vmem:[#allocation75_spill] sm:$0xff]  ;;  %v6795_v45 = vld [vmem:[#allocation81_spill] sm:$0xff] }
 0x9bd   :  { %v1733_v59 = vmul.f32 %v6222_v9, %v1732_v55  ;;  %4793 = vmatpush3.bf16.msra.mxu1 %v6030_v0  ;;  %v6778_v0 = vld [vmem:[#allocation60_spill] sm:$0xff] }
 0x9be   :  { %4795 = vmatprep.subr.bf16.mxu1 %v6038_v15  ;;  %v6779_v15 = vld [vmem:[#allocation61_spill] sm:$0xff]  ;;  %v6796_v55 = vld [vmem:[#allocation76_spill] sm:$0xff] }
 0x9bf   :  { %v1734_v4 = vadd.f32 %v6225_v62, %v1733_v59  ;;  %v6797_v59 = vld [vmem:[#allocation82_spill] sm:$0xff] }
 0x9c1   :  { %vm1735_vm14 = vcmp.ge.f32.partialorder %v1734_v4, 0.0  ;;  %v1736_v10 = vmul.f32 %v1734_v4, %v6229_v20  ;;  %4797 = vmatpush3.bf16.msra.mxu1 %v6042_v27  ;;  %v6780_v27 = vld [vmem:[#allocation62_spill] sm:$0xff] }
 0x9c2   :  { %4830 = vmatprep.subr.bf16.mxu1 %v6742_v47 }
 0x9c3   :  { %v1737_v22 = vsel %vm1735_vm14, %v1734_v4, %v1736_v10  ;;  %v6798_v4 = vld [vmem:[#allocation77_spill] sm:$0xff]  ;;  %v6799_v10 = vld [vmem:[#allocation83_spill] sm:$0xff] }
 0x9c4   :  { %4269 = vmatmul.mubr.f32.vlgmr.msra.gmra.mrb[18].mxu0 %v1737_v22  ;;  %v6800_v22 = vld [vmem:[#allocation78_spill] sm:$0xff] }
 0x9c5   :  { %4801 = vmatpush3.bf16.msra.mxu0 %v5960_v42  ;;  %v6781_v42 = vld [vmem:[#allocation63_spill] sm:$0xff] }
 0x9c6   :  { %4803 = vmatprep.subr.bf16.mxu0 %v5964_v46  ;;  %v6782_v46 = vld [vmem:[#allocation64_spill] sm:$0xff] }
 0x9c9   :  { %4805 = vmatpush3.bf16.msra.mxu0 %v5972_v56  ;;  %v6783_v56 = vld [vmem:[#allocation65_spill] sm:$0xff] }
 0x9ca   :  { %4807 = vmatprep.subr.bf16.mxu0 %v6773_v28  ;;  %v6801_v28 = vld [vmem:[#allocation84_spill] sm:$0xff] }
 0x9cd   :  { %4809 = vmatpush3.bf16.msra.mxu0 %v6774_v38  ;;  %v6802_v38 = vld [vmem:[#allocation79_spill] sm:$0xff] }
 0x9ce   :  { %4811 = vmatprep.subr.bf16.mxu0 %v6775_v43  ;;  %v6803_v43 = vld [vmem:[#allocation85_spill] sm:$0xff] }
 0x9d1   :  { %4813 = vmatpush3.bf16.msra.mxu0 %v6776_v50  ;;  %v6416_v50 = vld [vmem:[#allocation33] ss:$0 sm:$0xff] }
 0x9d2   :  { %4815 = vmatprep.subr.bf16.mxu0 %v6777_v57 }
 0x9d5   :  { %4817 = vmatpush3.bf16.msra.mxu0 %v6778_v0 }
 0x9d6   :  { %4819 = vmatprep.subr.bf16.mxu0 %v6779_v15 }
 0x9d9   :  { %4821 = vmatpush3.bf16.msra.mxu0 %v6780_v27  ;;  %v6804_v27 = vld [vmem:[#allocation86_spill] sm:$0xff] }
 0x9da   :  { %4823 = vmatprep.subr.bf16.mxu0 %v6781_v42 }
 0x9dd   :  { %4825 = vmatpush3.bf16.msra.mxu0 %v6782_v46  ;;  %v6805_v46 = vld [vmem:[#allocation87_spill] sm:$0xff] }
 0x9de   :  { %4827 = vmatprep.subr.bf16.mxu0 %v6783_v56 }
 0x9e1   :  { %4829 = vmatpush3.bf16.msra.mxu0 %v6784_v36 }
 0x9e2   :  { %4854 = vmatprep.subr.bf16.mxu0 %v6742_v47 }
 0xa6f   :  { %v1952_v25 = vpop.f32.mrb[14].mxu1 }
 0xa70   :  { %v1953_v17 = vadd.f32 %v1952_v25, %v6785_v24  ;;  %v1954_v63 = vpop.f32.mrb[15].mxu1 }
 0xa71   :  { %v1955_v34 = vadd.f32 %v1954_v63, %v6786_v31 }
 0xa72   :  { %v2032_v19 = vmul.f32 %v1953_v17, %v6787_v7  ;;  %vm2028_vm15 = vcmp.ge.f32.partialorder %v1953_v17, 0.0 }
 0xa73   :  { %v2033_v12 = vmul.f32 %v1955_v34, %v6787_v7  ;;  %vm2029_vm2 = vcmp.ge.f32.partialorder %v1955_v34, 0.0 }
 0xa74   :  { %v2036_v51 = vsel %vm2028_vm15, %v1953_v17, %v2032_v19 }
 0xa75   :  { %v2037_v16 = vsel %vm2029_vm2, %v1955_v34, %v2033_v12 }
 0xa76   :  { %2104 = vmatprep.mubr.f32.mxu1 %v2037_v16 }
 0xa77   :  { %v2023_v6 = vpop.f32.mrb[16].mxu1  ;;  %2105 = vmatmul.mubr.f32.vlgmr.msra.gmra.mrb[18].mxu1 %v2036_v51 }
 0xa78   :  { %v2024_v44 = vadd.f32 %v2023_v6, %v6788_v8  ;;  %v2025_v61 = vpop.f32.mrb[17].mxu1  ;;  %4832 = vmatpush3.bf16.msra.mxu1 %v6789_v60  ;;  %4308 = vmatprep.mubr.msk.f32.mxu1 %vm5538_vm1, %v6740_v2 }
 0xa79   :  { %v2026_v23 = vadd.f32 %v2025_v61, %v6790_v11  ;;  %4833 = vmatprep.subr.bf16.mxu1 %v6742_v47 }
 0xa7a   :  { %v2034_v29 = vmul.f32 %v2024_v44, %v6787_v7  ;;  %vm2030_vm3 = vcmp.ge.f32.partialorder %v2024_v44, 0.0 }
 0xa7b   :  { %v2035_v39 = vmul.f32 %v2026_v23, %v6787_v7  ;;  %vm2031_vm4 = vcmp.ge.f32.partialorder %v2026_v23, 0.0 }
 0xa7c   :  { %4835 = vmatpush3.bf16.msra.mxu1 %v6791_v32  ;;  %v2038_v40 = vsel %vm2030_vm3, %v2024_v44, %v2034_v29 }
 0xa7d   :  { %v2039_v21 = vsel %vm2031_vm4, %v2026_v23, %v2035_v39  ;;  %4836 = vmatprep.subr.bf16.mxu1 %v6742_v47 }
 0xa7e   :  { %2174 = vmatprep.mubr.f32.mxu0 %v2039_v21 }
 0xa7f   :  { %2175 = vmatmul.mubr.f32.vlgmr.msra.gmra.mrb[20].mxu0 %v2038_v40 }
 0xa80   :  { %4838 = vmatpush3.bf16.msra.mxu1 %v6792_v26  ;;  %4856 = vmatpush3.bf16.msra.mxu0 %v6793_v30 }
 0xa81   :  { %4839 = vmatprep.subr.bf16.mxu1 %v6742_v47  ;;  %4857 = vmatprep.subr.bf16.mxu0 %v6742_v47 }
 0xa82   :  { %4343 = vmatprep.mubr.msk.f32.mxu0 %vm5538_vm1, %v6740_v2 }
 0xa84   :  { %4841 = vmatpush3.bf16.msra.mxu1 %v6794_v41  ;;  %4859 = vmatpush3.bf16.msra.mxu0 %v6795_v45 }
 0xa85   :  { %4842 = vmatprep.subr.bf16.mxu1 %v6742_v47  ;;  %4860 = vmatprep.subr.bf16.mxu0 %v6742_v47 }
 0xa88   :  { %4844 = vmatpush3.bf16.msra.mxu1 %v6796_v55  ;;  %4862 = vmatpush3.bf16.msra.mxu0 %v6797_v59 }
 0xa89   :  { %4845 = vmatprep.subr.bf16.mxu1 %v6742_v47  ;;  %4863 = vmatprep.subr.bf16.mxu0 %v6742_v47 }
 0xa8c   :  { %4847 = vmatpush3.bf16.msra.mxu1 %v6798_v4  ;;  %4865 = vmatpush3.bf16.msra.mxu0 %v6799_v10 }
 0xa8d   :  { %4848 = vmatprep.subr.bf16.mxu1 %v6742_v47  ;;  %4866 = vmatprep.subr.bf16.mxu0 %v6742_v47 }
 0xa90   :  { %4850 = vmatpush3.bf16.msra.mxu1 %v6800_v22  ;;  %4868 = vmatpush3.bf16.msra.mxu0 %v6801_v28 }
 0xa91   :  { %4851 = vmatprep.subr.bf16.mxu1 %v6742_v47  ;;  %4869 = vmatprep.subr.bf16.mxu0 %v6742_v47 }
 0xa94   :  { %4853 = vmatpush3.bf16.msra.mxu1 %v6802_v38  ;;  %4871 = vmatpush3.bf16.msra.mxu0 %v6803_v43  ;;  %v6806_v43 = vld [vmem:[#allocation88_spill] sm:$0xff] }
 0xa95   :  { %4872 = vmatprep.subr.bf16.mxu0 %v6742_v47  ;;  %4878 = vmatprep.subr.bf16.mxu1 %v6742_v47 }
 0xa97   :  { %v1804_v57 = vpop.f32.mrb[18].mxu0 }
 0xa98   :  { %v6419_v0 = vadd.f32 %v6416_v50, %v1804_v57  ;;  %v4270_v15 = vpop.f32.mrb[19].mxu0  ;;  %4874 = vmatpush3.bf16.msra.mxu0 %v6804_v27 }
 0xa99   :  { %4875 = vmatprep.subr.bf16.mxu0 %v6742_v47 }
 0xa9a   :  { %v2736_v42 = vmul.f32 %v6419_v0, %v6419_v0 }
 0xa9c   :  { %2737 = vadd.xlane.f32.xlu0 %v2736_v42  ;;  %4877 = vmatpush3.bf16.msra.mxu0 %v6805_v46  ;;  %v2697_v42 = vmul.f32 %v6321_v5, %v6321_v5 }
 0xa9d   :  { %4381 = vmatprep.subr.mxu0 %v6740_v2 }
 0xb4a   :  { %v3936_v56 = vpop.f32.mrb[18].mxu1 }
 0xb4b   :  { %v3937_v36 = vpop.f32.mrb[19].mxu1 }
 0xb4c   :  { %v3938_v25 = vadd.f32 %v3937_v36, %v3936_v56 }
 0xb4e   :  { %v2107_v63 = vadd.f32 %v3938_v25, %v6138_v18 }
 0xb52   :  { %v3971_v24 = vpop.f32.mrb[20].mxu0 }
 0xb53   :  { %v3972_v17 = vpop.f32.mrb[21].mxu0 }
 0xb54   :  { %v3973_v31 = vadd.f32 %v3972_v17, %v3971_v24 }
 0xb56   :  { %v2177_v34 = vadd.f32 %v3973_v31, %v2107_v63 }
 0xb58   :  { %v2180_v7 = vrot.slane %v2177_v34, 4  ;;  %v2187_v19 = vmul.f32 %v2177_v34, %v2177_v34 }
 0xb5a   :  { %v2181_v12 = vadd.f32 %v2180_v7, %v2177_v34  ;;  %v2188_v16 = vrot.slane %v2187_v19, 4 }
 0xb5c   :  { %v2182_v51 = vrot.slane %v2181_v12, 2  ;;  %v2189_v6 = vadd.f32 %v2188_v16, %v2187_v19 }
 0xb5e   :  { %v2183_v8 = vadd.f32 %v2182_v51, %v2181_v12  ;;  %v2190_v44 = vrot.slane %v2189_v6, 2 }
 0xb60   :  { %v2184_v61 = vrot.slane %v2183_v8, 1  ;;  %v2191_v60 = vadd.f32 %v2190_v44, %v2189_v6 }
 0xb62   :  { %v2185_v11 = vadd.f32 %v2184_v61, %v2183_v8  ;;  %v2192_v23 = vrot.slane %v2191_v60, 1 }
 0xb64   :  { %v2186_v29 = vmul.f32 0.125, %v2185_v11  ;;  %v2193_v39 = vadd.f32 %v2192_v23, %v2191_v60 }
 0xb66   :  { %v2194_v32 = vmul.f32 0.125, %v2193_v39  ;;  %v2195_v21 = vmul.f32 %v2186_v29, %v2186_v29  ;;  %v2198_v30 = vsub.f32 %v2177_v34, %v2186_v29 }
 0xb68   :  { %v2196_v40 = vsub.f32 %v2194_v32, %v2195_v21 }
 0xb6a   :  { %v2197_v18 = vmax.f32 %v2196_v40, 0.0 }
 0xb6c   :  { %v2199_v26 = vadd.f32 1e-05, %v2197_v18 }
 0xb6e   :  { %4947 = vrsqrt.f32 %v2199_v26 }
 0xb78   :  { %v4948_v41 = vpop.eup %4947 }
 0xb79   :  { %v2201_v45 = vmul.f32 %v4948_v41, %v2198_v30 }
 0xb7b   :  { %v2202_v55 = vmul.f32 %v6141_v49, %v2201_v45  ;;  %v2686_v49 = vpop.xlane.xlu0 %2685 }
 0xb7c   :  { %4949 = vrsqrt.f32 %v2686_v49  ;;  %vm2689_vm6 = vcmp.eq.f32.partialorder %v2686_v49, inf  ;;  %vm2691_vm7 = vcmp.eq.f32.partialorder %v2686_v49, 0.0 }
 0xb7d   :  { %v2203_v59 = vadd.f32 %v6143_v1, %v2202_v55 }
 0xb7f   :  { %vm2204_vm5 = vcmp.ge.f32.partialorder %v2203_v59, 0.0  ;;  %v2205_v4 = vmul.f32 %v2203_v59, %v6146_v58  ;;  %v2738_v1 = vpop.xlane.xlu0 %2737 }
 0xb80   :  { %4951 = vrsqrt.f32 %v2738_v1  ;;  %vm2741_vm8 = vcmp.eq.f32.partialorder %v2738_v1, inf  ;;  %v2744_v28 = vand.u32 2147483648, %v2738_v1  ;;  %vm2743_vm9 = vcmp.eq.f32.partialorder %v2738_v1, 0.0 }
 0xb81   :  { %v2206_v10 = vsel %vm2204_vm5, %v2203_v59, %v2205_v4 }
 0xb82   :  { %4309 = vmatmul.mubr.f32.vlgmr.msra.gmra.mrb[20].mxu1 %v2206_v10 }
 0xb83   :  { %4880 = vmatpush3.bf16.msra.mxu1 %v6169_v14  ;;  %4378 = vmatprep.mubr.msk.f32.mxu1 %vm5538_vm1, %v6740_v2 }
 0xb84   :  { %4881 = vmatprep.subr.bf16.mxu1 %v6742_v47 }
 0xb86   :  { %v4950_v58 = vpop.eup %4949 }
 0xb87   :  { %4883 = vmatpush3.bf16.msra.mxu1 %v6173_v37  ;;  %v2688_v37 = vmul.f32 %v4950_v58, %v2686_v49 }
 0xb88   :  { %4884 = vmatprep.subr.bf16.mxu1 %v6742_v47 }
 0xb8a   :  { %v4952_v14 = vpop.eup %4951 }
 0xb8b   :  { %4886 = vmatpush3.bf16.msra.mxu1 %v6177_v13  ;;  %v2740_v13 = vmul.f32 %v4952_v14, %v2738_v1 }
 0xb8c   :  { %4887 = vmatprep.subr.bf16.mxu1 %v6742_v47 }
 0xb8d   :  { %v2742_v22 = vsel %vm2741_vm8, %v2738_v1, %v2740_v13 }
 0xb8e   :  { %v2745_v15 = vsel %vm2743_vm9, %v2744_v28, %v2742_v22 }
 0xb8f   :  { %4889 = vmatpush3.bf16.msra.mxu1 %v6181_v52  ;;  %v2690_v52 = vsel %vm2689_vm6, %v2686_v49, %v2688_v37  ;;  %v2746_v46 = vmax.f32 %v2745_v15, 1e-12  ;;  %vm3606_vm6 = vcmask 0  }
 0xb90   :  { %4890 = vmatprep.subr.bf16.mxu1 %v6742_v47 }
 0xb93   :  { %4892 = vmatpush3.bf16.msra.mxu1 %v6185_v33  ;;  %v2692_v33 = vand.u32 2147483648, %v2686_v49 }
 0xb94   :  { %4893 = vmatprep.subr.bf16.mxu1 %v6742_v47 }
 0xb97   :  { %4895 = vmatpush3.bf16.msra.mxu1 %v6189_v35 }
 0xb98   :  { %4896 = vmatprep.subr.bf16.mxu1 %v6742_v47 }
 0xb9b   :  { %4898 = vmatpush3.bf16.msra.mxu1 %v6193_v48 }
 0xb9c   :  { %4899 = vmatprep.subr.bf16.mxu1 %v6742_v47 }
 0xb9f   :  { %4901 = vmatpush3.bf16.msra.mxu1 %v6196_v53  ;;  %v2693_v53 = vsel %vm2691_vm7, %v2692_v33, %v2690_v52 }
 0xba0   :  { %4421 = vmatprep.subr.mxu1 %v6740_v2  ;;  %v2694_v57 = vmax.f32 %v2693_v53, 1e-12 }
 0xba2   :  { %4953 = vrcp.f32 %v2694_v57 }
 0xba3   :  { %4955 = vrcp.f32 %v2746_v46 }
 0xbac   :  { %v4954_v36 = vpop.eup %4953 }
 0xbad   :  { %v4956_v25 = vpop.eup %4955  ;;  %v6478_v24 = vmul.f32 %v4954_v36, %v6806_v43 }
 0xbae   :  { %v6485_v17 = vmul.f32 %v4956_v25, %v6419_v0 }
 0xc55   :  { %v2273_v35 = vpop.f32.mrb[20].mxu1 }
 0xc56   :  { %v6450_v47 = vadd.f32 %v6152_v54, %v2273_v35  ;;  %v4310_v48 = vpop.f32.mrb[21].mxu1  ;;  %v6807_v54 = vld [vmem:[#allocation90_spill] sm:$0xff] }
 0xc57   :  { %v6461_v27 = vadd.f32 %v6416_v50, %v6807_v54 }
 0xc58   :  { %4344 = vmatmul.mubr.f32.vlgmr.msra.gmra.mrb[22].mxu0 %v6450_v47  ;;  %v2710_v38 = vmul.f32 %v6450_v47, %v6450_v47 }
 0xc59   :  { %4382 = vmatpush3.xpose.msra.mxu0 %v6806_v43  ;;  %4383 = vmatprep.mubr.msk.f32.mxu0 %vm5538_vm1, %v6740_v2  ;;  %v2723_v56 = vmul.f32 %v6461_v27, %v6461_v27 }
 0xc5a   :  { %2711 = vadd.xlane.f32.xlu1 %v2710_v38  ;;  %4386 = vmatprep.subr.mxu0 %v6740_v2 }
 0xc5c   :  { %4384 = vmatmul.mubr.f32.vlgmr.msra.gmra.mrb[24].mxu0 %v6806_v43 }
 0xc5d   :  { %4387 = vmatpush3.xpose.msra.mxu0 %v6419_v0  ;;  %4388 = vmatprep.mubr.msk.f32.mxu0 %vm5538_vm1, %v6740_v2 }
 0xc5e   :  { %2698 = vadd.xlane.f32.xlu1 %v2697_v42  ;;  %4391 = vmatprep.subr.mxu0 %v6740_v2 }
 0xc62   :  { %2724 = vadd.xlane.f32.xlu1 %v2723_v56 }
 0xc64   :  { %4389 = vmatmul.mubr.f32.vlgmr.msra.gmra.mrb[24].mxu0 %v6419_v0 }
 0xc65   :  { %4392 = vmatpush3.xpose.msra.mxu0 %v6450_v47  ;;  %4393 = vmatprep.mubr.msk.f32.mxu0 %vm5538_vm1, %v6740_v2 }
 0xc66   :  { %4396 = vmatprep.subr.mxu0 %v6740_v2 }
 0xc6c   :  { %4394 = vmatmul.mubr.f32.vlgmr.msra.gmra.mrb[24].mxu0 %v6450_v47 }
 0xc6d   :  { %4397 = vmatpush3.xpose.msra.mxu0 %v6478_v24  ;;  %4398 = vmatprep.mubr.msk.f32.mxu0 %vm5538_vm1, %v6740_v2 }
 0xc6e   :  { %4401 = vmatprep.subr.mxu0 %v6740_v2 }
 0xc70   :  { %4399 = vmatmul.mubr.f32.vlgmr.msra.gmra.mrb[26].mxu0 %v6485_v17 }
 0xc71   :  { %4403 = vmatprep.mubr.msk.f32.mxu0 %vm5538_vm1, %v6740_v2 }
 0xce7   :  { %v2712_v63 = vpop.xlane.xlu1 %2711 }
 0xce8   :  { %4957 = vrsqrt.f32 %v2712_v63  ;;  %vm2715_vm10 = vcmp.eq.f32.partialorder %v2712_v63, inf  ;;  %v2718_v19 = vand.u32 2147483648, %v2712_v63  ;;  %vm2717_vm11 = vcmp.eq.f32.partialorder %v2712_v63, 0.0 }
 0xceb   :  { %v2699_v31 = vpop.xlane.xlu1 %2698 }
 0xcec   :  { %4959 = vrsqrt.f32 %v2699_v31  ;;  %vm2702_vm12 = vcmp.eq.f32.partialorder %v2699_v31, inf  ;;  %v2705_v8 = vand.u32 2147483648, %v2699_v31  ;;  %vm2704_vm13 = vcmp.eq.f32.partialorder %v2699_v31, 0.0 }
 0xcef   :  { %v2725_v30 = vpop.xlane.xlu1 %2724 }
 0xcf0   :  { %vm2728_vm14 = vcmp.eq.f32.partialorder %v2725_v30, inf  ;;  %v2731_v43 = vand.u32 2147483648, %v2725_v30  ;;  %vm2730_vm15 = vcmp.eq.f32.partialorder %v2725_v30, 0.0 }
 0xcf2   :  { %v4958_v34 = vpop.eup %4957 }
 0xcf3   :  { %v2714_v7 = vmul.f32 %v4958_v34, %v2712_v63 }
 0xcf5   :  { %v2716_v12 = vsel %vm2715_vm10, %v2712_v63, %v2714_v7 }
 0xcf6   :  { %v4960_v16 = vpop.eup %4959  ;;  %v2719_v0 = vsel %vm2717_vm11, %v2718_v19, %v2716_v12 }
 0xcf7   :  { %v2720_v51 = vmax.f32 %v2719_v0, 1e-12  ;;  %v2701_v6 = vmul.f32 %v4960_v16, %v2699_v31 }
 0xcf9   :  { %4961 = vrcp.f32 %v2720_v51  ;;  %v2703_v44 = vsel %vm2702_vm12, %v2699_v31, %v2701_v6 }
 0xcfa   :  { %v2706_v61 = vsel %vm2704_vm13, %v2705_v8, %v2703_v44 }
 0xcfb   :  { %v2707_v60 = vmax.f32 %v2706_v61, 1e-12 }
 0xcfd   :  { %4963 = vrcp.f32 %v2707_v60 }
 0xcfe   :  { %4965 = vrsqrt.f32 %v2725_v30 }
 0xd03   :  { %v4962_v11 = vpop.eup %4961 }
 0xd04   :  { %v6492_v23 = vmul.f32 %v4962_v11, %v6450_v47 }
 0xd06   :  { %4402 = vmatpush3.xpose.msra.mxu0 %v6492_v23 }
 0xd07   :  { %v4964_v29 = vpop.eup %4963  ;;  %4406 = vmatprep.subr.mxu0 %v6740_v2 }
 0xd08   :  { %v6497_v39 = vmul.f32 %v4964_v29, %v6321_v5  ;;  %v4966_v13 = vpop.eup %4965 }
 0xd09   :  { %4404 = vmatmul.mubr.f32.vlgmr.msra.gmra.mrb[28].mxu0 %v6485_v17  ;;  %v2727_v35 = vmul.f32 %v4966_v13, %v2725_v30 }
 0xd0a   :  { %4407 = vmatpush3.xpose.msra.mxu0 %v6497_v39  ;;  %4408 = vmatprep.mubr.msk.f32.mxu0 %vm5538_vm1, %v6740_v2 }
 0xd0b   :  { %4411 = vmatprep.subr.mxu0 %v6740_v2  ;;  %v2729_v28 = vsel %vm2728_vm14, %v2725_v30, %v2727_v35 }
 0xd0c   :  { %v2732_v54 = vsel %vm2730_vm15, %v2731_v43, %v2729_v28 }
 0xd0d   :  { %v2733_v46 = vmax.f32 %v2732_v54, 1e-12 }
 0xd2b   :  { %v2343_v32 = vpop.f32.mrb[22].mxu0 }
 0xd2c   :  { %v2344_v21 = vadd.f32 %v6771_v3, %v2343_v32  ;;  %v4345_v40 = vpop.f32.mrb[23].mxu0 }
 0xd2e   :  { %v2347_v18 = vrot.slane %v2344_v21, 4  ;;  %v2354_v26 = vmul.f32 %v2344_v21, %v2344_v21 }
 0xd30   :  { %v2348_v41 = vadd.f32 %v2347_v18, %v2344_v21  ;;  %v2355_v45 = vrot.slane %v2354_v26, 4 }
 0xd32   :  { %v2349_v5 = vrot.slane %v2348_v41, 2  ;;  %v2356_v55 = vadd.f32 %v2355_v45, %v2354_v26 }
 0xd34   :  { %v2350_v59 = vadd.f32 %v2349_v5, %v2348_v41  ;;  %v2357_v4 = vrot.slane %v2356_v55, 2 }
 0xd36   :  { %v2351_v10 = vrot.slane %v2350_v59, 1  ;;  %v2358_v49 = vadd.f32 %v2357_v4, %v2356_v55 }
 0xd38   :  { %v2352_v1 = vadd.f32 %v2351_v10, %v2350_v59  ;;  %v2359_v58 = vrot.slane %v2358_v49, 1 }
 0xd3a   :  { %v2353_v14 = vmul.f32 0.125, %v2352_v1  ;;  %v2360_v37 = vadd.f32 %v2359_v58, %v2358_v49 }
 0xd3c   :  { %v2361_v52 = vmul.f32 0.125, %v2360_v37  ;;  %v2362_v3 = vmul.f32 %v2353_v14, %v2353_v14  ;;  %v2365_v56 = vsub.f32 %v2344_v21, %v2353_v14 }
 0xd3e   :  { %v2363_v33 = vsub.f32 %v2361_v52, %v2362_v3 }
 0xd3f   :  { %v6505_v47 = vpop.f32.mrb[24].mxu0 }
 0xd40   :  { %v2364_v48 = vmax.f32 %v2363_v33, 0.0  ;;  %v4395_v53 = vpop.f32.mrb[25].mxu0 }
 0xd42   :  { %v2366_v22 = vadd.f32 1e-05, %v2364_v48 }
 0xd43   :  { %v2828_v38 = vpop.f32.mrb[26].mxu0 }
 0xd44   :  { %4967 = vrsqrt.f32 %v2366_v22  ;;  %v2832_v57 = vmul.f32 1.25, %v2828_v38  ;;  %v4400_v15 = vpop.f32.mrb[27].mxu0 }
 0xd46   :  { %v2833_v42 = vmul.f32 1.442695, %v2832_v57 }
 0xd48   :  { %4969 = vpow2.f32 %v2833_v42 }
 0xd49   :  { %4971 = vrcp.f32 %v2733_v46 }
 0xd4e   :  { %v4968_v36 = vpop.eup %4967 }
 0xd4f   :  { %v2368_v25 = vmul.f32 %v4968_v36, %v2365_v56 }
 0xd51   :  { %v2369_v63 = vmul.f32 %v6222_v9, %v2368_v25 }
 0xd52   :  { %v4970_v31 = vpop.eup %4969 }
 0xd53   :  { %v2835_v34 = vsel %vm463_vm0, %v4970_v31, 0.0  ;;  %v2370_v7 = vadd.f32 %v6225_v62, %v2369_v63  ;;  %v4972_v12 = vpop.eup %4971 }
 0xd54   :  { %2836 = vadd.xlane.f32.xlu1 %v2835_v34  ;;  %v6515_v0 = vmul.f32 %v4972_v12, %v6461_v27  ;;  %v2655_v27 = vmul.f32 %v6505_v47, %v6505_v47 }
 0xd55   :  { %vm2371_vm2 = vcmp.ge.f32.partialorder %v2370_v7, 0.0  ;;  %v2372_v19 = vmul.f32 %v2370_v7, %v6229_v20 }
 0xd56   :  { %v2656_v21 = vsel %vm463_vm0, %v2655_v27, 0.0 }
 0xd57   :  { %v2373_v16 = vsel %vm2371_vm2, %v2370_v7, %v2372_v19 }
 0xd58   :  { %4379 = vmatmul.mubr.f32.vlgmr.msra.gmra.mrb[22].mxu1 %v2373_v16 }
 0xd59   :  { %4422 = vmatpush3.xpose.msra.mxu1 %v6485_v17  ;;  %4423 = vmatprep.mubr.msk.f32.mxu1 %vm5538_vm1, %v6740_v2 }
 0xd5a   :  { %4431 = vmatprep.subr.mxu1 %v6740_v2 }
 0xd5c   :  { %4424 = vmatmul.mubr.f32.vlgmr.msra.gmra.mrb[24].mxu1 %v6515_v0 }
 0xd5d   :  { %4433 = vmatprep.mubr.msk.f32.mxu1 %vm5538_vm1, %v6740_v2 }
 0xddc   :  { %v2912_v9 = vpop.f32.mrb[28].mxu0 }
 0xddd   :  { %v4405_v62 = vpop.f32.mrb[29].mxu0  ;;  %v2916_v20 = vmul.f32 1.25, %v2912_v9 }
 0xddf   :  { %v2917_v51 = vmul.f32 1.442695, %v2916_v20 }
 0xde1   :  { %4973 = vpow2.f32 %v2917_v51 }
 0xdeb   :  { %v4974_v40 = vpop.eup %4973 }
 0xdec   :  { %v2919_v18 = vsel %vm463_vm0, %v4974_v40, 0.0 }
 0xe2b   :  { %v2440_v6 = vpop.f32.mrb[22].mxu1 }
 0xe2c   :  { %v2441_v8 = vadd.f32 %v6416_v50, %v2440_v6  ;;  %v4380_v44 = vpop.f32.mrb[23].mxu1 }
 0xe2e   :  { %v2749_v61 = vmul.f32 %v2441_v8, %v2441_v8 }
 0xe2f   :  { %v3241_v60 = vpop.f32.mrb[24].mxu1 }
 0xe30   :  { %v3245_v11 = vmul.f32 1.25, %v3241_v60  ;;  %2750 = vadd.xlane.f32.xlu0 %v2749_v61  ;;  %v4425_v29 = vpop.f32.mrb[25].mxu1 }
 0xe32   :  { %v3246_v32 = vmul.f32 1.442695, %v3245_v11 }
 0xe34   :  { %4975 = vpow2.f32 %v3246_v32  ;;  %2657 = vadd.xlane.f32.xlu0 %v2656_v21 }
 0xe38   :  { %2920 = vadd.xlane.f32.xlu0 %v2919_v18 }
 0xe3e   :  { %v4976_v26 = vpop.eup %4975 }
 0xe3f   :  { %v3251_v50 = vsel %vm463_vm0, %v4976_v26, 0.0 }
 0xe40   :  { %3252 = vadd.xlane.f32.xlu0 %v3251_v50  ;;  %v2924_v50 = vmul.f32 %v6485_v17, %v6492_v23 }
 0xebd   :  { %v2751_v30 = vpop.xlane.xlu0 %2750 }
 0xebe   :  { %4977 = vrsqrt.f32 %v2751_v30  ;;  %vm2754_vm3 = vcmp.eq.f32.partialorder %v2751_v30, inf  ;;  %v2757_v5 = vand.u32 2147483648, %v2751_v30  ;;  %vm2756_vm4 = vcmp.eq.f32.partialorder %v2751_v30, 0.0 }
 0xec1   :  { %v2658_v1 = vpop.xlane.xlu0 %2657 }
 0xec2   :  { %vm2661_vm5 = vcmp.eq.f32.partialorder %v2658_v1, inf  ;;  %v2664_v46 = vand.u32 2147483648, %v2658_v1 }
 0xec8   :  { %v4978_v41 = vpop.eup %4977 }
 0xec9   :  { %v2753_v45 = vmul.f32 %v4978_v41, %v2751_v30 }
 0xecb   :  { %v2755_v55 = vsel %vm2754_vm3, %v2751_v30, %v2753_v45 }
 0xecc   :  { %v2758_v59 = vsel %vm2756_vm4, %v2757_v5, %v2755_v55  ;;  %v2840_v55 = vmul.f32 %v6485_v17, %v6478_v24 }
 0xecd   :  { %v2759_v4 = vmax.f32 %v2758_v59, 1e-12  ;;  %v5013_v59 = vld [vmem:[#allocation9] sm:$0xff] }
 0xecf   :  { %4979 = vrcp.f32 %v2759_v4 }
 0xed0   :  { %4981 = vrsqrt.f32 %v2658_v1 }
 0xed9   :  { %v4980_v10 = vpop.eup %4979 }
 0xeda   :  { %v6527_v49 = vmul.f32 %v4980_v10, %v2441_v8  ;;  %v4982_v14 = vpop.eup %4981 }
 0xedb   :  { %v2660_v33 = vmul.f32 %v4982_v14, %v2658_v1  ;;  %v2921_v14 = vpop.xlane.xlu0 %2920 }
 0xedc   :  { %4409 = vmatmul.mubr.f32.vlgmr.msra.gmra.mrb[30].mxu0 %v6527_v49  ;;  %4432 = vmatpush3.xpose.msra.mxu1 %v6527_v49  ;;  %v3093_v5 = vmul.f32 %v6527_v49, %v6478_v24  ;;  %v3417_v23 = vmul.f32 %v6527_v49, %v6485_v17 }
 0xedd   :  { %4412 = vmatpush3.xpose.msra.mxu0 %v6478_v24  ;;  %4413 = vmatprep.mubr.msk.f32.mxu0 %vm5538_vm1, %v6740_v2  ;;  %v2662_v57 = vsel %vm2661_vm5, %v2658_v1, %v2660_v33  ;;  %v3579_v24 = vmul.f32 %v6527_v49, %v6515_v0 }
 0xede   :  { %4416 = vmatprep.subr.mxu0 %v6740_v2  ;;  %4441 = vmatprep.subr.mxu1 %v6740_v2 }
 0xedf   :  { %4434 = vmatmul.mubr.f32.vlgmr.msra.gmra.mrb[26].mxu1 %v6485_v17 }
 0xee0   :  { %4414 = vmatmul.mubr.f32.vlgmr.msra.gmra.mrb[32].mxu0 %v6527_v49  ;;  %4442 = vmatpush3.xpose.msra.mxu1 %v6515_v0 }
 0xee1   :  { %4417 = vmatpush3.xpose.msra.mxu0 %v6515_v0  ;;  %4443 = vmatprep.mubr.msk.f32.mxu1 %vm5538_vm1, %v6740_v2 }
 0xee2   :  { %4418 = vmatprep.mubr.msk.f32.mxu0 %vm5538_vm1, %v6740_v2  ;;  %4426 = vmatprep.subr.mxu0 %v6740_v2 }
 0xee3   :  { %4444 = vmatmul.mubr.f32.vlgmr.msra.gmra.mrb[28].mxu1 %v6527_v49 }
 0xee4   :  { %4419 = vmatmul.mubr.f32.vlgmr.msra.gmra.mrb[34].mxu0 %v6515_v0 }
 0xee5   :  { %4427 = vmatpush3.xpose.msra.mxu0 %v6485_v17  ;;  %4428 = vmatprep.mubr.msk.f32.mxu0 %vm5538_vm1, %v6740_v2 }
 0xee6   :  { %4436 = vmatprep.subr.mxu0 %v6740_v2 }
 0xee8   :  { %4429 = vmatmul.mubr.f32.vlgmr.msra.gmra.mrb[36].mxu0 %v6485_v17 }
 0xee9   :  { %4437 = vmatpush3.xpose.msra.mxu0 %v6527_v49  ;;  %4438 = vmatprep.mubr.msk.f32.mxu0 %vm5538_vm1, %v6740_v2  ;;  %vm2663_vm1 = vcmp.eq.f32.partialorder %v2658_v1, 0.0 }
 0xeea   :  { %v2665_v63 = vsel %vm2663_vm1, %v2664_v46, %v2662_v57 }
 0xeeb   :  { %v2666_v12 = vmax.f32 %v2665_v63, 1e-12 }
 0xeec   :  { %4439 = vmatmul.mubr.f32.vlgmr.msra.gmra.mrb[38].mxu0 %v6527_v49 }
 0xfaf   :  { %v2997_v58 = vpop.f32.mrb[30].mxu0 }
 0xfb0   :  { %v3001_v37 = vmul.f32 1.25, %v2997_v58  ;;  %v4410_v13 = vpop.f32.mrb[31].mxu0  ;;  %v3256_v58 = vmul.f32 %v6485_v17, %v6515_v0 }
 0xfb1   :  { %v2837_v13 = vpop.xlane.xlu1 %2836 }
 0xfb2   :  { %v3002_v52 = vmul.f32 1.442695, %v3001_v37  ;;  %v3402_v3 = vpop.f32.mrb[26].mxu1  ;;  %v3253_v37 = vpop.xlane.xlu0 %3252 }
 0xfb3   :  { %v3406_v35 = vmul.f32 1.25, %v3402_v3  ;;  %v3081_v48 = vpop.f32.mrb[32].mxu0  ;;  %v4435_v53 = vpop.f32.mrb[27].mxu1 }
 0xfb4   :  { %4983 = vpow2.f32 %v3002_v52  ;;  %v3085_v22 = vmul.f32 1.25, %v3081_v48  ;;  %v4415_v28 = vpop.f32.mrb[33].mxu0 }
 0xfb5   :  { %v3407_v38 = vmul.f32 1.442695, %v3406_v35 }
 0xfb6   :  { %v3086_v2 = vmul.f32 1.442695, %v3085_v22  ;;  %v3564_v43 = vpop.f32.mrb[28].mxu1 }
 0xfb7   :  { %4985 = vpow2.f32 %v3407_v38  ;;  %v3568_v15 = vmul.f32 1.25, %v3564_v43  ;;  %v3168_v54 = vpop.f32.mrb[34].mxu0  ;;  %v4445_v42 = vpop.f32.mrb[29].mxu1 }
 0xfb8   :  { %v3172_v56 = vmul.f32 1.25, %v3168_v54  ;;  %v4420_v36 = vpop.f32.mrb[35].mxu0  ;;  %4987 = vpow2.f32 %v3086_v2 }
 0xfb9   :  { %v3569_v25 = vmul.f32 1.442695, %v3568_v15 }
 0xfba   :  { %v3173_v31 = vmul.f32 1.442695, %v3172_v56 }
 0xfbb   :  { %v3329_v34 = vpop.f32.mrb[36].mxu0 }
 0xfbc   :  { %4989 = vpow2.f32 %v3173_v31  ;;  %v3333_v7 = vmul.f32 1.25, %v3329_v34  ;;  %v4430_v19 = vpop.f32.mrb[37].mxu0 }
 0xfbd   :  { %4991 = vpow2.f32 %v3569_v25 }
 0xfbe   :  { %v4984_v16 = vpop.eup %4983  ;;  %v3334_v9 = vmul.f32 1.442695, %v3333_v7 }
 0xfbf   :  { %v3491_v62 = vpop.f32.mrb[38].mxu0  ;;  %v3004_v20 = vsel %vm463_vm0, %v4984_v16, 0.0 }
 0xfc0   :  { %4993 = vpow2.f32 %v3334_v9  ;;  %v3495_v51 = vmul.f32 1.25, %v3491_v62  ;;  %3005 = vadd.xlane.f32.xlu1 %v3004_v20  ;;  %v4440_v6 = vpop.f32.mrb[39].mxu0 }
 0xfc1   :  { %v4986_v8 = vpop.eup %4985  ;;  %4995 = vrcp.f32 %v2666_v12 }
 0xfc2   :  { %v3496_v44 = vmul.f32 1.442695, %v3495_v51  ;;  %v3412_v61 = vsel %vm463_vm0, %v4986_v8, 0.0  ;;  %v4988_v27 = vpop.eup %4987 }
 0xfc3   :  { %3413 = vadd.xlane.f32.xlu0 %v3412_v61  ;;  %v3088_v11 = vsel %vm463_vm0, %v4988_v27, 0.0 }
 0xfc4   :  { %4997 = vpow2.f32 %v3496_v44 }
 0xfc5   :  { %4999 = vlog2.f32 %v2837_v13 }
 0xfc6   :  { %v4990_v60 = vpop.eup %4989 }
 0xfc7   :  { %v4992_v29 = vpop.eup %4991  ;;  %3089 = vadd.xlane.f32.xlu0 %v3088_v11  ;;  %v3248_v32 = vsel %vm463_vm0, %v4990_v60, 0.0 }
 0xfc8   :  { %3249 = vadd.xlane.f32.xlu1 %v3248_v32  ;;  %v3574_v40 = vsel %vm463_vm0, %v4992_v29, 0.0 }
 0xfca   :  { %v4994_v21 = vpop.eup %4993 }
 0xfcb   :  { %v4996_v18 = vpop.eup %4995  ;;  %3575 = vadd.xlane.f32.xlu0 %v3574_v40  ;;  %v3409_v26 = vsel %vm463_vm0, %v4994_v21, 0.0 }
 0xfcc   :  { %3410 = vadd.xlane.f32.xlu1 %v3409_v26  ;;  %v2668_v41 = vmul.f32 %v4996_v18, %v6505_v47  ;;  %v3009_v47 = vmul.f32 %v6527_v49, %v6497_v39 }
 0xfce   :  { %v4998_v30 = vpop.eup %4997  ;;  %v2669_v4 = vsub.f32 %v5013_v59, %v2668_v41 }
 0xfcf   :  { %2925 = vadd.xlane.f32.xlu0 %v2924_v50  ;;  %v3571_v45 = vsel %vm463_vm0, %v4998_v30, 0.0  ;;  %v5000_v38 = vpop.eup %4999 }
 0xfd0   :  { %3572 = vadd.xlane.f32.xlu1 %v3571_v45  ;;  %v2670_v10 = vmul.f32 %v2669_v4, %v2669_v4  ;;  %v2839_v42 = vmul.f32 0.6931472, %v5000_v38 }
 0xfd2   :  { %v2671_v1 = vsel %vm463_vm0, %v2670_v10, 0.0  ;;  %vm3592_vm0 = vcmask 7168  }
 0xfd3   :  { %3094 = vadd.xlane.f32.xlu0 %v3093_v5 }
 0xfd4   :  { %2841 = vadd.xlane.f32.xlu1 %v2840_v55 }
 0xfd7   :  { %3418 = vadd.xlane.f32.xlu0 %v3417_v23 }
 0xfd8   :  { %3010 = vadd.xlane.f32.xlu1 %v3009_v47 }
 0xfdb   :  { %2672 = vadd.xlane.f32.xlu0 %v2671_v1 }
 0xfdc   :  { %3257 = vadd.xlane.f32.xlu1 %v3256_v58 }
 0xfe0   :  { %3580 = vadd.xlane.f32.xlu1 %v3579_v24 }
0x104d   :  { %v3006_v3 = vpop.xlane.xlu1 %3005 }
0x1050   :  { %v3414_v52 = vpop.xlane.xlu0 %3413 }
0x1054   :  { %v3090_v39 = vpop.xlane.xlu0 %3089 }
0x1055   :  { %5001 = vlog2.f32 %v3090_v39  ;;  %v3250_v33 = vpop.xlane.xlu1 %3249 }
0x1056   :  { %5003 = vlog2.f32 %v2921_v14  ;;  %v3254_v35 = vadd.f32 %v3253_v37, %v3250_v33 }
0x1057   :  { %5005 = vlog2.f32 %v3006_v3 }
0x1058   :  { %v3653_v48 = vadd.f32 -3.4903429, %v3254_v35  ;;  %v3576_v53 = vpop.xlane.xlu0 %3575 }
0x1059   :  { %v3411_v17 = vpop.xlane.xlu1 %3410 }
0x105a   :  { %v3415_v22 = vadd.f32 %v3414_v52, %v3411_v17  ;;  %5007 = vlog2.f32 %v3653_v48 }
0x105c   :  { %v3654_v28 = vadd.f32 -3.4903429, %v3415_v22  ;;  %v2926_v0 = vpop.xlane.xlu0 %2925 }
0x105d   :  { %v3573_v49 = vpop.xlane.xlu1 %3572  ;;  %v2927_v46 = vmul.f32 1.25, %v2926_v0 }
0x105e   :  { %5009 = vlog2.f32 %v3654_v28  ;;  %v3577_v2 = vadd.f32 %v3576_v53, %v3573_v49 }
0x105f   :  { %v5002_v43 = vpop.eup %5001 }
0x1060   :  { %v5004_v57 = vpop.eup %5003  ;;  %v3655_v15 = vadd.f32 -3.4903429, %v3577_v2  ;;  %v3095_v54 = vpop.xlane.xlu0 %3094  ;;  %v3092_v36 = vmul.f32 0.6931472, %v5002_v43 }
0x1061   :  { %v2842_v56 = vpop.xlane.xlu1 %2841  ;;  %v3096_v25 = vmul.f32 1.25, %v3095_v54  ;;  %v5006_v31 = vpop.eup %5005  ;;  %v2923_v34 = vmul.f32 0.6931472, %v5004_v57 }
0x1062   :  { %5011 = vlog2.f32 %v3655_v15  ;;  %v2843_v63 = vmul.f32 1.25, %v2842_v56  ;;  %v3008_v62 = vmul.f32 0.6931472, %v5006_v31 }
0x1063   :  { %v2928_v12 = vsub.f32 %v2923_v34, %v2927_v46  ;;  %v3097_v20 = vsub.f32 %v3092_v36, %v3096_v25 }
0x1064   :  { %v2844_v7 = vsub.f32 %v2839_v42, %v2843_v63  ;;  %v3419_v19 = vpop.xlane.xlu0 %3418  ;;  %v5008_v9 = vpop.eup %5007 }
0x1065   :  { %v3011_v16 = vpop.xlane.xlu1 %3010  ;;  %v3260_v27 = vmul.f32 0.6931472, %v5008_v9  ;;  %v2929_v11 = vmul.f32 0.5, %v2928_v12  ;;  %v3098_v21 = vmul.f32 0.5, %v3097_v20  ;;  %v3422_v40 = vmul.f32 1.25, %v3419_v19 }
0x1066   :  { %v3012_v51 = vmul.f32 1.25, %v3011_v16  ;;  %v2845_v8 = vmul.f32 0.5, %v2844_v7 }
0x1068   :  { %v5010_v6 = vpop.eup %5009  ;;  %v3013_v44 = vsub.f32 %v3008_v62, %v3012_v51  ;;  %v2673_v61 = vpop.xlane.xlu0 %2672  ;;  %v2930_v41 = vadd.f32 %v2929_v11, %v2845_v8 }
0x1069   :  { %v3421_v60 = vmul.f32 0.6931472, %v5010_v6  ;;  %v2674_v29 = vrot.slane %v2673_v61, 4  ;;  %v3258_v32 = vpop.xlane.xlu1 %3257 }
0x106a   :  { %v3014_v18 = vmul.f32 0.5, %v3013_v44  ;;  %v3261_v26 = vmul.f32 1.25, %v3258_v32 }
0x106b   :  { %v2675_v50 = vadd.f32 %v2674_v29, %v2673_v61  ;;  %v3423_v45 = vsub.f32 %v3421_v60, %v3422_v40 }
0x106c   :  { %v5012_v30 = vpop.eup %5011  ;;  %v3099_v5 = vadd.f32 %v3098_v21, %v3014_v18  ;;  %v3262_v55 = vsub.f32 %v3260_v27, %v3261_v26 }
0x106d   :  { %v3583_v59 = vmul.f32 0.6931472, %v5012_v30  ;;  %v2676_v4 = vrot.slane %v2675_v50, 2  ;;  %v3581_v23 = vpop.xlane.xlu1 %3580 }
0x106e   :  { %v3584_v47 = vmul.f32 1.25, %v3581_v23  ;;  %v3100_v10 = vadd.f32 %v3099_v5, %v2930_v41  ;;  %v3424_v58 = vadd.f32 %v3423_v45, %v3262_v55 }
0x106f   :  { %v2677_v1 = vadd.f32 %v2676_v4, %v2675_v50 }
0x1070   :  { %v3585_v24 = vsub.f32 %v3583_v59, %v3584_v47  ;;  %v3101_v13 = vmul.f32 0.5, %v3100_v10 }
0x1071   :  { %v2678_v14 = vrot.slane %v2677_v1, 1 }
0x1072   :  { %v3586_v37 = vadd.f32 %v3585_v24, %v3424_v58  ;;  %v3590_v33 = vmul.f32 0.4, %v3101_v13 }
0x1073   :  { %v2679_v52 = vadd.f32 %v2678_v14, %v2677_v1 }
0x1074   :  { %v3588_v3 = vmul.f32 0.33333334, %v3586_v37 }
0x1075   :  { %4906 = vpush %v2679_v52 }
0x1076   :  { %v3589_v39 = vmul.f32 0.6, %v3588_v3 }
0x1078   :  { %v3591_v35 = vadd.f32 %v3590_v33, %v3589_v39 }
0x107a   :  { %v3593_v48 = vsel %vm3592_vm0, %v3591_v35, 0.0 }
0x107b   :  { %3594 = vadd.xlane.f32.xlu1 %v3593_v48 }
0x10a6   :  { %s4907_s8 = spop %4906 }
0x10a7   :  { %v2681_v2 = vstv %s4907_s8 }
0x10a8   :  { %v2683_v57 = vmul.f32 0.015625, %v2681_v2 }
0x1108   :  { %v3595_v53 = vpop.xlane.xlu1 %3594 }
0x1109   :  { %v3596_v17 = vrot.slane %v3595_v53, 4 }
0x110b   :  { %v3597_v22 = vadd.f32 %v3596_v17, %v3595_v53 }
0x110d   :  { %v3598_v28 = vrot.slane %v3597_v22, 2 }
0x110f   :  { %v3599_v0 = vadd.f32 %v3598_v28, %v3597_v22 }
0x1111   :  { %v3600_v49 = vrot.slane %v3599_v0, 1 }
0x1113   :  { %v3601_v38 = vadd.f32 %v3600_v49, %v3599_v0 }
0x1115   :  { %4908 = vpush %v3601_v38 }
0x1146   :  { %s4909_s11 = spop %4908 }
0x1147   :  { %v3603_v43 = vstv %s4909_s11 }
0x1148   :  { %v3604_v15 = vmul.f32 0.125, %v3603_v43 }
0x114a   :  { %v3605_v54 = vadd.f32 %v3604_v15, %v2683_v57 }
0x114c   :  { %3607 = vst.msk [vmem:[#allocation36] sm:$0x1] %vm3606_vm6, %v3605_v54 }
0x114d   :  { %5475 = shalt.err (!%p5472_p13)
}
0x114e   :  { %s6808_s23 = sld [smem:[#allocation97_spill]] }
0x1154   :  { %s5476_s29 = scalar_lea.hbm %s6808_s23, 16 }
0x1155   :  { %p5477_p0 = scmp.ne.s32.totalorder %s6808_s23, %s5476_s29  ;;  %p5480_p1 = scmp.lt.u32.totalorder %s5476_s29, %s6808_s23 }
0x1157   :  { %p5482_p2 = pnand %p5480_p1, %p5477_p0 }
0x1159   :  { %5485 = shalt.err (!%p5482_p2)
}
0x115a   :  { %3617 = dma.vmem_to_hbm [thread:$0]  %s3615_s12, 16, %s6808_s23, [#allocation4]  }
0x115b   :  { %5510 = dma.done.wait [#allocation4], 16  }
0x115c   :  { %5511 = vsyncadd [#allocation4], 4294967280 }
0x115d   :  { %3621 = vsyncpa [#allocation3], 1 }
0x115e   :  { %3622 = vsyncpa [#allocation7], 1 }
0x115f   :  { %3623 = vsyncpa [#allocation10], 1 }
0x1160   :  { %3624 = vsyncpa [#allocation13], 1 }
0x1161   :  { %3625 = vsyncpa [#allocation16], 1 }
0x1162   :  { %3626 = vsyncpa [#allocation19], 1 }
0x1163   :  { %3627 = vsyncpa [#allocation22], 1 }
0x1164   :  { %3628 = vsyncpa [#allocation25], 1 }
0x1165   :  { %3629 = vsyncpa [#allocation28], 1 }
0x1166   :  { %3630 = vsyncpa [#allocation31], 1 }
0x1167   :  { %3631 = vsyncpa [#allocation34], 1 }
0x1168   :  { %3632 = vsyncpa [#allocation4], 1 }
0x1169   :  { %3633 = vsyncpa [#allocation5], 1 }

</bundles_post_ra>
